<compile_context>
chip_gen: v7x
topology: tpu7x:2x2x1
jax: 0.10.0
libtpu: 0.0.40
codegen_flags: <defaults>
</compile_context>

<pallas_src>
import jax
import jax.numpy as jnp
from jax.experimental import pallas as pl
from jax.experimental.pallas import tpu as pltpu

B, CIN, H, W = 2, 20, 8, 8     # input [B, 20, 8, 8]; fc1 expects 16*8*8 = 1024
CMID = 16                      # conv output channels
HID = 128
NCLS = 7
_VMEM = pltpu.MemorySpace.VMEM


# -----------------------------------------------------------------------------
# Kernel 1: fused conv stack (5x conv 3x3, stride 1, pad 1), NHWC activations.
# -----------------------------------------------------------------------------
def conv_stack_kernel(x_ref, w1, b1, w2, b2, w3, b3, w4, b4, w5, b5,
                      o_ref, pad0_ref, pad_ref):
    def conv3x3(pref, cin, w_ref, b_ref):
        # One 3x3 conv as 9 shifted MXU matmuls, f32 accumulation.
        # w_ref has shape (9, cin, cout); tap order matches (dy, dx) row-major.
        acc = None
        for dy in range(3):
            for dx in range(3):
                tap = pref[:, dy:dy + H, dx:dx + W, :].reshape(B * H * W, cin)
                part = jnp.dot(tap, w_ref[dy * 3 + dx],
                               preferred_element_type=jnp.float32)
                acc = part if acc is None else acc + part
        return acc + b_ref[...]

    # Zero the padded scratches once; the 1-pixel border stays zero throughout.
    pad0_ref[...] = jnp.zeros_like(pad0_ref)
    pad_ref[...] = jnp.zeros_like(pad_ref)

    # conv1: 20 -> 16
    pad0_ref[:, 1:H + 1, 1:W + 1, :] = x_ref[...]
    y = conv3x3(pad0_ref, CIN, w1, b1)

    # conv2..conv5: 16 -> 16.  The padded scratch is rewritten in place each
    # layer; layer i's tap loads complete before layer i+1's interior store.
    for w_ref, b_ref in ((w2, b2), (w3, b3), (w4, b4), (w5, b5)):
        pad_ref[:, 1:H + 1, 1:W + 1, :] = y.reshape(B, H, W, CMID)
        y = conv3x3(pad_ref, CMID, w_ref, b_ref)

    # (B*H*W, C) -> (B, H*W, C): per-batch features in (h, w, c) order.
    o_ref[...] = y.reshape(B, H * W, CMID)


def conv_stack(x_nhwc, conv_params):
    flat = []
    for w, b in conv_params:
        flat += [w, b]
    return pl.pallas_call(
        conv_stack_kernel,
        out_shape=jax.ShapeDtypeStruct((B, H * W, CMID), jnp.float32),
        in_specs=[pl.BlockSpec(memory_space=_VMEM)] * (1 + len(flat)),
        out_specs=pl.BlockSpec(memory_space=_VMEM),
        scratch_shapes=[
            pltpu.VMEM((B, H + 2, W + 2, CIN), jnp.float32),
            pltpu.VMEM((B, H + 2, W + 2, CMID), jnp.float32),
        ],
    )(x_nhwc, *flat)


# -----------------------------------------------------------------------------
# Kernel 2: fused FC stack (6 Linear layers) + softmax.
# -----------------------------------------------------------------------------
def mlp_softmax_kernel(x_ref, w1, b1, w2, b2, w3, b3, w4, b4, w5, b5, w6, b6,
                       o_ref):
    h = x_ref[...]
    for w_ref, b_ref in ((w1, b1), (w2, b2), (w3, b3),
                         (w4, b4), (w5, b5), (w6, b6)):
        h = jnp.dot(h, w_ref[...],
                    preferred_element_type=jnp.float32) + b_ref[...]
    # Numerically stable softmax over the class dim with an EXACT divide
    # (the previous approx reciprocal broke the sum-to-1 property).
    m = jnp.max(h, axis=1, keepdims=True)
    e = jnp.exp(h - m)
    denom = jnp.sum(e, axis=1, keepdims=True)
    o_ref[...] = e / denom


def mlp_softmax(feat, fc_params):
    flat = []
    for w, b in fc_params:
        flat += [w, b]
    return pl.pallas_call(
        mlp_softmax_kernel,
        out_shape=jax.ShapeDtypeStruct((B, NCLS), jnp.float32),
        in_specs=[pl.BlockSpec(memory_space=_VMEM)] * (1 + len(flat)),
        out_specs=pl.BlockSpec(memory_space=_VMEM),
    )(feat, *flat)


# -----------------------------------------------------------------------------
# Full model forward.
# -----------------------------------------------------------------------------
@jax.jit
def test_leak_model_forward(x_nchw, conv_params, fc_params):
    x_nhwc = jnp.transpose(x_nchw, (0, 2, 3, 1))   # tiny (10 KiB) one-off relayout
    feat = conv_stack(x_nhwc, conv_params)          # (B, H*W, C)
    feat = feat.reshape(B, H * W * CMID)            # bitcast-level reshape
    return mlp_softmax(feat, fc_params)


# -----------------------------------------------------------------------------
# Parameter construction (PyTorch layouts) and conversion to kernel layouts.
# -----------------------------------------------------------------------------
def make_torch_layout_params(key):
    """Random params in PyTorch's native layouts (Conv2d: OIHW, Linear: (out, in))."""
    conv_shapes = [(CMID, CIN)] + [(CMID, CMID)] * 4
    fc_shapes = [(HID, H * W * CMID)] + [(HID, HID)] * 4 + [(NCLS, HID)]
    convs, fcs = [], []
    for cout, cin in conv_shapes:
        key, kw, kb = jax.random.split(key, 3)
        s = 1.0 / (cin * 9) ** 0.5
        convs.append((jax.random.normal(kw, (cout, cin, 3, 3), jnp.float32) * s,
                      jax.random.normal(kb, (cout,), jnp.float32) * s))
    for fout, fin in fc_shapes:
        key, kw, kb = jax.random.split(key, 3)
        s = 1.0 / fin ** 0.5
        fcs.append((jax.random.normal(kw, (fout, fin), jnp.float32) * s,
                    jax.random.normal(kb, (fout,), jnp.float32) * s))
    return convs, fcs


def convert_conv(w_pt, b_pt):
    """Conv2d OIHW (Cout, Cin, 3, 3) -> ((9, Cin, Cout), (1, Cout)).
    Tap order matches the kernel's (dy, dx) row-major loop."""
    cout, cin, kh, kw = w_pt.shape
    w = jnp.transpose(w_pt, (2, 3, 1, 0)).reshape(kh * kw, cin, cout)
    return w, b_pt.reshape(1, cout)


def convert_fc(w_pt, b_pt):
    """Linear (out, in) -> ((in, out), (1, out))."""
    return jnp.transpose(w_pt), b_pt.reshape(1, -1)


def convert_fc1(w_pt, b_pt):
    """fc1: additionally permute the input rows from PyTorch's NCHW flatten
    order (c, h, w) to the kernel's NHWC flatten order (h, w, c)."""
    w, b = convert_fc(w_pt, b_pt)                                   # (1024, HID)
    w = w.reshape(CMID, H, W, HID)                                  # rows (c, h, w)
    w = jnp.transpose(w, (1, 2, 0, 3)).reshape(H * W * CMID, HID)   # rows (h, w, c)
    return w, b


# -----------------------------------------------------------------------------
# Pure-JAX reference of the PyTorch module (for a correctness cross-check).
# -----------------------------------------------------------------------------
def reference_forward(x_nchw, convs_pt, fcs_pt):
    x = x_nchw
    for w, b in convs_pt:
        x = jax.lax.conv_general_dilated(
            x, w, window_strides=(1, 1), padding=((1, 1), (1, 1)),
            dimension_numbers=("NCHW", "OIHW", "NCHW"),
            precision=jax.lax.Precision.HIGHEST) + b.reshape(1, -1, 1, 1)
    h = x.reshape(x.shape[0], -1)
    for w, b in fcs_pt:
        h = jnp.dot(h, w.T, precision=jax.lax.Precision.HIGHEST) + b
    return jax.nn.softmax(h, axis=1)


if __name__ == "__main__":
    key = jax.random.PRNGKey(0)
    key, kx = jax.random.split(key)
    x = jax.random.normal(kx, (B, CIN, H, W), jnp.float32)

    convs_pt, fcs_pt = make_torch_layout_params(key)
    conv_params = [convert_conv(w, b) for w, b in convs_pt]
    fc_params = [convert_fc1(*fcs_pt[0])] + [convert_fc(w, b) for w, b in fcs_pt[1:]]

    out = test_leak_model_forward(x, conv_params, fc_params)
    jax.block_until_ready(out)

    assert out.shape == (B, NCLS), out.shape
    # Softmax rows must sum to ~1 (exact divide now, so this is tight).
    assert jnp.allclose(jnp.sum(out, axis=1), 1.0, atol=1e-3)

    # Cross-check the kernels against a pure-JAX reference of the module.
    ref = reference_forward(x, convs_pt, fcs_pt)
    max_err = float(jnp.max(jnp.abs(out - ref)))
    assert max_err < 2e-2, f"mismatch vs reference: max |diff| = {max_err}"

    print("KERNEL_OK")
</pallas_src>

<mosaic_0001>
module attributes {stable_mosaic.version = 11 : i64} {
  func.func @conv_stack_kernel(%arg0: memref<2x8x8x20xf32, #tpu.memory_space<vmem>>, %arg1: memref<9x20x16xf32, #tpu.memory_space<vmem>>, %arg2: memref<1x16xf32, #tpu.memory_space<vmem>>, %arg3: memref<9x16x16xf32, #tpu.memory_space<vmem>>, %arg4: memref<1x16xf32, #tpu.memory_space<vmem>>, %arg5: memref<9x16x16xf32, #tpu.memory_space<vmem>>, %arg6: memref<1x16xf32, #tpu.memory_space<vmem>>, %arg7: memref<9x16x16xf32, #tpu.memory_space<vmem>>, %arg8: memref<1x16xf32, #tpu.memory_space<vmem>>, %arg9: memref<9x16x16xf32, #tpu.memory_space<vmem>>, %arg10: memref<1x16xf32, #tpu.memory_space<vmem>>, %arg11: memref<2x64x16xf32, #tpu.memory_space<vmem>>, %arg12: memref<2x10x10x20xf32, #tpu.memory_space<vmem>>, %arg13: memref<2x10x10x16xf32, #tpu.memory_space<vmem>>) attributes {dimension_semantics = [], scalar_prefetch = 0 : i64, scratch_operands = 2 : i64, tpu.core_type = #tpu.core_type<tc>} {
    %cst = arith.constant 0.000000e+00 : f32
    %0 = vector.broadcast %cst : f32 to vector<2x10x10x20xf32>
    %c0 = arith.constant 0 : index
    %c0_0 = arith.constant 0 : index
    %c0_1 = arith.constant 0 : index
    %c0_2 = arith.constant 0 : index
    %1 = vector.load %arg12[%c0, %c0_0, %c0_1, %c0_2] : memref<2x10x10x20xf32, #tpu.memory_space<vmem>>, vector<2x10x10x20xf32>
    tpu.vector_store %arg12[%c0, %c0_0, %c0_1, %c0_2], %0 {strides = array<i32>} : memref<2x10x10x20xf32, #tpu.memory_space<vmem>>, vector<2x10x10x20xf32>,
    %cst_3 = arith.constant 0.000000e+00 : f32
    %2 = vector.broadcast %cst_3 : f32 to vector<2x10x10x16xf32>
    %c0_4 = arith.constant 0 : index
    %c0_5 = arith.constant 0 : index
    %c0_6 = arith.constant 0 : index
    %c0_7 = arith.constant 0 : index
    %3 = vector.load %arg13[%c0_4, %c0_5, %c0_6, %c0_7] : memref<2x10x10x16xf32, #tpu.memory_space<vmem>>, vector<2x10x10x16xf32>
    tpu.vector_store %arg13[%c0_4, %c0_5, %c0_6, %c0_7], %2 {strides = array<i32>} : memref<2x10x10x16xf32, #tpu.memory_space<vmem>>, vector<2x10x10x16xf32>,
    %c0_8 = arith.constant 0 : index
    %c0_9 = arith.constant 0 : index
    %c0_10 = arith.constant 0 : index
    %c0_11 = arith.constant 0 : index
    %4 = vector.load %arg0[%c0_8, %c0_9, %c0_10, %c0_11] : memref<2x8x8x20xf32, #tpu.memory_space<vmem>>, vector<2x8x8x20xf32>
    %c0_12 = arith.constant 0 : index
    %c1 = arith.constant 1 : index
    %c1_13 = arith.constant 1 : index
    %c0_14 = arith.constant 0 : index
    %5 = vector.load %arg12[%c0_12, %c1, %c1_13, %c0_14] : memref<2x10x10x20xf32, #tpu.memory_space<vmem>>, vector<2x8x8x20xf32>
    tpu.vector_store %arg12[%c0_12, %c1, %c1_13, %c0_14], %4 {strides = array<i32>} : memref<2x10x10x20xf32, #tpu.memory_space<vmem>>, vector<2x8x8x20xf32>,
    %c0_15 = arith.constant 0 : index
    %c0_16 = arith.constant 0 : index
    %c0_17 = arith.constant 0 : index
    %c0_18 = arith.constant 0 : index
    %6 = vector.load %arg12[%c0_15, %c0_16, %c0_17, %c0_18] : memref<2x10x10x20xf32, #tpu.memory_space<vmem>>, vector<2x8x8x20xf32>
    %7 = vector.shape_cast %6 : vector<2x8x8x20xf32> to vector<128x20xf32>
    %c0_19 = arith.constant 0 : index
    %c0_20 = arith.constant 0 : index
    %c0_21 = arith.constant 0 : index
    %8 = vector.load %arg1[%c0_19, %c0_20, %c0_21] : memref<9x20x16xf32, #tpu.memory_space<vmem>>, vector<1x20x16xf32>
    %9 = vector.shape_cast %8 : vector<1x20x16xf32> to vector<20x16xf32>
    %cst_22 = arith.constant dense<0.000000e+00> : vector<128x16xf32>
    %10 = tpu.matmul %7, %9, %cst_22 {dimension_numbers = #tpu.dot_dimension_numbers<[1], [0], [0], [1], [0, 0, 1, 1], [], []>} : vector<128x20xf32>, vector<20x16xf32>, vector<128x16xf32> -> vector<128x16xf32>
    %c0_23 = arith.constant 0 : index
    %c0_24 = arith.constant 0 : index
    %c1_25 = arith.constant 1 : index
    %c0_26 = arith.constant 0 : index
    %11 = vector.load %arg12[%c0_23, %c0_24, %c1_25, %c0_26] : memref<2x10x10x20xf32, #tpu.memory_space<vmem>>, vector<2x8x8x20xf32>
    %12 = vector.shape_cast %11 : vector<2x8x8x20xf32> to vector<128x20xf32>
    %c1_27 = arith.constant 1 : index
    %c0_28 = arith.constant 0 : index
    %c0_29 = arith.constant 0 : index
    %13 = vector.load %arg1[%c1_27, %c0_28, %c0_29] : memref<9x20x16xf32, #tpu.memory_space<vmem>>, vector<1x20x16xf32>
    %14 = vector.shape_cast %13 : vector<1x20x16xf32> to vector<20x16xf32>
    %cst_30 = arith.constant dense<0.000000e+00> : vector<128x16xf32>
    %15 = tpu.matmul %12, %14, %cst_30 {dimension_numbers = #tpu.dot_dimension_numbers<[1], [0], [0], [1], [0, 0, 1, 1], [], []>} : vector<128x20xf32>, vector<20x16xf32>, vector<128x16xf32> -> vector<128x16xf32>
    %16 = arith.addf %10, %15 : vector<128x16xf32>
    %c0_31 = arith.constant 0 : index
    %c0_32 = arith.constant 0 : index
    %c2 = arith.constant 2 : index
    %c0_33 = arith.constant 0 : index
    %17 = vector.load %arg12[%c0_31, %c0_32, %c2, %c0_33] : memref<2x10x10x20xf32, #tpu.memory_space<vmem>>, vector<2x8x8x20xf32>
    %18 = vector.shape_cast %17 : vector<2x8x8x20xf32> to vector<128x20xf32>
    %c2_34 = arith.constant 2 : index
    %c0_35 = arith.constant 0 : index
    %c0_36 = arith.constant 0 : index
    %19 = vector.load %arg1[%c2_34, %c0_35, %c0_36] : memref<9x20x16xf32, #tpu.memory_space<vmem>>, vector<1x20x16xf32>
    %20 = vector.shape_cast %19 : vector<1x20x16xf32> to vector<20x16xf32>
    %cst_37 = arith.constant dense<0.000000e+00> : vector<128x16xf32>
    %21 = tpu.matmul %18, %20, %cst_37 {dimension_numbers = #tpu.dot_dimension_numbers<[1], [0], [0], [1], [0, 0, 1, 1], [], []>} : vector<128x20xf32>, vector<20x16xf32>, vector<128x16xf32> -> vector<128x16xf32>
    %22 = arith.addf %16, %21 : vector<128x16xf32>
    %c0_38 = arith.constant 0 : index
    %c1_39 = arith.constant 1 : index
    %c0_40 = arith.constant 0 : index
    %c0_41 = arith.constant 0 : index
    %23 = vector.load %arg12[%c0_38, %c1_39, %c0_40, %c0_41] : memref<2x10x10x20xf32, #tpu.memory_space<vmem>>, vector<2x8x8x20xf32>
    %24 = vector.shape_cast %23 : vector<2x8x8x20xf32> to vector<128x20xf32>
    %c3 = arith.constant 3 : index
    %c0_42 = arith.constant 0 : index
    %c0_43 = arith.constant 0 : index
    %25 = vector.load %arg1[%c3, %c0_42, %c0_43] : memref<9x20x16xf32, #tpu.memory_space<vmem>>, vector<1x20x16xf32>
    %26 = vector.shape_cast %25 : vector<1x20x16xf32> to vector<20x16xf32>
    %cst_44 = arith.constant dense<0.000000e+00> : vector<128x16xf32>
    %27 = tpu.matmul %24, %26, %cst_44 {dimension_numbers = #tpu.dot_dimension_numbers<[1], [0], [0], [1], [0, 0, 1, 1], [], []>} : vector<128x20xf32>, vector<20x16xf32>, vector<128x16xf32> -> vector<128x16xf32>
    %28 = arith.addf %22, %27 : vector<128x16xf32>
    %c0_45 = arith.constant 0 : index
    %c1_46 = arith.constant 1 : index
    %c1_47 = arith.constant 1 : index
    %c0_48 = arith.constant 0 : index
    %29 = vector.load %arg12[%c0_45, %c1_46, %c1_47, %c0_48] : memref<2x10x10x20xf32, #tpu.memory_space<vmem>>, vector<2x8x8x20xf32>
    %30 = vector.shape_cast %29 : vector<2x8x8x20xf32> to vector<128x20xf32>
    %c4 = arith.constant 4 : index
    %c0_49 = arith.constant 0 : index
    %c0_50 = arith.constant 0 : index
    %31 = vector.load %arg1[%c4, %c0_49, %c0_50] : memref<9x20x16xf32, #tpu.memory_space<vmem>>, vector<1x20x16xf32>
    %32 = vector.shape_cast %31 : vector<1x20x16xf32> to vector<20x16xf32>
    %cst_51 = arith.constant dense<0.000000e+00> : vector<128x16xf32>
    %33 = tpu.matmul %30, %32, %cst_51 {dimension_numbers = #tpu.dot_dimension_numbers<[1], [0], [0], [1], [0, 0, 1, 1], [], []>} : vector<128x20xf32>, vector<20x16xf32>, vector<128x16xf32> -> vector<128x16xf32>
    %34 = arith.addf %28, %33 : vector<128x16xf32>
    %c0_52 = arith.constant 0 : index
    %c1_53 = arith.constant 1 : index
    %c2_54 = arith.constant 2 : index
    %c0_55 = arith.constant 0 : index
    %35 = vector.load %arg12[%c0_52, %c1_53, %c2_54, %c0_55] : memref<2x10x10x20xf32, #tpu.memory_space<vmem>>, vector<2x8x8x20xf32>
    %36 = vector.shape_cast %35 : vector<2x8x8x20xf32> to vector<128x20xf32>
    %c5 = arith.constant 5 : index
    %c0_56 = arith.constant 0 : index
    %c0_57 = arith.constant 0 : index
    %37 = vector.load %arg1[%c5, %c0_56, %c0_57] : memref<9x20x16xf32, #tpu.memory_space<vmem>>, vector<1x20x16xf32>
    %38 = vector.shape_cast %37 : vector<1x20x16xf32> to vector<20x16xf32>
    %cst_58 = arith.constant dense<0.000000e+00> : vector<128x16xf32>
    %39 = tpu.matmul %36, %38, %cst_58 {dimension_numbers = #tpu.dot_dimension_numbers<[1], [0], [0], [1], [0, 0, 1, 1], [], []>} : vector<128x20xf32>, vector<20x16xf32>, vector<128x16xf32> -> vector<128x16xf32>
    %40 = arith.addf %34, %39 : vector<128x16xf32>
    %c0_59 = arith.constant 0 : index
    %c2_60 = arith.constant 2 : index
    %c0_61 = arith.constant 0 : index
    %c0_62 = arith.constant 0 : index
    %41 = vector.load %arg12[%c0_59, %c2_60, %c0_61, %c0_62] : memref<2x10x10x20xf32, #tpu.memory_space<vmem>>, vector<2x8x8x20xf32>
    %42 = vector.shape_cast %41 : vector<2x8x8x20xf32> to vector<128x20xf32>
    %c6 = arith.constant 6 : index
    %c0_63 = arith.constant 0 : index
    %c0_64 = arith.constant 0 : index
    %43 = vector.load %arg1[%c6, %c0_63, %c0_64] : memref<9x20x16xf32, #tpu.memory_space<vmem>>, vector<1x20x16xf32>
    %44 = vector.shape_cast %43 : vector<1x20x16xf32> to vector<20x16xf32>
    %cst_65 = arith.constant dense<0.000000e+00> : vector<128x16xf32>
    %45 = tpu.matmul %42, %44, %cst_65 {dimension_numbers = #tpu.dot_dimension_numbers<[1], [0], [0], [1], [0, 0, 1, 1], [], []>} : vector<128x20xf32>, vector<20x16xf32>, vector<128x16xf32> -> vector<128x16xf32>
    %46 = arith.addf %40, %45 : vector<128x16xf32>
    %c0_66 = arith.constant 0 : index
    %c2_67 = arith.constant 2 : index
    %c1_68 = arith.constant 1 : index
    %c0_69 = arith.constant 0 : index
    %47 = vector.load %arg12[%c0_66, %c2_67, %c1_68, %c0_69] : memref<2x10x10x20xf32, #tpu.memory_space<vmem>>, vector<2x8x8x20xf32>
    %48 = vector.shape_cast %47 : vector<2x8x8x20xf32> to vector<128x20xf32>
    %c7 = arith.constant 7 : index
    %c0_70 = arith.constant 0 : index
    %c0_71 = arith.constant 0 : index
    %49 = vector.load %arg1[%c7, %c0_70, %c0_71] : memref<9x20x16xf32, #tpu.memory_space<vmem>>, vector<1x20x16xf32>
    %50 = vector.shape_cast %49 : vector<1x20x16xf32> to vector<20x16xf32>
    %cst_72 = arith.constant dense<0.000000e+00> : vector<128x16xf32>
    %51 = tpu.matmul %48, %50, %cst_72 {dimension_numbers = #tpu.dot_dimension_numbers<[1], [0], [0], [1], [0, 0, 1, 1], [], []>} : vector<128x20xf32>, vector<20x16xf32>, vector<128x16xf32> -> vector<128x16xf32>
    %52 = arith.addf %46, %51 : vector<128x16xf32>
    %c0_73 = arith.constant 0 : index
    %c2_74 = arith.constant 2 : index
    %c2_75 = arith.constant 2 : index
    %c0_76 = arith.constant 0 : index
    %53 = vector.load %arg12[%c0_73, %c2_74, %c2_75, %c0_76] : memref<2x10x10x20xf32, #tpu.memory_space<vmem>>, vector<2x8x8x20xf32>
    %54 = vector.shape_cast %53 : vector<2x8x8x20xf32> to vector<128x20xf32>
    %c8 = arith.constant 8 : index
    %c0_77 = arith.constant 0 : index
    %c0_78 = arith.constant 0 : index
    %55 = vector.load %arg1[%c8, %c0_77, %c0_78] : memref<9x20x16xf32, #tpu.memory_space<vmem>>, vector<1x20x16xf32>
    %56 = vector.shape_cast %55 : vector<1x20x16xf32> to vector<20x16xf32>
    %cst_79 = arith.constant dense<0.000000e+00> : vector<128x16xf32>
    %57 = tpu.matmul %54, %56, %cst_79 {dimension_numbers = #tpu.dot_dimension_numbers<[1], [0], [0], [1], [0, 0, 1, 1], [], []>} : vector<128x20xf32>, vector<20x16xf32>, vector<128x16xf32> -> vector<128x16xf32>
    %58 = arith.addf %52, %57 : vector<128x16xf32>
    %c0_80 = arith.constant 0 : index
    %c0_81 = arith.constant 0 : index
    %59 = vector.load %arg2[%c0_80, %c0_81] : memref<1x16xf32, #tpu.memory_space<vmem>>, vector<1x16xf32>
    %60 = vector.broadcast %59 : vector<1x16xf32> to vector<128x16xf32>
    %61 = arith.addf %58, %60 : vector<128x16xf32>
    %62 = vector.shape_cast %61 : vector<128x16xf32> to vector<2x8x8x16xf32>
    %c0_82 = arith.constant 0 : index
    %c1_83 = arith.constant 1 : index
    %c1_84 = arith.constant 1 : index
    %c0_85 = arith.constant 0 : index
    %63 = vector.load %arg13[%c0_82, %c1_83, %c1_84, %c0_85] : memref<2x10x10x16xf32, #tpu.memory_space<vmem>>, vector<2x8x8x16xf32>
    tpu.vector_store %arg13[%c0_82, %c1_83, %c1_84, %c0_85], %62 {strides = array<i32>} : memref<2x10x10x16xf32, #tpu.memory_space<vmem>>, vector<2x8x8x16xf32>,
    %c0_86 = arith.constant 0 : index
    %c0_87 = arith.constant 0 : index
    %c0_88 = arith.constant 0 : index
    %c0_89 = arith.constant 0 : index
    %64 = vector.load %arg13[%c0_86, %c0_87, %c0_88, %c0_89] : memref<2x10x10x16xf32, #tpu.memory_space<vmem>>, vector<2x8x8x16xf32>
    %65 = vector.shape_cast %64 : vector<2x8x8x16xf32> to vector<128x16xf32>
    %c0_90 = arith.constant 0 : index
    %c0_91 = arith.constant 0 : index
    %c0_92 = arith.constant 0 : index
    %66 = vector.load %arg3[%c0_90, %c0_91, %c0_92] : memref<9x16x16xf32, #tpu.memory_space<vmem>>, vector<1x16x16xf32>
    %67 = vector.shape_cast %66 : vector<1x16x16xf32> to vector<16x16xf32>
    %cst_93 = arith.constant dense<0.000000e+00> : vector<128x16xf32>
    %68 = tpu.matmul %65, %67, %cst_93 {dimension_numbers = #tpu.dot_dimension_numbers<[1], [0], [0], [1], [0, 0, 1, 1], [], []>} : vector<128x16xf32>, vector<16x16xf32>, vector<128x16xf32> -> vector<128x16xf32>
    %c0_94 = arith.constant 0 : index
    %c0_95 = arith.constant 0 : index
    %c1_96 = arith.constant 1 : index
    %c0_97 = arith.constant 0 : index
    %69 = vector.load %arg13[%c0_94, %c0_95, %c1_96, %c0_97] : memref<2x10x10x16xf32, #tpu.memory_space<vmem>>, vector<2x8x8x16xf32>
    %70 = vector.shape_cast %69 : vector<2x8x8x16xf32> to vector<128x16xf32>
    %c1_98 = arith.constant 1 : index
    %c0_99 = arith.constant 0 : index
    %c0_100 = arith.constant 0 : index
    %71 = vector.load %arg3[%c1_98, %c0_99, %c0_100] : memref<9x16x16xf32, #tpu.memory_space<vmem>>, vector<1x16x16xf32>
    %72 = vector.shape_cast %71 : vector<1x16x16xf32> to vector<16x16xf32>
    %cst_101 = arith.constant dense<0.000000e+00> : vector<128x16xf32>
    %73 = tpu.matmul %70, %72, %cst_101 {dimension_numbers = #tpu.dot_dimension_numbers<[1], [0], [0], [1], [0, 0, 1, 1], [], []>} : vector<128x16xf32>, vector<16x16xf32>, vector<128x16xf32> -> vector<128x16xf32>
    %74 = arith.addf %68, %73 : vector<128x16xf32>
    %c0_102 = arith.constant 0 : index
    %c0_103 = arith.constant 0 : index
    %c2_104 = arith.constant 2 : index
    %c0_105 = arith.constant 0 : index
    %75 = vector.load %arg13[%c0_102, %c0_103, %c2_104, %c0_105] : memref<2x10x10x16xf32, #tpu.memory_space<vmem>>, vector<2x8x8x16xf32>
    %76 = vector.shape_cast %75 : vector<2x8x8x16xf32> to vector<128x16xf32>
    %c2_106 = arith.constant 2 : index
    %c0_107 = arith.constant 0 : index
    %c0_108 = arith.constant 0 : index
    %77 = vector.load %arg3[%c2_106, %c0_107, %c0_108] : memref<9x16x16xf32, #tpu.memory_space<vmem>>, vector<1x16x16xf32>
    %78 = vector.shape_cast %77 : vector<1x16x16xf32> to vector<16x16xf32>
    %cst_109 = arith.constant dense<0.000000e+00> : vector<128x16xf32>
    %79 = tpu.matmul %76, %78, %cst_109 {dimension_numbers = #tpu.dot_dimension_numbers<[1], [0], [0], [1], [0, 0, 1, 1], [], []>} : vector<128x16xf32>, vector<16x16xf32>, vector<128x16xf32> -> vector<128x16xf32>
    %80 = arith.addf %74, %79 : vector<128x16xf32>
    %c0_110 = arith.constant 0 : index
    %c1_111 = arith.constant 1 : index
    %c0_112 = arith.constant 0 : index
    %c0_113 = arith.constant 0 : index
    %81 = vector.load %arg13[%c0_110, %c1_111, %c0_112, %c0_113] : memref<2x10x10x16xf32, #tpu.memory_space<vmem>>, vector<2x8x8x16xf32>
    %82 = vector.shape_cast %81 : vector<2x8x8x16xf32> to vector<128x16xf32>
    %c3_114 = arith.constant 3 : index
    %c0_115 = arith.constant 0 : index
    %c0_116 = arith.constant 0 : index
    %83 = vector.load %arg3[%c3_114, %c0_115, %c0_116] : memref<9x16x16xf32, #tpu.memory_space<vmem>>, vector<1x16x16xf32>
    %84 = vector.shape_cast %83 : vector<1x16x16xf32> to vector<16x16xf32>
    %cst_117 = arith.constant dense<0.000000e+00> : vector<128x16xf32>
    %85 = tpu.matmul %82, %84, %cst_117 {dimension_numbers = #tpu.dot_dimension_numbers<[1], [0], [0], [1], [0, 0, 1, 1], [], []>} : vector<128x16xf32>, vector<16x16xf32>, vector<128x16xf32> -> vector<128x16xf32>
    %86 = arith.addf %80, %85 : vector<128x16xf32>
    %c0_118 = arith.constant 0 : index
    %c1_119 = arith.constant 1 : index
    %c1_120 = arith.constant 1 : index
    %c0_121 = arith.constant 0 : index
    %87 = vector.load %arg13[%c0_118, %c1_119, %c1_120, %c0_121] : memref<2x10x10x16xf32, #tpu.memory_space<vmem>>, vector<2x8x8x16xf32>
    %88 = vector.shape_cast %87 : vector<2x8x8x16xf32> to vector<128x16xf32>
    %c4_122 = arith.constant 4 : index
    %c0_123 = arith.constant 0 : index
    %c0_124 = arith.constant 0 : index
    %89 = vector.load %arg3[%c4_122, %c0_123, %c0_124] : memref<9x16x16xf32, #tpu.memory_space<vmem>>, vector<1x16x16xf32>
    %90 = vector.shape_cast %89 : vector<1x16x16xf32> to vector<16x16xf32>
    %cst_125 = arith.constant dense<0.000000e+00> : vector<128x16xf32>
    %91 = tpu.matmul %88, %90, %cst_125 {dimension_numbers = #tpu.dot_dimension_numbers<[1], [0], [0], [1], [0, 0, 1, 1], [], []>} : vector<128x16xf32>, vector<16x16xf32>, vector<128x16xf32> -> vector<128x16xf32>
    %92 = arith.addf %86, %91 : vector<128x16xf32>
    %c0_126 = arith.constant 0 : index
    %c1_127 = arith.constant 1 : index
    %c2_128 = arith.constant 2 : index
    %c0_129 = arith.constant 0 : index
    %93 = vector.load %arg13[%c0_126, %c1_127, %c2_128, %c0_129] : memref<2x10x10x16xf32, #tpu.memory_space<vmem>>, vector<2x8x8x16xf32>
    %94 = vector.shape_cast %93 : vector<2x8x8x16xf32> to vector<128x16xf32>
    %c5_130 = arith.constant 5 : index
    %c0_131 = arith.constant 0 : index
    %c0_132 = arith.constant 0 : index
    %95 = vector.load %arg3[%c5_130, %c0_131, %c0_132] : memref<9x16x16xf32, #tpu.memory_space<vmem>>, vector<1x16x16xf32>
    %96 = vector.shape_cast %95 : vector<1x16x16xf32> to vector<16x16xf32>
    %cst_133 = arith.constant dense<0.000000e+00> : vector<128x16xf32>
    %97 = tpu.matmul %94, %96, %cst_133 {dimension_numbers = #tpu.dot_dimension_numbers<[1], [0], [0], [1], [0, 0, 1, 1], [], []>} : vector<128x16xf32>, vector<16x16xf32>, vector<128x16xf32> -> vector<128x16xf32>
    %98 = arith.addf %92, %97 : vector<128x16xf32>
    %c0_134 = arith.constant 0 : index
    %c2_135 = arith.constant 2 : index
    %c0_136 = arith.constant 0 : index
    %c0_137 = arith.constant 0 : index
    %99 = vector.load %arg13[%c0_134, %c2_135, %c0_136, %c0_137] : memref<2x10x10x16xf32, #tpu.memory_space<vmem>>, vector<2x8x8x16xf32>
    %100 = vector.shape_cast %99 : vector<2x8x8x16xf32> to vector<128x16xf32>
    %c6_138 = arith.constant 6 : index
    %c0_139 = arith.constant 0 : index
    %c0_140 = arith.constant 0 : index
    %101 = vector.load %arg3[%c6_138, %c0_139, %c0_140] : memref<9x16x16xf32, #tpu.memory_space<vmem>>, vector<1x16x16xf32>
    %102 = vector.shape_cast %101 : vector<1x16x16xf32> to vector<16x16xf32>
    %cst_141 = arith.constant dense<0.000000e+00> : vector<128x16xf32>
    %103 = tpu.matmul %100, %102, %cst_141 {dimension_numbers = #tpu.dot_dimension_numbers<[1], [0], [0], [1], [0, 0, 1, 1], [], []>} : vector<128x16xf32>, vector<16x16xf32>, vector<128x16xf32> -> vector<128x16xf32>
    %104 = arith.addf %98, %103 : vector<128x16xf32>
    %c0_142 = arith.constant 0 : index
    %c2_143 = arith.constant 2 : index
    %c1_144 = arith.constant 1 : index
    %c0_145 = arith.constant 0 : index
    %105 = vector.load %arg13[%c0_142, %c2_143, %c1_144, %c0_145] : memref<2x10x10x16xf32, #tpu.memory_space<vmem>>, vector<2x8x8x16xf32>
    %106 = vector.shape_cast %105 : vector<2x8x8x16xf32> to vector<128x16xf32>
    %c7_146 = arith.constant 7 : index
    %c0_147 = arith.constant 0 : index
    %c0_148 = arith.constant 0 : index
    %107 = vector.load %arg3[%c7_146, %c0_147, %c0_148] : memref<9x16x16xf32, #tpu.memory_space<vmem>>, vector<1x16x16xf32>
    %108 = vector.shape_cast %107 : vector<1x16x16xf32> to vector<16x16xf32>
    %cst_149 = arith.constant dense<0.000000e+00> : vector<128x16xf32>
    %109 = tpu.matmul %106, %108, %cst_149 {dimension_numbers = #tpu.dot_dimension_numbers<[1], [0], [0], [1], [0, 0, 1, 1], [], []>} : vector<128x16xf32>, vector<16x16xf32>, vector<128x16xf32> -> vector<128x16xf32>
    %110 = arith.addf %104, %109 : vector<128x16xf32>
    %c0_150 = arith.constant 0 : index
    %c2_151 = arith.constant 2 : index
    %c2_152 = arith.constant 2 : index
    %c0_153 = arith.constant 0 : index
    %111 = vector.load %arg13[%c0_150, %c2_151, %c2_152, %c0_153] : memref<2x10x10x16xf32, #tpu.memory_space<vmem>>, vector<2x8x8x16xf32>
    %112 = vector.shape_cast %111 : vector<2x8x8x16xf32> to vector<128x16xf32>
    %c8_154 = arith.constant 8 : index
    %c0_155 = arith.constant 0 : index
    %c0_156 = arith.constant 0 : index
    %113 = vector.load %arg3[%c8_154, %c0_155, %c0_156] : memref<9x16x16xf32, #tpu.memory_space<vmem>>, vector<1x16x16xf32>
    %114 = vector.shape_cast %113 : vector<1x16x16xf32> to vector<16x16xf32>
    %cst_157 = arith.constant dense<0.000000e+00> : vector<128x16xf32>
    %115 = tpu.matmul %112, %114, %cst_157 {dimension_numbers = #tpu.dot_dimension_numbers<[1], [0], [0], [1], [0, 0, 1, 1], [], []>} : vector<128x16xf32>, vector<16x16xf32>, vector<128x16xf32> -> vector<128x16xf32>
    %116 = arith.addf %110, %115 : vector<128x16xf32>
    %c0_158 = arith.constant 0 : index
    %c0_159 = arith.constant 0 : index
    %117 = vector.load %arg4[%c0_158, %c0_159] : memref<1x16xf32, #tpu.memory_space<vmem>>, vector<1x16xf32>
    %118 = vector.broadcast %117 : vector<1x16xf32> to vector<128x16xf32>
    %119 = arith.addf %116, %118 : vector<128x16xf32>
    %120 = vector.shape_cast %119 : vector<128x16xf32> to vector<2x8x8x16xf32>
    %c0_160 = arith.constant 0 : index
    %c1_161 = arith.constant 1 : index
    %c1_162 = arith.constant 1 : index
    %c0_163 = arith.constant 0 : index
    %121 = vector.load %arg13[%c0_160, %c1_161, %c1_162, %c0_163] : memref<2x10x10x16xf32, #tpu.memory_space<vmem>>, vector<2x8x8x16xf32>
    tpu.vector_store %arg13[%c0_160, %c1_161, %c1_162, %c0_163], %120 {strides = array<i32>} : memref<2x10x10x16xf32, #tpu.memory_space<vmem>>, vector<2x8x8x16xf32>,
    %c0_164 = arith.constant 0 : index
    %c0_165 = arith.constant 0 : index
    %c0_166 = arith.constant 0 : index
    %c0_167 = arith.constant 0 : index
    %122 = vector.load %arg13[%c0_164, %c0_165, %c0_166, %c0_167] : memref<2x10x10x16xf32, #tpu.memory_space<vmem>>, vector<2x8x8x16xf32>
    %123 = vector.shape_cast %122 : vector<2x8x8x16xf32> to vector<128x16xf32>
    %c0_168 = arith.constant 0 : index
    %c0_169 = arith.constant 0 : index
    %c0_170 = arith.constant 0 : index
    %124 = vector.load %arg5[%c0_168, %c0_169, %c0_170] : memref<9x16x16xf32, #tpu.memory_space<vmem>>, vector<1x16x16xf32>
    %125 = vector.shape_cast %124 : vector<1x16x16xf32> to vector<16x16xf32>
    %cst_171 = arith.constant dense<0.000000e+00> : vector<128x16xf32>
    %126 = tpu.matmul %123, %125, %cst_171 {dimension_numbers = #tpu.dot_dimension_numbers<[1], [0], [0], [1], [0, 0, 1, 1], [], []>} : vector<128x16xf32>, vector<16x16xf32>, vector<128x16xf32> -> vector<128x16xf32>
    %c0_172 = arith.constant 0 : index
    %c0_173 = arith.constant 0 : index
    %c1_174 = arith.constant 1 : index
    %c0_175 = arith.constant 0 : index
    %127 = vector.load %arg13[%c0_172, %c0_173, %c1_174, %c0_175] : memref<2x10x10x16xf32, #tpu.memory_space<vmem>>, vector<2x8x8x16xf32>
    %128 = vector.shape_cast %127 : vector<2x8x8x16xf32> to vector<128x16xf32>
    %c1_176 = arith.constant 1 : index
    %c0_177 = arith.constant 0 : index
    %c0_178 = arith.constant 0 : index
    %129 = vector.load %arg5[%c1_176, %c0_177, %c0_178] : memref<9x16x16xf32, #tpu.memory_space<vmem>>, vector<1x16x16xf32>
    %130 = vector.shape_cast %129 : vector<1x16x16xf32> to vector<16x16xf32>
    %cst_179 = arith.constant dense<0.000000e+00> : vector<128x16xf32>
    %131 = tpu.matmul %128, %130, %cst_179 {dimension_numbers = #tpu.dot_dimension_numbers<[1], [0], [0], [1], [0, 0, 1, 1], [], []>} : vector<128x16xf32>, vector<16x16xf32>, vector<128x16xf32> -> vector<128x16xf32>
    %132 = arith.addf %126, %131 : vector<128x16xf32>
    %c0_180 = arith.constant 0 : index
    %c0_181 = arith.constant 0 : index
    %c2_182 = arith.constant 2 : index
    %c0_183 = arith.constant 0 : index
    %133 = vector.load %arg13[%c0_180, %c0_181, %c2_182, %c0_183] : memref<2x10x10x16xf32, #tpu.memory_space<vmem>>, vector<2x8x8x16xf32>
    %134 = vector.shape_cast %133 : vector<2x8x8x16xf32> to vector<128x16xf32>
    %c2_184 = arith.constant 2 : index
    %c0_185 = arith.constant 0 : index
    %c0_186 = arith.constant 0 : index
    %135 = vector.load %arg5[%c2_184, %c0_185, %c0_186] : memref<9x16x16xf32, #tpu.memory_space<vmem>>, vector<1x16x16xf32>
    %136 = vector.shape_cast %135 : vector<1x16x16xf32> to vector<16x16xf32>
    %cst_187 = arith.constant dense<0.000000e+00> : vector<128x16xf32>
    %137 = tpu.matmul %134, %136, %cst_187 {dimension_numbers = #tpu.dot_dimension_numbers<[1], [0], [0], [1], [0, 0, 1, 1], [], []>} : vector<128x16xf32>, vector<16x16xf32>, vector<128x16xf32> -> vector<128x16xf32>
    %138 = arith.addf %132, %137 : vector<128x16xf32>
    %c0_188 = arith.constant 0 : index
    %c1_189 = arith.constant 1 : index
    %c0_190 = arith.constant 0 : index
    %c0_191 = arith.constant 0 : index
    %139 = vector.load %arg13[%c0_188, %c1_189, %c0_190, %c0_191] : memref<2x10x10x16xf32, #tpu.memory_space<vmem>>, vector<2x8x8x16xf32>
    %140 = vector.shape_cast %139 : vector<2x8x8x16xf32> to vector<128x16xf32>
    %c3_192 = arith.constant 3 : index
    %c0_193 = arith.constant 0 : index
    %c0_194 = arith.constant 0 : index
    %141 = vector.load %arg5[%c3_192, %c0_193, %c0_194] : memref<9x16x16xf32, #tpu.memory_space<vmem>>, vector<1x16x16xf32>
    %142 = vector.shape_cast %141 : vector<1x16x16xf32> to vector<16x16xf32>
    %cst_195 = arith.constant dense<0.000000e+00> : vector<128x16xf32>
    %143 = tpu.matmul %140, %142, %cst_195 {dimension_numbers = #tpu.dot_dimension_numbers<[1], [0], [0], [1], [0, 0, 1, 1], [], []>} : vector<128x16xf32>, vector<16x16xf32>, vector<128x16xf32> -> vector<128x16xf32>
    %144 = arith.addf %138, %143 : vector<128x16xf32>
    %c0_196 = arith.constant 0 : index
    %c1_197 = arith.constant 1 : index
    %c1_198 = arith.constant 1 : index
    %c0_199 = arith.constant 0 : index
    %145 = vector.load %arg13[%c0_196, %c1_197, %c1_198, %c0_199] : memref<2x10x10x16xf32, #tpu.memory_space<vmem>>, vector<2x8x8x16xf32>
    %146 = vector.shape_cast %145 : vector<2x8x8x16xf32> to vector<128x16xf32>
    %c4_200 = arith.constant 4 : index
    %c0_201 = arith.constant 0 : index
    %c0_202 = arith.constant 0 : index
    %147 = vector.load %arg5[%c4_200, %c0_201, %c0_202] : memref<9x16x16xf32, #tpu.memory_space<vmem>>, vector<1x16x16xf32>
    %148 = vector.shape_cast %147 : vector<1x16x16xf32> to vector<16x16xf32>
    %cst_203 = arith.constant dense<0.000000e+00> : vector<128x16xf32>
    %149 = tpu.matmul %146, %148, %cst_203 {dimension_numbers = #tpu.dot_dimension_numbers<[1], [0], [0], [1], [0, 0, 1, 1], [], []>} : vector<128x16xf32>, vector<16x16xf32>, vector<128x16xf32> -> vector<128x16xf32>
    %150 = arith.addf %144, %149 : vector<128x16xf32>
    %c0_204 = arith.constant 0 : index
    %c1_205 = arith.constant 1 : index
    %c2_206 = arith.constant 2 : index
    %c0_207 = arith.constant 0 : index
    %151 = vector.load %arg13[%c0_204, %c1_205, %c2_206, %c0_207] : memref<2x10x10x16xf32, #tpu.memory_space<vmem>>, vector<2x8x8x16xf32>
    %152 = vector.shape_cast %151 : vector<2x8x8x16xf32> to vector<128x16xf32>
    %c5_208 = arith.constant 5 : index
    %c0_209 = arith.constant 0 : index
    %c0_210 = arith.constant 0 : index
    %153 = vector.load %arg5[%c5_208, %c0_209, %c0_210] : memref<9x16x16xf32, #tpu.memory_space<vmem>>, vector<1x16x16xf32>
    %154 = vector.shape_cast %153 : vector<1x16x16xf32> to vector<16x16xf32>
    %cst_211 = arith.constant dense<0.000000e+00> : vector<128x16xf32>
    %155 = tpu.matmul %152, %154, %cst_211 {dimension_numbers = #tpu.dot_dimension_numbers<[1], [0], [0], [1], [0, 0, 1, 1], [], []>} : vector<128x16xf32>, vector<16x16xf32>, vector<128x16xf32> -> vector<128x16xf32>
    %156 = arith.addf %150, %155 : vector<128x16xf32>
    %c0_212 = arith.constant 0 : index
    %c2_213 = arith.constant 2 : index
    %c0_214 = arith.constant 0 : index
    %c0_215 = arith.constant 0 : index
    %157 = vector.load %arg13[%c0_212, %c2_213, %c0_214, %c0_215] : memref<2x10x10x16xf32, #tpu.memory_space<vmem>>, vector<2x8x8x16xf32>
    %158 = vector.shape_cast %157 : vector<2x8x8x16xf32> to vector<128x16xf32>
    %c6_216 = arith.constant 6 : index
    %c0_217 = arith.constant 0 : index
    %c0_218 = arith.constant 0 : index
    %159 = vector.load %arg5[%c6_216, %c0_217, %c0_218] : memref<9x16x16xf32, #tpu.memory_space<vmem>>, vector<1x16x16xf32>
    %160 = vector.shape_cast %159 : vector<1x16x16xf32> to vector<16x16xf32>
    %cst_219 = arith.constant dense<0.000000e+00> : vector<128x16xf32>
    %161 = tpu.matmul %158, %160, %cst_219 {dimension_numbers = #tpu.dot_dimension_numbers<[1], [0], [0], [1], [0, 0, 1, 1], [], []>} : vector<128x16xf32>, vector<16x16xf32>, vector<128x16xf32> -> vector<128x16xf32>
    %162 = arith.addf %156, %161 : vector<128x16xf32>
    %c0_220 = arith.constant 0 : index
    %c2_221 = arith.constant 2 : index
    %c1_222 = arith.constant 1 : index
    %c0_223 = arith.constant 0 : index
    %163 = vector.load %arg13[%c0_220, %c2_221, %c1_222, %c0_223] : memref<2x10x10x16xf32, #tpu.memory_space<vmem>>, vector<2x8x8x16xf32>
    %164 = vector.shape_cast %163 : vector<2x8x8x16xf32> to vector<128x16xf32>
    %c7_224 = arith.constant 7 : index
    %c0_225 = arith.constant 0 : index
    %c0_226 = arith.constant 0 : index
    %165 = vector.load %arg5[%c7_224, %c0_225, %c0_226] : memref<9x16x16xf32, #tpu.memory_space<vmem>>, vector<1x16x16xf32>
    %166 = vector.shape_cast %165 : vector<1x16x16xf32> to vector<16x16xf32>
    %cst_227 = arith.constant dense<0.000000e+00> : vector<128x16xf32>
    %167 = tpu.matmul %164, %166, %cst_227 {dimension_numbers = #tpu.dot_dimension_numbers<[1], [0], [0], [1], [0, 0, 1, 1], [], []>} : vector<128x16xf32>, vector<16x16xf32>, vector<128x16xf32> -> vector<128x16xf32>
    %168 = arith.addf %162, %167 : vector<128x16xf32>
    %c0_228 = arith.constant 0 : index
    %c2_229 = arith.constant 2 : index
    %c2_230 = arith.constant 2 : index
    %c0_231 = arith.constant 0 : index
    %169 = vector.load %arg13[%c0_228, %c2_229, %c2_230, %c0_231] : memref<2x10x10x16xf32, #tpu.memory_space<vmem>>, vector<2x8x8x16xf32>
    %170 = vector.shape_cast %169 : vector<2x8x8x16xf32> to vector<128x16xf32>
    %c8_232 = arith.constant 8 : index
    %c0_233 = arith.constant 0 : index
    %c0_234 = arith.constant 0 : index
    %171 = vector.load %arg5[%c8_232, %c0_233, %c0_234] : memref<9x16x16xf32, #tpu.memory_space<vmem>>, vector<1x16x16xf32>
    %172 = vector.shape_cast %171 : vector<1x16x16xf32> to vector<16x16xf32>
    %cst_235 = arith.constant dense<0.000000e+00> : vector<128x16xf32>
    %173 = tpu.matmul %170, %172, %cst_235 {dimension_numbers = #tpu.dot_dimension_numbers<[1], [0], [0], [1], [0, 0, 1, 1], [], []>} : vector<128x16xf32>, vector<16x16xf32>, vector<128x16xf32> -> vector<128x16xf32>
    %174 = arith.addf %168, %173 : vector<128x16xf32>
    %c0_236 = arith.constant 0 : index
    %c0_237 = arith.constant 0 : index
    %175 = vector.load %arg6[%c0_236, %c0_237] : memref<1x16xf32, #tpu.memory_space<vmem>>, vector<1x16xf32>
    %176 = vector.broadcast %175 : vector<1x16xf32> to vector<128x16xf32>
    %177 = arith.addf %174, %176 : vector<128x16xf32>
    %178 = vector.shape_cast %177 : vector<128x16xf32> to vector<2x8x8x16xf32>
    %c0_238 = arith.constant 0 : index
    %c1_239 = arith.constant 1 : index
    %c1_240 = arith.constant 1 : index
    %c0_241 = arith.constant 0 : index
    %179 = vector.load %arg13[%c0_238, %c1_239, %c1_240, %c0_241] : memref<2x10x10x16xf32, #tpu.memory_space<vmem>>, vector<2x8x8x16xf32>
    tpu.vector_store %arg13[%c0_238, %c1_239, %c1_240, %c0_241], %178 {strides = array<i32>} : memref<2x10x10x16xf32, #tpu.memory_space<vmem>>, vector<2x8x8x16xf32>,
    %c0_242 = arith.constant 0 : index
    %c0_243 = arith.constant 0 : index
    %c0_244 = arith.constant 0 : index
    %c0_245 = arith.constant 0 : index
    %180 = vector.load %arg13[%c0_242, %c0_243, %c0_244, %c0_245] : memref<2x10x10x16xf32, #tpu.memory_space<vmem>>, vector<2x8x8x16xf32>
    %181 = vector.shape_cast %180 : vector<2x8x8x16xf32> to vector<128x16xf32>
    %c0_246 = arith.constant 0 : index
    %c0_247 = arith.constant 0 : index
    %c0_248 = arith.constant 0 : index
    %182 = vector.load %arg7[%c0_246, %c0_247, %c0_248] : memref<9x16x16xf32, #tpu.memory_space<vmem>>, vector<1x16x16xf32>
    %183 = vector.shape_cast %182 : vector<1x16x16xf32> to vector<16x16xf32>
    %cst_249 = arith.constant dense<0.000000e+00> : vector<128x16xf32>
    %184 = tpu.matmul %181, %183, %cst_249 {dimension_numbers = #tpu.dot_dimension_numbers<[1], [0], [0], [1], [0, 0, 1, 1], [], []>} : vector<128x16xf32>, vector<16x16xf32>, vector<128x16xf32> -> vector<128x16xf32>
    %c0_250 = arith.constant 0 : index
    %c0_251 = arith.constant 0 : index
    %c1_252 = arith.constant 1 : index
    %c0_253 = arith.constant 0 : index
    %185 = vector.load %arg13[%c0_250, %c0_251, %c1_252, %c0_253] : memref<2x10x10x16xf32, #tpu.memory_space<vmem>>, vector<2x8x8x16xf32>
    %186 = vector.shape_cast %185 : vector<2x8x8x16xf32> to vector<128x16xf32>
    %c1_254 = arith.constant 1 : index
    %c0_255 = arith.constant 0 : index
    %c0_256 = arith.constant 0 : index
    %187 = vector.load %arg7[%c1_254, %c0_255, %c0_256] : memref<9x16x16xf32, #tpu.memory_space<vmem>>, vector<1x16x16xf32>
    %188 = vector.shape_cast %187 : vector<1x16x16xf32> to vector<16x16xf32>
    %cst_257 = arith.constant dense<0.000000e+00> : vector<128x16xf32>
    %189 = tpu.matmul %186, %188, %cst_257 {dimension_numbers = #tpu.dot_dimension_numbers<[1], [0], [0], [1], [0, 0, 1, 1], [], []>} : vector<128x16xf32>, vector<16x16xf32>, vector<128x16xf32> -> vector<128x16xf32>
    %190 = arith.addf %184, %189 : vector<128x16xf32>
    %c0_258 = arith.constant 0 : index
    %c0_259 = arith.constant 0 : index
    %c2_260 = arith.constant 2 : index
    %c0_261 = arith.constant 0 : index
    %191 = vector.load %arg13[%c0_258, %c0_259, %c2_260, %c0_261] : memref<2x10x10x16xf32, #tpu.memory_space<vmem>>, vector<2x8x8x16xf32>
    %192 = vector.shape_cast %191 : vector<2x8x8x16xf32> to vector<128x16xf32>
    %c2_262 = arith.constant 2 : index
    %c0_263 = arith.constant 0 : index
    %c0_264 = arith.constant 0 : index
    %193 = vector.load %arg7[%c2_262, %c0_263, %c0_264] : memref<9x16x16xf32, #tpu.memory_space<vmem>>, vector<1x16x16xf32>
    %194 = vector.shape_cast %193 : vector<1x16x16xf32> to vector<16x16xf32>
    %cst_265 = arith.constant dense<0.000000e+00> : vector<128x16xf32>
    %195 = tpu.matmul %192, %194, %cst_265 {dimension_numbers = #tpu.dot_dimension_numbers<[1], [0], [0], [1], [0, 0, 1, 1], [], []>} : vector<128x16xf32>, vector<16x16xf32>, vector<128x16xf32> -> vector<128x16xf32>
    %196 = arith.addf %190, %195 : vector<128x16xf32>
    %c0_266 = arith.constant 0 : index
    %c1_267 = arith.constant 1 : index
    %c0_268 = arith.constant 0 : index
    %c0_269 = arith.constant 0 : index
    %197 = vector.load %arg13[%c0_266, %c1_267, %c0_268, %c0_269] : memref<2x10x10x16xf32, #tpu.memory_space<vmem>>, vector<2x8x8x16xf32>
    %198 = vector.shape_cast %197 : vector<2x8x8x16xf32> to vector<128x16xf32>
    %c3_270 = arith.constant 3 : index
    %c0_271 = arith.constant 0 : index
    %c0_272 = arith.constant 0 : index
    %199 = vector.load %arg7[%c3_270, %c0_271, %c0_272] : memref<9x16x16xf32, #tpu.memory_space<vmem>>, vector<1x16x16xf32>
    %200 = vector.shape_cast %199 : vector<1x16x16xf32> to vector<16x16xf32>
    %cst_273 = arith.constant dense<0.000000e+00> : vector<128x16xf32>
    %201 = tpu.matmul %198, %200, %cst_273 {dimension_numbers = #tpu.dot_dimension_numbers<[1], [0], [0], [1], [0, 0, 1, 1], [], []>} : vector<128x16xf32>, vector<16x16xf32>, vector<128x16xf32> -> vector<128x16xf32>
    %202 = arith.addf %196, %201 : vector<128x16xf32>
    %c0_274 = arith.constant 0 : index
    %c1_275 = arith.constant 1 : index
    %c1_276 = arith.constant 1 : index
    %c0_277 = arith.constant 0 : index
    %203 = vector.load %arg13[%c0_274, %c1_275, %c1_276, %c0_277] : memref<2x10x10x16xf32, #tpu.memory_space<vmem>>, vector<2x8x8x16xf32>
    %204 = vector.shape_cast %203 : vector<2x8x8x16xf32> to vector<128x16xf32>
    %c4_278 = arith.constant 4 : index
    %c0_279 = arith.constant 0 : index
    %c0_280 = arith.constant 0 : index
    %205 = vector.load %arg7[%c4_278, %c0_279, %c0_280] : memref<9x16x16xf32, #tpu.memory_space<vmem>>, vector<1x16x16xf32>
    %206 = vector.shape_cast %205 : vector<1x16x16xf32> to vector<16x16xf32>
    %cst_281 = arith.constant dense<0.000000e+00> : vector<128x16xf32>
    %207 = tpu.matmul %204, %206, %cst_281 {dimension_numbers = #tpu.dot_dimension_numbers<[1], [0], [0], [1], [0, 0, 1, 1], [], []>} : vector<128x16xf32>, vector<16x16xf32>, vector<128x16xf32> -> vector<128x16xf32>
    %208 = arith.addf %202, %207 : vector<128x16xf32>
    %c0_282 = arith.constant 0 : index
    %c1_283 = arith.constant 1 : index
    %c2_284 = arith.constant 2 : index
    %c0_285 = arith.constant 0 : index
    %209 = vector.load %arg13[%c0_282, %c1_283, %c2_284, %c0_285] : memref<2x10x10x16xf32, #tpu.memory_space<vmem>>, vector<2x8x8x16xf32>
    %210 = vector.shape_cast %209 : vector<2x8x8x16xf32> to vector<128x16xf32>
    %c5_286 = arith.constant 5 : index
    %c0_287 = arith.constant 0 : index
    %c0_288 = arith.constant 0 : index
    %211 = vector.load %arg7[%c5_286, %c0_287, %c0_288] : memref<9x16x16xf32, #tpu.memory_space<vmem>>, vector<1x16x16xf32>
    %212 = vector.shape_cast %211 : vector<1x16x16xf32> to vector<16x16xf32>
    %cst_289 = arith.constant dense<0.000000e+00> : vector<128x16xf32>
    %213 = tpu.matmul %210, %212, %cst_289 {dimension_numbers = #tpu.dot_dimension_numbers<[1], [0], [0], [1], [0, 0, 1, 1], [], []>} : vector<128x16xf32>, vector<16x16xf32>, vector<128x16xf32> -> vector<128x16xf32>
    %214 = arith.addf %208, %213 : vector<128x16xf32>
    %c0_290 = arith.constant 0 : index
    %c2_291 = arith.constant 2 : index
    %c0_292 = arith.constant 0 : index
    %c0_293 = arith.constant 0 : index
    %215 = vector.load %arg13[%c0_290, %c2_291, %c0_292, %c0_293] : memref<2x10x10x16xf32, #tpu.memory_space<vmem>>, vector<2x8x8x16xf32>
    %216 = vector.shape_cast %215 : vector<2x8x8x16xf32> to vector<128x16xf32>
    %c6_294 = arith.constant 6 : index
    %c0_295 = arith.constant 0 : index
    %c0_296 = arith.constant 0 : index
    %217 = vector.load %arg7[%c6_294, %c0_295, %c0_296] : memref<9x16x16xf32, #tpu.memory_space<vmem>>, vector<1x16x16xf32>
    %218 = vector.shape_cast %217 : vector<1x16x16xf32> to vector<16x16xf32>
    %cst_297 = arith.constant dense<0.000000e+00> : vector<128x16xf32>
    %219 = tpu.matmul %216, %218, %cst_297 {dimension_numbers = #tpu.dot_dimension_numbers<[1], [0], [0], [1], [0, 0, 1, 1], [], []>} : vector<128x16xf32>, vector<16x16xf32>, vector<128x16xf32> -> vector<128x16xf32>
    %220 = arith.addf %214, %219 : vector<128x16xf32>
    %c0_298 = arith.constant 0 : index
    %c2_299 = arith.constant 2 : index
    %c1_300 = arith.constant 1 : index
    %c0_301 = arith.constant 0 : index
    %221 = vector.load %arg13[%c0_298, %c2_299, %c1_300, %c0_301] : memref<2x10x10x16xf32, #tpu.memory_space<vmem>>, vector<2x8x8x16xf32>
    %222 = vector.shape_cast %221 : vector<2x8x8x16xf32> to vector<128x16xf32>
    %c7_302 = arith.constant 7 : index
    %c0_303 = arith.constant 0 : index
    %c0_304 = arith.constant 0 : index
    %223 = vector.load %arg7[%c7_302, %c0_303, %c0_304] : memref<9x16x16xf32, #tpu.memory_space<vmem>>, vector<1x16x16xf32>
    %224 = vector.shape_cast %223 : vector<1x16x16xf32> to vector<16x16xf32>
    %cst_305 = arith.constant dense<0.000000e+00> : vector<128x16xf32>
    %225 = tpu.matmul %222, %224, %cst_305 {dimension_numbers = #tpu.dot_dimension_numbers<[1], [0], [0], [1], [0, 0, 1, 1], [], []>} : vector<128x16xf32>, vector<16x16xf32>, vector<128x16xf32> -> vector<128x16xf32>
    %226 = arith.addf %220, %225 : vector<128x16xf32>
    %c0_306 = arith.constant 0 : index
    %c2_307 = arith.constant 2 : index
    %c2_308 = arith.constant 2 : index
    %c0_309 = arith.constant 0 : index
    %227 = vector.load %arg13[%c0_306, %c2_307, %c2_308, %c0_309] : memref<2x10x10x16xf32, #tpu.memory_space<vmem>>, vector<2x8x8x16xf32>
    %228 = vector.shape_cast %227 : vector<2x8x8x16xf32> to vector<128x16xf32>
    %c8_310 = arith.constant 8 : index
    %c0_311 = arith.constant 0 : index
    %c0_312 = arith.constant 0 : index
    %229 = vector.load %arg7[%c8_310, %c0_311, %c0_312] : memref<9x16x16xf32, #tpu.memory_space<vmem>>, vector<1x16x16xf32>
    %230 = vector.shape_cast %229 : vector<1x16x16xf32> to vector<16x16xf32>
    %cst_313 = arith.constant dense<0.000000e+00> : vector<128x16xf32>
    %231 = tpu.matmul %228, %230, %cst_313 {dimension_numbers = #tpu.dot_dimension_numbers<[1], [0], [0], [1], [0, 0, 1, 1], [], []>} : vector<128x16xf32>, vector<16x16xf32>, vector<128x16xf32> -> vector<128x16xf32>
    %232 = arith.addf %226, %231 : vector<128x16xf32>
    %c0_314 = arith.constant 0 : index
    %c0_315 = arith.constant 0 : index
    %233 = vector.load %arg8[%c0_314, %c0_315] : memref<1x16xf32, #tpu.memory_space<vmem>>, vector<1x16xf32>
    %234 = vector.broadcast %233 : vector<1x16xf32> to vector<128x16xf32>
    %235 = arith.addf %232, %234 : vector<128x16xf32>
    %236 = vector.shape_cast %235 : vector<128x16xf32> to vector<2x8x8x16xf32>
    %c0_316 = arith.constant 0 : index
    %c1_317 = arith.constant 1 : index
    %c1_318 = arith.constant 1 : index
    %c0_319 = arith.constant 0 : index
    %237 = vector.load %arg13[%c0_316, %c1_317, %c1_318, %c0_319] : memref<2x10x10x16xf32, #tpu.memory_space<vmem>>, vector<2x8x8x16xf32>
    tpu.vector_store %arg13[%c0_316, %c1_317, %c1_318, %c0_319], %236 {strides = array<i32>} : memref<2x10x10x16xf32, #tpu.memory_space<vmem>>, vector<2x8x8x16xf32>,
    %c0_320 = arith.constant 0 : index
    %c0_321 = arith.constant 0 : index
    %c0_322 = arith.constant 0 : index
    %c0_323 = arith.constant 0 : index
    %238 = vector.load %arg13[%c0_320, %c0_321, %c0_322, %c0_323] : memref<2x10x10x16xf32, #tpu.memory_space<vmem>>, vector<2x8x8x16xf32>
    %239 = vector.shape_cast %238 : vector<2x8x8x16xf32> to vector<128x16xf32>
    %c0_324 = arith.constant 0 : index
    %c0_325 = arith.constant 0 : index
    %c0_326 = arith.constant 0 : index
    %240 = vector.load %arg9[%c0_324, %c0_325, %c0_326] : memref<9x16x16xf32, #tpu.memory_space<vmem>>, vector<1x16x16xf32>
    %241 = vector.shape_cast %240 : vector<1x16x16xf32> to vector<16x16xf32>
    %cst_327 = arith.constant dense<0.000000e+00> : vector<128x16xf32>
    %242 = tpu.matmul %239, %241, %cst_327 {dimension_numbers = #tpu.dot_dimension_numbers<[1], [0], [0], [1], [0, 0, 1, 1], [], []>} : vector<128x16xf32>, vector<16x16xf32>, vector<128x16xf32> -> vector<128x16xf32>
    %c0_328 = arith.constant 0 : index
    %c0_329 = arith.constant 0 : index
    %c1_330 = arith.constant 1 : index
    %c0_331 = arith.constant 0 : index
    %243 = vector.load %arg13[%c0_328, %c0_329, %c1_330, %c0_331] : memref<2x10x10x16xf32, #tpu.memory_space<vmem>>, vector<2x8x8x16xf32>
    %244 = vector.shape_cast %243 : vector<2x8x8x16xf32> to vector<128x16xf32>
    %c1_332 = arith.constant 1 : index
    %c0_333 = arith.constant 0 : index
    %c0_334 = arith.constant 0 : index
    %245 = vector.load %arg9[%c1_332, %c0_333, %c0_334] : memref<9x16x16xf32, #tpu.memory_space<vmem>>, vector<1x16x16xf32>
    %246 = vector.shape_cast %245 : vector<1x16x16xf32> to vector<16x16xf32>
    %cst_335 = arith.constant dense<0.000000e+00> : vector<128x16xf32>
    %247 = tpu.matmul %244, %246, %cst_335 {dimension_numbers = #tpu.dot_dimension_numbers<[1], [0], [0], [1], [0, 0, 1, 1], [], []>} : vector<128x16xf32>, vector<16x16xf32>, vector<128x16xf32> -> vector<128x16xf32>
    %248 = arith.addf %242, %247 : vector<128x16xf32>
    %c0_336 = arith.constant 0 : index
    %c0_337 = arith.constant 0 : index
    %c2_338 = arith.constant 2 : index
    %c0_339 = arith.constant 0 : index
    %249 = vector.load %arg13[%c0_336, %c0_337, %c2_338, %c0_339] : memref<2x10x10x16xf32, #tpu.memory_space<vmem>>, vector<2x8x8x16xf32>
    %250 = vector.shape_cast %249 : vector<2x8x8x16xf32> to vector<128x16xf32>
    %c2_340 = arith.constant 2 : index
    %c0_341 = arith.constant 0 : index
    %c0_342 = arith.constant 0 : index
    %251 = vector.load %arg9[%c2_340, %c0_341, %c0_342] : memref<9x16x16xf32, #tpu.memory_space<vmem>>, vector<1x16x16xf32>
    %252 = vector.shape_cast %251 : vector<1x16x16xf32> to vector<16x16xf32>
    %cst_343 = arith.constant dense<0.000000e+00> : vector<128x16xf32>
    %253 = tpu.matmul %250, %252, %cst_343 {dimension_numbers = #tpu.dot_dimension_numbers<[1], [0], [0], [1], [0, 0, 1, 1], [], []>} : vector<128x16xf32>, vector<16x16xf32>, vector<128x16xf32> -> vector<128x16xf32>
    %254 = arith.addf %248, %253 : vector<128x16xf32>
    %c0_344 = arith.constant 0 : index
    %c1_345 = arith.constant 1 : index
    %c0_346 = arith.constant 0 : index
    %c0_347 = arith.constant 0 : index
    %255 = vector.load %arg13[%c0_344, %c1_345, %c0_346, %c0_347] : memref<2x10x10x16xf32, #tpu.memory_space<vmem>>, vector<2x8x8x16xf32>
    %256 = vector.shape_cast %255 : vector<2x8x8x16xf32> to vector<128x16xf32>
    %c3_348 = arith.constant 3 : index
    %c0_349 = arith.constant 0 : index
    %c0_350 = arith.constant 0 : index
    %257 = vector.load %arg9[%c3_348, %c0_349, %c0_350] : memref<9x16x16xf32, #tpu.memory_space<vmem>>, vector<1x16x16xf32>
    %258 = vector.shape_cast %257 : vector<1x16x16xf32> to vector<16x16xf32>
    %cst_351 = arith.constant dense<0.000000e+00> : vector<128x16xf32>
    %259 = tpu.matmul %256, %258, %cst_351 {dimension_numbers = #tpu.dot_dimension_numbers<[1], [0], [0], [1], [0, 0, 1, 1], [], []>} : vector<128x16xf32>, vector<16x16xf32>, vector<128x16xf32> -> vector<128x16xf32>
    %260 = arith.addf %254, %259 : vector<128x16xf32>
    %c0_352 = arith.constant 0 : index
    %c1_353 = arith.constant 1 : index
    %c1_354 = arith.constant 1 : index
    %c0_355 = arith.constant 0 : index
    %261 = vector.load %arg13[%c0_352, %c1_353, %c1_354, %c0_355] : memref<2x10x10x16xf32, #tpu.memory_space<vmem>>, vector<2x8x8x16xf32>
    %262 = vector.shape_cast %261 : vector<2x8x8x16xf32> to vector<128x16xf32>
    %c4_356 = arith.constant 4 : index
    %c0_357 = arith.constant 0 : index
    %c0_358 = arith.constant 0 : index
    %263 = vector.load %arg9[%c4_356, %c0_357, %c0_358] : memref<9x16x16xf32, #tpu.memory_space<vmem>>, vector<1x16x16xf32>
    %264 = vector.shape_cast %263 : vector<1x16x16xf32> to vector<16x16xf32>
    %cst_359 = arith.constant dense<0.000000e+00> : vector<128x16xf32>
    %265 = tpu.matmul %262, %264, %cst_359 {dimension_numbers = #tpu.dot_dimension_numbers<[1], [0], [0], [1], [0, 0, 1, 1], [], []>} : vector<128x16xf32>, vector<16x16xf32>, vector<128x16xf32> -> vector<128x16xf32>
    %266 = arith.addf %260, %265 : vector<128x16xf32>
    %c0_360 = arith.constant 0 : index
    %c1_361 = arith.constant 1 : index
    %c2_362 = arith.constant 2 : index
    %c0_363 = arith.constant 0 : index
    %267 = vector.load %arg13[%c0_360, %c1_361, %c2_362, %c0_363] : memref<2x10x10x16xf32, #tpu.memory_space<vmem>>, vector<2x8x8x16xf32>
    %268 = vector.shape_cast %267 : vector<2x8x8x16xf32> to vector<128x16xf32>
    %c5_364 = arith.constant 5 : index
    %c0_365 = arith.constant 0 : index
    %c0_366 = arith.constant 0 : index
    %269 = vector.load %arg9[%c5_364, %c0_365, %c0_366] : memref<9x16x16xf32, #tpu.memory_space<vmem>>, vector<1x16x16xf32>
    %270 = vector.shape_cast %269 : vector<1x16x16xf32> to vector<16x16xf32>
    %cst_367 = arith.constant dense<0.000000e+00> : vector<128x16xf32>
    %271 = tpu.matmul %268, %270, %cst_367 {dimension_numbers = #tpu.dot_dimension_numbers<[1], [0], [0], [1], [0, 0, 1, 1], [], []>} : vector<128x16xf32>, vector<16x16xf32>, vector<128x16xf32> -> vector<128x16xf32>
    %272 = arith.addf %266, %271 : vector<128x16xf32>
    %c0_368 = arith.constant 0 : index
    %c2_369 = arith.constant 2 : index
    %c0_370 = arith.constant 0 : index
    %c0_371 = arith.constant 0 : index
    %273 = vector.load %arg13[%c0_368, %c2_369, %c0_370, %c0_371] : memref<2x10x10x16xf32, #tpu.memory_space<vmem>>, vector<2x8x8x16xf32>
    %274 = vector.shape_cast %273 : vector<2x8x8x16xf32> to vector<128x16xf32>
    %c6_372 = arith.constant 6 : index
    %c0_373 = arith.constant 0 : index
    %c0_374 = arith.constant 0 : index
    %275 = vector.load %arg9[%c6_372, %c0_373, %c0_374] : memref<9x16x16xf32, #tpu.memory_space<vmem>>, vector<1x16x16xf32>
    %276 = vector.shape_cast %275 : vector<1x16x16xf32> to vector<16x16xf32>
    %cst_375 = arith.constant dense<0.000000e+00> : vector<128x16xf32>
    %277 = tpu.matmul %274, %276, %cst_375 {dimension_numbers = #tpu.dot_dimension_numbers<[1], [0], [0], [1], [0, 0, 1, 1], [], []>} : vector<128x16xf32>, vector<16x16xf32>, vector<128x16xf32> -> vector<128x16xf32>
    %278 = arith.addf %272, %277 : vector<128x16xf32>
    %c0_376 = arith.constant 0 : index
    %c2_377 = arith.constant 2 : index
    %c1_378 = arith.constant 1 : index
    %c0_379 = arith.constant 0 : index
    %279 = vector.load %arg13[%c0_376, %c2_377, %c1_378, %c0_379] : memref<2x10x10x16xf32, #tpu.memory_space<vmem>>, vector<2x8x8x16xf32>
    %280 = vector.shape_cast %279 : vector<2x8x8x16xf32> to vector<128x16xf32>
    %c7_380 = arith.constant 7 : index
    %c0_381 = arith.constant 0 : index
    %c0_382 = arith.constant 0 : index
    %281 = vector.load %arg9[%c7_380, %c0_381, %c0_382] : memref<9x16x16xf32, #tpu.memory_space<vmem>>, vector<1x16x16xf32>
    %282 = vector.shape_cast %281 : vector<1x16x16xf32> to vector<16x16xf32>
    %cst_383 = arith.constant dense<0.000000e+00> : vector<128x16xf32>
    %283 = tpu.matmul %280, %282, %cst_383 {dimension_numbers = #tpu.dot_dimension_numbers<[1], [0], [0], [1], [0, 0, 1, 1], [], []>} : vector<128x16xf32>, vector<16x16xf32>, vector<128x16xf32> -> vector<128x16xf32>
    %284 = arith.addf %278, %283 : vector<128x16xf32>
    %c0_384 = arith.constant 0 : index
    %c2_385 = arith.constant 2 : index
    %c2_386 = arith.constant 2 : index
    %c0_387 = arith.constant 0 : index
    %285 = vector.load %arg13[%c0_384, %c2_385, %c2_386, %c0_387] : memref<2x10x10x16xf32, #tpu.memory_space<vmem>>, vector<2x8x8x16xf32>
    %286 = vector.shape_cast %285 : vector<2x8x8x16xf32> to vector<128x16xf32>
    %c8_388 = arith.constant 8 : index
    %c0_389 = arith.constant 0 : index
    %c0_390 = arith.constant 0 : index
    %287 = vector.load %arg9[%c8_388, %c0_389, %c0_390] : memref<9x16x16xf32, #tpu.memory_space<vmem>>, vector<1x16x16xf32>
    %288 = vector.shape_cast %287 : vector<1x16x16xf32> to vector<16x16xf32>
    %cst_391 = arith.constant dense<0.000000e+00> : vector<128x16xf32>
    %289 = tpu.matmul %286, %288, %cst_391 {dimension_numbers = #tpu.dot_dimension_numbers<[1], [0], [0], [1], [0, 0, 1, 1], [], []>} : vector<128x16xf32>, vector<16x16xf32>, vector<128x16xf32> -> vector<128x16xf32>
    %290 = arith.addf %284, %289 : vector<128x16xf32>
    %c0_392 = arith.constant 0 : index
    %c0_393 = arith.constant 0 : index
    %291 = vector.load %arg10[%c0_392, %c0_393] : memref<1x16xf32, #tpu.memory_space<vmem>>, vector<1x16xf32>
    %292 = vector.broadcast %291 : vector<1x16xf32> to vector<128x16xf32>
    %293 = arith.addf %290, %292 : vector<128x16xf32>
    %294 = vector.shape_cast %293 : vector<128x16xf32> to vector<2x64x16xf32>
    %c0_394 = arith.constant 0 : index
    %c0_395 = arith.constant 0 : index
    %c0_396 = arith.constant 0 : index
    %295 = vector.load %arg11[%c0_394, %c0_395, %c0_396] : memref<2x64x16xf32, #tpu.memory_space<vmem>>, vector<2x64x16xf32>
    tpu.vector_store %arg11[%c0_394, %c0_395, %c0_396], %294 {strides = array<i32>} : memref<2x64x16xf32, #tpu.memory_space<vmem>>, vector<2x64x16xf32>,
    return
  }
}

module attributes {stable_mosaic.version = 11 : i64} {
  func.func @mlp_softmax_kernel(%arg0: memref<2x1024xf32, #tpu.memory_space<vmem>>, %arg1: memref<1024x128xf32, #tpu.memory_space<vmem>>, %arg2: memref<1x128xf32, #tpu.memory_space<vmem>>, %arg3: memref<128x128xf32, #tpu.memory_space<vmem>>, %arg4: memref<1x128xf32, #tpu.memory_space<vmem>>, %arg5: memref<128x128xf32, #tpu.memory_space<vmem>>, %arg6: memref<1x128xf32, #tpu.memory_space<vmem>>, %arg7: memref<128x128xf32, #tpu.memory_space<vmem>>, %arg8: memref<1x128xf32, #tpu.memory_space<vmem>>, %arg9: memref<128x128xf32, #tpu.memory_space<vmem>>, %arg10: memref<1x128xf32, #tpu.memory_space<vmem>>, %arg11: memref<128x7xf32, #tpu.memory_space<vmem>>, %arg12: memref<1x7xf32, #tpu.memory_space<vmem>>, %arg13: memref<2x7xf32, #tpu.memory_space<vmem>>) attributes {dimension_semantics = [], scalar_prefetch = 0 : i64, scratch_operands = 0 : i64, tpu.core_type = #tpu.core_type<tc>} {
    %c0 = arith.constant 0 : index
    %c0_0 = arith.constant 0 : index
    %0 = vector.load %arg0[%c0, %c0_0] : memref<2x1024xf32, #tpu.memory_space<vmem>>, vector<2x1024xf32>
    %c0_1 = arith.constant 0 : index
    %c0_2 = arith.constant 0 : index
    %1 = vector.load %arg1[%c0_1, %c0_2] : memref<1024x128xf32, #tpu.memory_space<vmem>>, vector<1024x128xf32>
    %cst = arith.constant dense<0.000000e+00> : vector<2x128xf32>
    %2 = tpu.matmul %0, %1, %cst {dimension_numbers = #tpu.dot_dimension_numbers<[1], [0], [0], [1], [0, 0, 1, 1], [], []>} : vector<2x1024xf32>, vector<1024x128xf32>, vector<2x128xf32> -> vector<2x128xf32>
    %c0_3 = arith.constant 0 : index
    %c0_4 = arith.constant 0 : index
    %3 = vector.load %arg2[%c0_3, %c0_4] : memref<1x128xf32, #tpu.memory_space<vmem>>, vector<1x128xf32>
    %4 = vector.broadcast %3 : vector<1x128xf32> to vector<2x128xf32>
    %5 = arith.addf %2, %4 : vector<2x128xf32>
    %c0_5 = arith.constant 0 : index
    %c0_6 = arith.constant 0 : index
    %6 = vector.load %arg3[%c0_5, %c0_6] : memref<128x128xf32, #tpu.memory_space<vmem>>, vector<128x128xf32>
    %cst_7 = arith.constant dense<0.000000e+00> : vector<2x128xf32>
    %7 = tpu.matmul %5, %6, %cst_7 {dimension_numbers = #tpu.dot_dimension_numbers<[1], [0], [0], [1], [0, 0, 1, 1], [], []>} : vector<2x128xf32>, vector<128x128xf32>, vector<2x128xf32> -> vector<2x128xf32>
    %c0_8 = arith.constant 0 : index
    %c0_9 = arith.constant 0 : index
    %8 = vector.load %arg4[%c0_8, %c0_9] : memref<1x128xf32, #tpu.memory_space<vmem>>, vector<1x128xf32>
    %9 = vector.broadcast %8 : vector<1x128xf32> to vector<2x128xf32>
    %10 = arith.addf %7, %9 : vector<2x128xf32>
    %c0_10 = arith.constant 0 : index
    %c0_11 = arith.constant 0 : index
    %11 = vector.load %arg5[%c0_10, %c0_11] : memref<128x128xf32, #tpu.memory_space<vmem>>, vector<128x128xf32>
    %cst_12 = arith.constant dense<0.000000e+00> : vector<2x128xf32>
    %12 = tpu.matmul %10, %11, %cst_12 {dimension_numbers = #tpu.dot_dimension_numbers<[1], [0], [0], [1], [0, 0, 1, 1], [], []>} : vector<2x128xf32>, vector<128x128xf32>, vector<2x128xf32> -> vector<2x128xf32>
    %c0_13 = arith.constant 0 : index
    %c0_14 = arith.constant 0 : index
    %13 = vector.load %arg6[%c0_13, %c0_14] : memref<1x128xf32, #tpu.memory_space<vmem>>, vector<1x128xf32>
    %14 = vector.broadcast %13 : vector<1x128xf32> to vector<2x128xf32>
    %15 = arith.addf %12, %14 : vector<2x128xf32>
    %c0_15 = arith.constant 0 : index
    %c0_16 = arith.constant 0 : index
    %16 = vector.load %arg7[%c0_15, %c0_16] : memref<128x128xf32, #tpu.memory_space<vmem>>, vector<128x128xf32>
    %cst_17 = arith.constant dense<0.000000e+00> : vector<2x128xf32>
    %17 = tpu.matmul %15, %16, %cst_17 {dimension_numbers = #tpu.dot_dimension_numbers<[1], [0], [0], [1], [0, 0, 1, 1], [], []>} : vector<2x128xf32>, vector<128x128xf32>, vector<2x128xf32> -> vector<2x128xf32>
    %c0_18 = arith.constant 0 : index
    %c0_19 = arith.constant 0 : index
    %18 = vector.load %arg8[%c0_18, %c0_19] : memref<1x128xf32, #tpu.memory_space<vmem>>, vector<1x128xf32>
    %19 = vector.broadcast %18 : vector<1x128xf32> to vector<2x128xf32>
    %20 = arith.addf %17, %19 : vector<2x128xf32>
    %c0_20 = arith.constant 0 : index
    %c0_21 = arith.constant 0 : index
    %21 = vector.load %arg9[%c0_20, %c0_21] : memref<128x128xf32, #tpu.memory_space<vmem>>, vector<128x128xf32>
    %cst_22 = arith.constant dense<0.000000e+00> : vector<2x128xf32>
    %22 = tpu.matmul %20, %21, %cst_22 {dimension_numbers = #tpu.dot_dimension_numbers<[1], [0], [0], [1], [0, 0, 1, 1], [], []>} : vector<2x128xf32>, vector<128x128xf32>, vector<2x128xf32> -> vector<2x128xf32>
    %c0_23 = arith.constant 0 : index
    %c0_24 = arith.constant 0 : index
    %23 = vector.load %arg10[%c0_23, %c0_24] : memref<1x128xf32, #tpu.memory_space<vmem>>, vector<1x128xf32>
    %24 = vector.broadcast %23 : vector<1x128xf32> to vector<2x128xf32>
    %25 = arith.addf %22, %24 : vector<2x128xf32>
    %c0_25 = arith.constant 0 : index
    %c0_26 = arith.constant 0 : index
    %26 = vector.load %arg11[%c0_25, %c0_26] : memref<128x7xf32, #tpu.memory_space<vmem>>, vector<128x7xf32>
    %cst_27 = arith.constant dense<0.000000e+00> : vector<2x7xf32>
    %27 = tpu.matmul %25, %26, %cst_27 {dimension_numbers = #tpu.dot_dimension_numbers<[1], [0], [0], [1], [0, 0, 1, 1], [], []>} : vector<2x128xf32>, vector<128x7xf32>, vector<2x7xf32> -> vector<2x7xf32>
    %c0_28 = arith.constant 0 : index
    %c0_29 = arith.constant 0 : index
    %28 = vector.load %arg12[%c0_28, %c0_29] : memref<1x7xf32, #tpu.memory_space<vmem>>, vector<1x7xf32>
    %29 = vector.broadcast %28 : vector<1x7xf32> to vector<2x7xf32>
    %30 = arith.addf %27, %29 : vector<2x7xf32>
    %cst_30 = arith.constant dense<0xFF800000> : vector<2xf32>
    %31 = vector.multi_reduction <maximumf>, %30, %cst_30 [1] : vector<2x7xf32> to vector<2xf32>
    %32 = vector.shape_cast %31 : vector<2xf32> to vector<2x1xf32>
    %33 = vector.broadcast %32 : vector<2x1xf32> to vector<2x7xf32>
    %34 = arith.subf %30, %33 : vector<2x7xf32>
    %35 = math.exp %34 : vector<2x7xf32>
    %cst_31 = arith.constant dense<0.000000e+00> : vector<2xf32>
    %36 = vector.multi_reduction <add>, %35, %cst_31 [1] : vector<2x7xf32> to vector<2xf32>
    %37 = vector.shape_cast %36 : vector<2xf32> to vector<2x1xf32>
    %38 = vector.broadcast %37 : vector<2x1xf32> to vector<2x7xf32>
    %39 = arith.divf %35, %38 : vector<2x7xf32>
    %c0_32 = arith.constant 0 : index
    %c0_33 = arith.constant 0 : index
    %40 = vector.load %arg13[%c0_32, %c0_33] : memref<2x7xf32, #tpu.memory_space<vmem>>, vector<2x7xf32>
    tpu.vector_store %arg13[%c0_32, %c0_33], %39 {strides = array<i32>} : memref<2x7xf32, #tpu.memory_space<vmem>>, vector<2x7xf32>,
    return
  }
}

</mosaic_0001>

<bundles_post_ra>
// kernel: test_leak_model_forward.3
= control target key start
LH: loop header
LB: loop body
LE: loop exit
PB: predicated region body
PF: predicated region fallthrough
CT: control target
= control target key end

     0   :  { %18 = vsyncpa [#allocation3], 0  ;;  %s2500_s0 = inlined_call_operand.vmem [shape: f32[2,1024], index: 0, kind: input, shape index: {}]   ;;  %s2501_s1 = inlined_call_operand.vmem [shape: f32[1024,128], index: 1, kind: input, shape index: {}]   ;;  %s2502_s2 = inlined_call_operand.vmem [shape: f32[1,128], index: 2, kind: input, shape index: {}]   ;;  %s2503_s3 = inlined_call_operand.vmem [shape: f32[128,128], index: 3, kind: input, shape index: {}]   ;;  %s2504_s4 = inlined_call_operand.vmem [shape: f32[1,128], index: 4, kind: input, shape index: {}]   ;;  %s2505_s5 = inlined_call_operand.vmem [shape: f32[128,128], index: 5, kind: input, shape index: {}]   ;;  %s2506_s6 = inlined_call_operand.vmem [shape: f32[1,128], index: 6, kind: input, shape index: {}]   ;;  %s2507_s7 = inlined_call_operand.hbm [shape: f32[128,128], index: 7, kind: input, shape index: {}]   ;;  %s2508_s8 = inlined_call_operand.vmem [shape: f32[1,128], index: 8, kind: input, shape index: {}]   ;;  %s2509_s9 = inlined_call_operand.hbm [shape: f32[128,128], index: 9, kind: input, shape index: {}]   ;;  %s2510_s10 = inlined_call_operand.vmem [shape: f32[1,128], index: 10, kind: input, shape index: {}]   ;;  %s2511_s11 = inlined_call_operand.vmem [shape: f32[128,7], index: 11, kind: input, shape index: {}]   ;;  %s2512_s12 = inlined_call_operand.vmem [shape: f32[1,7], index: 12, kind: input, shape index: {}]   ;;  %s2513_s13 = inlined_call_operand.hbm [shape: f32[2,7], index: 13, kind: output, shape index: {}]  }
   0x1   :  { %19 = vsyncpa [#allocation6], 0 }
   0x2   :  { %20 = vsyncpa [#allocation4], 0  ;;  %s1769_s25 = smov [#allocation2]   ;;  %s1697_s29 = scalar_lea.hbm %s2507_s7, 2048 }
   0x3   :  { %s40_s26 = sshll.u32 %s1769_s25, 4  ;;  %p1698_p0 = scmp.ne.s32.totalorder %s2507_s7, %s1697_s29  ;;  %s41_s26 = int_to_ptr.vmem [resolvable:$true] %s40_s26 }
   0x4   :  { %p1701_p1 = scmp.lt.u32.totalorder %s1697_s29, %s2507_s7 }
   0x6   :  { %p1703_p2 = pnand %p1701_p1, %p1698_p0 }
   0x8   :  { %1706 = shalt.err (!%p1703_p2)
}
   0x9   :  { %s1707_s17 = scalar_lea.vmem %s41_s26, 2048  ;;  %p1712_p4 = scmp.lt.s32.totalorder %s41_s26, %s41_s26 }
   0xa   :  { %p1708_p3 = scmp.ne.s32.totalorder %s41_s26, %s1707_s17  ;;  %p1713_p5 = scmp.lt.s32.totalorder %s1707_s17, %s1707_s17 }
   0xc   :  { %p1714_p6 = por %p1713_p5, %p1712_p4 }
   0xe   :  { %p1715_p7 = pnand %p1714_p6, %p1708_p3 }
  0x10   :  { %1718 = shalt.err (!%p1715_p7)
}
  0x11   :  { %s1770_s18 = smov 128   ;;  %s1771_s19 = smov 8  }
  0x12   :  { %46 = dma.hbm_to_vmem [thread:$0]  %s2507_s7, 2048, %s41_s26, [#allocation3], %s1770_s18, %s1770_s18, %s1771_s19  }
  0x13   :  { %s1772_s22 = smov [#allocation5]   ;;  %s1719_s27 = scalar_lea.hbm %s2509_s9, 2048 }
  0x14   :  { %s54_s23 = sshll.u32 %s1772_s22, 4  ;;  %p1720_p8 = scmp.ne.s32.totalorder %s2509_s9, %s1719_s27  ;;  %s55_s23 = int_to_ptr.vmem [resolvable:$true] %s54_s23 }
  0x15   :  { %p1723_p9 = scmp.lt.u32.totalorder %s1719_s27, %s2509_s9 }
  0x17   :  { %p1725_p10 = pnand %p1723_p9, %p1720_p8 }
  0x19   :  { %1728 = shalt.err (!%p1725_p10)
}
  0x1a   :  { %s1729_s15 = scalar_lea.vmem %s55_s23, 2048  ;;  %p1734_p12 = scmp.lt.s32.totalorder %s55_s23, %s55_s23 }
  0x1b   :  { %p1730_p11 = scmp.ne.s32.totalorder %s55_s23, %s1729_s15  ;;  %p1735_p13 = scmp.lt.s32.totalorder %s1729_s15, %s1729_s15 }
  0x1d   :  { %p1736_p0 = por %p1735_p13, %p1734_p12 }
  0x1f   :  { %p1737_p1 = pnand %p1736_p0, %p1730_p11 }
  0x21   :  { %1740 = shalt.err (!%p1737_p1)
}
  0x22   :  { %60 = dma.hbm_to_vmem [thread:$0]  %s2509_s9, 2048, %s55_s23, [#allocation6], %s1770_s18, %s1770_s18, %s1771_s19  }
  0x23   :  { %1763 = dma.done.wait [#allocation3], 2048  }
  0x24   :  { %1764 = vsyncadd [#allocation3], 4294965248 }
  0x25   :  { %1765 = dma.done.wait [#allocation6], 2048  }
  0x26   :  { %1766 = vsyncadd [#allocation6], 4294965248  ;;  %v91_v0 = vld [vmem:[%s2501_s1 + $0x80] sm:$0xff]  ;;  %v92_v1 = vld [vmem:[%s2501_s1 + $0x88] sm:$0xff]  ;;  %v1773_v47 = vmov 1983009808   ;;  %v216_v49 = vlaneseq }
  0x27   :  { %v75_v2 = vld [vmem:[%s2501_s1] sm:$0xff]  ;;  %v1434_v3 = vpack.c.bf16 %v92_v1, %v91_v0  ;;  %v76_v4 = vld [vmem:[%s2501_s1 + $0x8] sm:$0xff]  ;;  %v93_v11 = vld [vmem:[%s2501_s1 + $0x90] sm:$0xff]  ;;  %v214_v48 = vunpack.c.l.s4 %v1773_v47  ;;  %vm1775_vm0 = vmmov 0   ;;  %vm999_vm1 = vcmask 50176  }
  0x28   :  { %v123_v5 = vld [vmem:[%s2501_s1 + $0x180] sm:$0xff]  ;;  %v124_v6 = vld [vmem:[%s2501_s1 + $0x188] sm:$0xff]  ;;  %v1436_v7 = vpack.c.bf16 %v76_v4, %v75_v2  ;;  %v94_v13 = vld [vmem:[%s2501_s1 + $0x98] sm:$0xff]  ;;  %v217_v0 = vshrl.u32 %v216_v49, 7 }
  0x29   :  { %v1466_v8 = vpack.c.bf16 %v124_v6, %v123_v5  ;;  %v107_v9 = vld [vmem:[%s2501_s1 + $0x100] sm:$0xff]  ;;  %v108_v10 = vld [vmem:[%s2501_s1 + $0x108] sm:$0xff]  ;;  %1435 = vmatprep.subr.bf16.mxu0 %v1434_v3  ;;  %v77_v14 = vld [vmem:[%s2501_s1 + $0x10] sm:$0xff]  ;;  %v1438_v16 = vpack.c.bf16 %v94_v13, %v93_v11  ;;  %v215_v63 = vunpack.c.0.s8 %v214_v48 }
  0x2a   :  { %v1468_v12 = vpack.c.bf16 %v108_v10, %v107_v9  ;;  %v78_v15 = vld [vmem:[%s2501_s1 + $0x18] sm:$0xff]  ;;  %1437 = vmatpush3.bf16.msra.mxu0 %v1436_v7  ;;  %v125_v18 = vld [vmem:[%s2501_s1 + $0x190] sm:$0xff]  ;;  %v95_v23 = vld [vmem:[%s2501_s1 + $0xa0] sm:$0xff] }
  0x2b   :  { %1467 = vmatprep.subr.bf16.mxu1 %v1466_v8  ;;  %v1440_v17 = vpack.c.bf16 %v78_v15, %v77_v14  ;;  %v126_v19 = vld [vmem:[%s2501_s1 + $0x198] sm:$0xff]  ;;  %v109_v20 = vld [vmem:[%s2501_s1 + $0x110] sm:$0xff]  ;;  %v96_v24 = vld [vmem:[%s2501_s1 + $0xa8] sm:$0xff]  ;;  %1439 = vmatprep.subr.bf16.mxu0 %v1438_v16  ;;  %v2022_v13 = vsub.s32 %v215_v63, %v217_v0 }
  0x2c   :  { %1469 = vmatpush3.bf16.msra.mxu1 %v1468_v12  ;;  %v1470_v21 = vpack.c.bf16 %v126_v19, %v125_v18  ;;  %v110_v22 = vld [vmem:[%s2501_s1 + $0x118] sm:$0xff]  ;;  %v1442_v26 = vpack.c.bf16 %v96_v24, %v95_v23  ;;  %v79_v27 = vld [vmem:[%s2501_s1 + $0x20] sm:$0xff]  ;;  %v80_v28 = vld [vmem:[%s2501_s1 + $0x28] sm:$0xff] }
  0x2d   :  { %v1472_v25 = vpack.c.bf16 %v110_v22, %v109_v20  ;;  %v127_v29 = vld [vmem:[%s2501_s1 + $0x1a0] sm:$0xff]  ;;  %v128_v30 = vld [vmem:[%s2501_s1 + $0x1a8] sm:$0xff]  ;;  %v1444_v33 = vpack.c.bf16 %v80_v28, %v79_v27  ;;  %v97_v35 = vld [vmem:[%s2501_s1 + $0xb0] sm:$0xff] }
  0x2e   :  { %1471 = vmatprep.subr.bf16.mxu1 %v1470_v21  ;;  %v111_v31 = vld [vmem:[%s2501_s1 + $0x120] sm:$0xff]  ;;  %v112_v32 = vld [vmem:[%s2501_s1 + $0x128] sm:$0xff]  ;;  %1441 = vmatpush3.bf16.msra.mxu0 %v1440_v17  ;;  %v1474_v34 = vpack.c.bf16 %v128_v30, %v127_v29  ;;  %v98_v36 = vld [vmem:[%s2501_s1 + $0xb8] sm:$0xff] }
  0x2f   :  { %v81_v37 = vld [vmem:[%s2501_s1 + $0x30] sm:$0xff]  ;;  %1443 = vmatprep.subr.bf16.mxu0 %v1442_v26  ;;  %v1476_v38 = vpack.c.bf16 %v112_v32, %v111_v31  ;;  %v1446_v39 = vpack.c.bf16 %v98_v36, %v97_v35  ;;  %v82_v40 = vld [vmem:[%s2501_s1 + $0x38] sm:$0xff]  ;;  %v99_v46 = vld [vmem:[%s2501_s1 + $0xc0] sm:$0xff] }
  0x30   :  { %1473 = vmatpush3.bf16.msra.mxu1 %v1472_v25  ;;  %v129_v41 = vld [vmem:[%s2501_s1 + $0x1b0] sm:$0xff]  ;;  %v130_v42 = vld [vmem:[%s2501_s1 + $0x1b8] sm:$0xff]  ;;  %v100_v50 = vld [vmem:[%s2501_s1 + $0xc8] sm:$0xff]  ;;  %v1448_v51 = vpack.c.bf16 %v82_v40, %v81_v37 }
  0x31   :  { %1475 = vmatprep.subr.bf16.mxu1 %v1474_v34  ;;  %v1478_v43 = vpack.c.bf16 %v130_v42, %v129_v41  ;;  %v113_v44 = vld [vmem:[%s2501_s1 + $0x130] sm:$0xff]  ;;  %v114_v45 = vld [vmem:[%s2501_s1 + $0x138] sm:$0xff]  ;;  %v131_v52 = vld [vmem:[%s2501_s1 + $0x1c0] sm:$0xff]  ;;  %v1450_v55 = vpack.c.bf16 %v100_v50, %v99_v46 }
  0x32   :  { %1445 = vmatpush3.bf16.msra.mxu0 %v1444_v33  ;;  %v132_v53 = vld [vmem:[%s2501_s1 + $0x1c8] sm:$0xff]  ;;  %v1480_v54 = vpack.c.bf16 %v114_v45, %v113_v44  ;;  %v83_v56 = vld [vmem:[%s2501_s1 + $0x40] sm:$0xff]  ;;  %v101_v61 = vld [vmem:[%s2501_s1 + $0xd0] sm:$0xff] }
  0x33   :  { %1447 = vmatprep.subr.bf16.mxu0 %v1446_v39  ;;  %v84_v57 = vld [vmem:[%s2501_s1 + $0x48] sm:$0xff]  ;;  %v115_v58 = vld [vmem:[%s2501_s1 + $0x140] sm:$0xff]  ;;  %v1482_v59 = vpack.c.bf16 %v132_v53, %v131_v52  ;;  %v102_v62 = vld [vmem:[%s2501_s1 + $0xd8] sm:$0xff] }
  0x34   :  { %1477 = vmatpush3.bf16.msra.mxu1 %v1476_v38  ;;  %v116_v60 = vld [vmem:[%s2501_s1 + $0x148] sm:$0xff]  ;;  %v133_v1 = vld [vmem:[%s2501_s1 + $0x1d0] sm:$0xff]  ;;  %v134_v2 = vld [vmem:[%s2501_s1 + $0x1d8] sm:$0xff]  ;;  %v1452_v3 = vpack.c.bf16 %v84_v57, %v83_v56  ;;  %v1454_v5 = vpack.c.bf16 %v102_v62, %v101_v61 }
  0x35   :  { %1479 = vmatprep.subr.bf16.mxu1 %v1478_v43  ;;  %v1484_v4 = vpack.c.bf16 %v116_v60, %v115_v58  ;;  %v85_v6 = vld [vmem:[%s2501_s1 + $0x50] sm:$0xff]  ;;  %v86_v7 = vld [vmem:[%s2501_s1 + $0x58] sm:$0xff]  ;;  %v1486_v9 = vpack.c.bf16 %v134_v2, %v133_v1  ;;  %v103_v11 = vld [vmem:[%s2501_s1 + $0xe0] sm:$0xff] }
  0x36   :  { %1449 = vmatpush3.bf16.msra.mxu0 %v1448_v51  ;;  %v117_v8 = vld [vmem:[%s2501_s1 + $0x150] sm:$0xff]  ;;  %v118_v10 = vld [vmem:[%s2501_s1 + $0x158] sm:$0xff]  ;;  %v104_v12 = vld [vmem:[%s2501_s1 + $0xe8] sm:$0xff]  ;;  %v1456_v16 = vpack.c.bf16 %v86_v7, %v85_v6 }
  0x37   :  { %1451 = vmatprep.subr.bf16.mxu0 %v1450_v55  ;;  %v135_v14 = vld [vmem:[%s2501_s1 + $0x1e0] sm:$0xff]  ;;  %v136_v15 = vld [vmem:[%s2501_s1 + $0x1e8] sm:$0xff]  ;;  %v1488_v18 = vpack.c.bf16 %v118_v10, %v117_v8  ;;  %v1458_v19 = vpack.c.bf16 %v104_v12, %v103_v11  ;;  %v105_v25 = vld [vmem:[%s2501_s1 + $0xf0] sm:$0xff] }
  0x38   :  { %1481 = vmatpush3.bf16.msra.mxu1 %v1480_v54  ;;  %v87_v17 = vld [vmem:[%s2501_s1 + $0x60] sm:$0xff]  ;;  %v88_v20 = vld [vmem:[%s2501_s1 + $0x68] sm:$0xff]  ;;  %v1490_v23 = vpack.c.bf16 %v136_v15, %v135_v14  ;;  %v106_v26 = vld [vmem:[%s2501_s1 + $0xf8] sm:$0xff] }
  0x39   :  { %1483 = vmatprep.subr.bf16.mxu1 %v1482_v59  ;;  %v119_v21 = vld [vmem:[%s2501_s1 + $0x160] sm:$0xff]  ;;  %v120_v24 = vld [vmem:[%s2501_s1 + $0x168] sm:$0xff]  ;;  %v137_v29 = vld [vmem:[%s2501_s1 + $0x1f0] sm:$0xff]  ;;  %v1460_v31 = vpack.c.bf16 %v88_v20, %v87_v17  ;;  %v1462_v35 = vpack.c.bf16 %v106_v26, %v105_v25 }
  0x3a   :  { %1453 = vmatpush3.bf16.msra.mxu0 %v1452_v3  ;;  %v73_v22 = vld [vmem:[%s2500_s0] sm:$0xff]  ;;  %v138_v30 = vld [vmem:[%s2501_s1 + $0x1f8] sm:$0xff]  ;;  %v1492_v34 = vpack.c.bf16 %v120_v24, %v119_v21  ;;  %v89_v36 = vld [vmem:[%s2501_s1 + $0x70] sm:$0xff] }
  0x3b   :  { %1455 = vmatprep.subr.bf16.mxu0 %v1454_v5  ;;  %v219_v27 = vrot.slane %v73_v22, %v2022_v13  ;;  %v212_v28 = vcombine.high %v73_v22, %v73_v22  ;;  %v90_v37 = vld [vmem:[%s2501_s1 + $0x78] sm:$0xff]  ;;  %v121_v38 = vld [vmem:[%s2501_s1 + $0x170] sm:$0xff]  ;;  %v1494_v39 = vpack.c.bf16 %v138_v30, %v137_v29  ;;  %v155_v41 = vld [vmem:[%s2501_s1 + $0x280] sm:$0xff] }
  0x3c   :  { %1485 = vmatpush3.bf16.msra.mxu1 %v1484_v4  ;;  %v122_v40 = vld [vmem:[%s2501_s1 + $0x178] sm:$0xff]  ;;  %v156_v42 = vld [vmem:[%s2501_s1 + $0x288] sm:$0xff]  ;;  %v187_v44 = vld [vmem:[%s2501_s1 + $0x380] sm:$0xff]  ;;  %v1464_v46 = vpack.c.bf16 %v90_v37, %v89_v36 }
  0x3d   :  { %1487 = vmatprep.subr.bf16.mxu1 %v1486_v9  ;;  %v227_v32 = vcombine.high %v219_v27, %v219_v27  ;;  %v226_v33 = vrot.slane %v212_v28, %v2022_v13  ;;  %v188_v45 = vld [vmem:[%s2501_s1 + $0x388] sm:$0xff]  ;;  %v1496_v47 = vpack.c.bf16 %v122_v40, %v121_v38  ;;  %v1498_v48 = vpack.c.bf16 %v156_v42, %v155_v41  ;;  %v139_v49 = vld [vmem:[%s2501_s1 + $0x200] sm:$0xff]  ;;  %v157_v54 = vld [vmem:[%s2501_s1 + $0x290] sm:$0xff] }
  0x3e   :  { %1457 = vmatpush3.bf16.msra.mxu0 %v1456_v16  ;;  %v140_v50 = vld [vmem:[%s2501_s1 + $0x208] sm:$0xff]  ;;  %v171_v51 = vld [vmem:[%s2501_s1 + $0x300] sm:$0xff]  ;;  %v1530_v52 = vpack.c.bf16 %v188_v45, %v187_v44  ;;  %v158_v55 = vld [vmem:[%s2501_s1 + $0x298] sm:$0xff] }
  0x3f   :  { %1459 = vmatprep.subr.bf16.mxu0 %v1458_v19  ;;  %318 = vmatprep.mubr.f32.mxu0 %v227_v32  ;;  %v228_v43 = vcombine.high %v226_v33, %v226_v33  ;;  %v172_v53 = vld [vmem:[%s2501_s1 + $0x308] sm:$0xff]  ;;  %v189_v56 = vld [vmem:[%s2501_s1 + $0x390] sm:$0xff]  ;;  %v190_v57 = vld [vmem:[%s2501_s1 + $0x398] sm:$0xff]  ;;  %v1500_v58 = vpack.c.bf16 %v140_v50, %v139_v49  ;;  %v1502_v60 = vpack.c.bf16 %v158_v55, %v157_v54 }
  0x40   :  { %1489 = vmatpush3.bf16.msra.mxu1 %v1488_v18  ;;  %v1532_v59 = vpack.c.bf16 %v172_v53, %v171_v51  ;;  %v141_v61 = vld [vmem:[%s2501_s1 + $0x210] sm:$0xff]  ;;  %v142_v62 = vld [vmem:[%s2501_s1 + $0x218] sm:$0xff]  ;;  %v1534_v0 = vpack.c.bf16 %v190_v57, %v189_v56  ;;  %v159_v2 = vld [vmem:[%s2501_s1 + $0x2a0] sm:$0xff] }
  0x41   :  { %1491 = vmatprep.subr.bf16.mxu1 %v1490_v23  ;;  %388 = vmatprep.mubr.f32.mxu1 %v228_v43  ;;  %v173_v63 = vld [vmem:[%s2501_s1 + $0x310] sm:$0xff]  ;;  %v174_v1 = vld [vmem:[%s2501_s1 + $0x318] sm:$0xff]  ;;  %v160_v3 = vld [vmem:[%s2501_s1 + $0x2a8] sm:$0xff]  ;;  %v1504_v6 = vpack.c.bf16 %v142_v62, %v141_v61 }
  0x42   :  { %1461 = vmatpush3.bf16.msra.mxu0 %v1460_v31  ;;  %v191_v4 = vld [vmem:[%s2501_s1 + $0x3a0] sm:$0xff]  ;;  %v192_v5 = vld [vmem:[%s2501_s1 + $0x3a8] sm:$0xff]  ;;  %v1536_v7 = vpack.c.bf16 %v174_v1, %v173_v63  ;;  %v1506_v8 = vpack.c.bf16 %v160_v3, %v159_v2  ;;  %v161_v15 = vld [vmem:[%s2501_s1 + $0x2b0] sm:$0xff] }
  0x43   :  { %1463 = vmatprep.subr.bf16.mxu0 %v1462_v35  ;;  %v143_v9 = vld [vmem:[%s2501_s1 + $0x220] sm:$0xff]  ;;  %v144_v10 = vld [vmem:[%s2501_s1 + $0x228] sm:$0xff]  ;;  %v1538_v12 = vpack.c.bf16 %v192_v5, %v191_v4  ;;  %v162_v16 = vld [vmem:[%s2501_s1 + $0x2b8] sm:$0xff] }
  0x44   :  { %1493 = vmatpush3.bf16.msra.mxu1 %v1492_v34  ;;  %v175_v11 = vld [vmem:[%s2501_s1 + $0x320] sm:$0xff]  ;;  %v176_v14 = vld [vmem:[%s2501_s1 + $0x328] sm:$0xff]  ;;  %v193_v17 = vld [vmem:[%s2501_s1 + $0x3b0] sm:$0xff]  ;;  %v1508_v19 = vpack.c.bf16 %v144_v10, %v143_v9  ;;  %v1510_v21 = vpack.c.bf16 %v162_v16, %v161_v15 }
  0x45   :  { %1495 = vmatprep.subr.bf16.mxu1 %v1494_v39  ;;  %v194_v18 = vld [vmem:[%s2501_s1 + $0x3b8] sm:$0xff]  ;;  %v1540_v20 = vpack.c.bf16 %v176_v14, %v175_v11  ;;  %v145_v22 = vld [vmem:[%s2501_s1 + $0x230] sm:$0xff]  ;;  %v164_v28 = vld [vmem:[%s2501_s1 + $0x2c8] sm:$0xff] }
  0x46   :  { %1465 = vmatpush3.bf16.msra.mxu0 %v1464_v46  ;;  %v146_v23 = vld [vmem:[%s2501_s1 + $0x238] sm:$0xff]  ;;  %v177_v24 = vld [vmem:[%s2501_s1 + $0x330] sm:$0xff]  ;;  %v1542_v25 = vpack.c.bf16 %v194_v18, %v193_v17  ;;  %v195_v29 = vld [vmem:[%s2501_s1 + $0x3c0] sm:$0xff] }
  0x47   :  { %1499 = vmatprep.subr.bf16.mxu0 %v1498_v48  ;;  %v178_v26 = vld [vmem:[%s2501_s1 + $0x338] sm:$0xff]  ;;  %v196_v30 = vld [vmem:[%s2501_s1 + $0x3c8] sm:$0xff]  ;;  %v1512_v32 = vpack.c.bf16 %v146_v23, %v145_v22  ;;  %v147_v37 = vld [vmem:[%s2501_s1 + $0x240] sm:$0xff]  ;;  %v1774_v22 = vmov 0.0|0.0  }
  0x48   :  { %1497 = vmatpush3.bf16.msra.mxu1 %v1496_v47  ;;  %v74_v31 = vld [vmem:[%s2500_s0 + $0x8] sm:$0xff]  ;;  %v1544_v35 = vpack.c.bf16 %v178_v26, %v177_v24  ;;  %v179_v39 = vld [vmem:[%s2501_s1 + $0x340] sm:$0xff]  ;;  %v1546_v40 = vpack.c.bf16 %v196_v30, %v195_v29  ;;  %v165_v42 = vld [vmem:[%s2501_s1 + $0x2d0] sm:$0xff] }
  0x49   :  { %1531 = vmatprep.subr.bf16.mxu1 %v1530_v52  ;;  %319 = vmatmul.mubr.f32.vlgmr.msra.gmra.mrb[0].mxu0 %v219_v27  ;;  %v163_v27 = vld [vmem:[%s2501_s1 + $0x2c0] sm:$0xff]  ;;  %v229_v34 = vcombine.high %v74_v31, %v74_v31  ;;  %v148_v38 = vld [vmem:[%s2501_s1 + $0x248] sm:$0xff]  ;;  %v166_v43 = vld [vmem:[%s2501_s1 + $0x2d8] sm:$0xff] }
  0x4a   :  { %1501 = vmatpush3.bf16.msra.mxu0 %v1500_v58  ;;  %v1514_v36 = vpack.c.bf16 %v164_v28, %v163_v27  ;;  %v180_v41 = vld [vmem:[%s2501_s1 + $0x348] sm:$0xff]  ;;  %v197_v46 = vld [vmem:[%s2501_s1 + $0x3d0] sm:$0xff]  ;;  %v198_v47 = vld [vmem:[%s2501_s1 + $0x3d8] sm:$0xff]  ;;  %v1516_v48 = vpack.c.bf16 %v148_v38, %v147_v37  ;;  %v1518_v51 = vpack.c.bf16 %v166_v43, %v165_v42 }
  0x4b   :  { %389 = vmatmul.mubr.f32.vlgmr.msra.gmra.mrb[0].mxu1 %v226_v33  ;;  %1503 = vmatprep.subr.bf16.mxu0 %v1502_v60  ;;  %v2183_v33 = vrot.slane %v74_v31, %v2022_v13  ;;  %v243_v45 = vrot.slane %v229_v34, %v2022_v13  ;;  %v1548_v50 = vpack.c.bf16 %v180_v41, %v179_v39  ;;  %v149_v13 = vld [vmem:[%s2501_s1 + $0x250] sm:$0xff]  ;;  %v150_v52 = vld [vmem:[%s2501_s1 + $0x258] sm:$0xff]  ;;  %v167_v56 = vld [vmem:[%s2501_s1 + $0x2e0] sm:$0xff] }
  0x4c   :  { %1533 = vmatpush3.bf16.msra.mxu1 %v1532_v59  ;;  %v181_v53 = vld [vmem:[%s2501_s1 + $0x350] sm:$0xff]  ;;  %v1550_v54 = vpack.c.bf16 %v198_v47, %v197_v46  ;;  %v182_v55 = vld [vmem:[%s2501_s1 + $0x358] sm:$0xff]  ;;  %v168_v57 = vld [vmem:[%s2501_s1 + $0x2e8] sm:$0xff]  ;;  %v1520_v60 = vpack.c.bf16 %v150_v52, %v149_v13 }
  0x4d   :  { %1535 = vmatprep.subr.bf16.mxu1 %v1534_v0  ;;  %v244_v44 = vcombine.high %v2183_v33, %v2183_v33  ;;  %v245_v49 = vcombine.high %v243_v45, %v243_v45  ;;  %v199_v58 = vld [vmem:[%s2501_s1 + $0x3e0] sm:$0xff]  ;;  %v200_v59 = vld [vmem:[%s2501_s1 + $0x3e8] sm:$0xff]  ;;  %v1552_v61 = vpack.c.bf16 %v182_v55, %v181_v53  ;;  %v1522_v62 = vpack.c.bf16 %v168_v57, %v167_v56  ;;  %v169_v4 = vld [vmem:[%s2501_s1 + $0x2f0] sm:$0xff] }
  0x4e   :  { %1505 = vmatpush3.bf16.msra.mxu0 %v1504_v6  ;;  %v151_v63 = vld [vmem:[%s2501_s1 + $0x260] sm:$0xff]  ;;  %v152_v0 = vld [vmem:[%s2501_s1 + $0x268] sm:$0xff]  ;;  %v1554_v2 = vpack.c.bf16 %v200_v59, %v199_v58  ;;  %v170_v5 = vld [vmem:[%s2501_s1 + $0x2f8] sm:$0xff] }
  0x4f   :  { %1507 = vmatprep.subr.bf16.mxu0 %v1506_v8  ;;  %458 = vmatprep.mubr.f32.mxu0 %v244_v44  ;;  %v183_v1 = vld [vmem:[%s2501_s1 + $0x360] sm:$0xff]  ;;  %v184_v3 = vld [vmem:[%s2501_s1 + $0x368] sm:$0xff]  ;;  %v201_v6 = vld [vmem:[%s2501_s1 + $0x3f0] sm:$0xff]  ;;  %v1524_v8 = vpack.c.bf16 %v152_v0, %v151_v63  ;;  %v1526_v10 = vpack.c.bf16 %v170_v5, %v169_v4  ;;  %v1776_v44 = vmov 0.0  }
  0x50   :  { %1537 = vmatpush3.bf16.msra.mxu1 %v1536_v7  ;;  %528 = vmatprep.mubr.f32.mxu1 %v245_v49  ;;  %v202_v7 = vld [vmem:[%s2501_s1 + $0x3f8] sm:$0xff]  ;;  %v1556_v9 = vpack.c.bf16 %v184_v3, %v183_v1  ;;  %v153_v11 = vld [vmem:[%s2501_s1 + $0x270] sm:$0xff]  ;;  %v538_v26 = vld [vmem:[%s2503_s3 + $0x20] sm:$0xff] }
  0x51   :  { %1539 = vmatprep.subr.bf16.mxu1 %v1538_v12  ;;  %v154_v12 = vld [vmem:[%s2501_s1 + $0x278] sm:$0xff]  ;;  %v1558_v14 = vpack.c.bf16 %v202_v7, %v201_v6  ;;  %v185_v15 = vld [vmem:[%s2501_s1 + $0x370] sm:$0xff]  ;;  %v539_v27 = vld [vmem:[%s2503_s3 + $0x28] sm:$0xff] }
  0x52   :  { %1509 = vmatpush3.bf16.msra.mxu0 %v1508_v19  ;;  %v186_v16 = vld [vmem:[%s2501_s1 + $0x378] sm:$0xff]  ;;  %v1528_v17 = vpack.c.bf16 %v154_v12, %v153_v11  ;;  %v534_v19 = vld [vmem:[%s2503_s3] sm:$0xff]  ;;  %v1569_v28 = vpack.c.bf16 %v539_v27, %v538_v26  ;;  %v540_v29 = vld [vmem:[%s2503_s3 + $0x30] sm:$0xff] }
  0x53   :  { %1511 = vmatprep.subr.bf16.mxu0 %v1510_v21  ;;  %v1560_v18 = vpack.c.bf16 %v186_v16, %v185_v15  ;;  %v536_v21 = vld [vmem:[%s2503_s3 + $0x10] sm:$0xff]  ;;  %v537_v24 = vld [vmem:[%s2503_s3 + $0x18] sm:$0xff]  ;;  %v546_v38 = vld [vmem:[%s2503_s3 + $0x60] sm:$0xff] }
  0x54   :  { %1541 = vmatpush3.bf16.msra.mxu1 %v1540_v20  ;;  %v535_v20 = vld [vmem:[%s2503_s3 + $0x8] sm:$0xff]  ;;  %v541_v30 = vld [vmem:[%s2503_s3 + $0x38] sm:$0xff]  ;;  %v548_v41 = vld [vmem:[%s2503_s3 + $0x70] sm:$0xff] }
  0x55   :  { %1543 = vmatprep.subr.bf16.mxu1 %v1542_v25  ;;  %v1563_v23 = vpack.c.bf16 %v535_v20, %v534_v19  ;;  %v1566_v25 = vpack.c.bf16 %v537_v24, %v536_v21  ;;  %v1572_v31 = vpack.c.bf16 %v541_v30, %v540_v29  ;;  %v547_v39 = vld [vmem:[%s2503_s3 + $0x68] sm:$0xff]  ;;  %v549_v42 = vld [vmem:[%s2503_s3 + $0x78] sm:$0xff]  ;;  %v629_v47 = vld [vmem:[%s2505_s5 + $0x10] sm:$0xff] }
  0x56   :  { %1513 = vmatpush3.bf16.msra.mxu0 %v1512_v32  ;;  %v542_v32 = vld [vmem:[%s2503_s3 + $0x40] sm:$0xff]  ;;  %v1584_v43 = vpack.c.bf16 %v549_v42, %v548_v41  ;;  %v628_v46 = vld [vmem:[%s2505_s5 + $0x8] sm:$0xff]  ;;  %v630_v49 = vld [vmem:[%s2505_s5 + $0x18] sm:$0xff] }
  0x57   :  { %1515 = vmatprep.subr.bf16.mxu0 %v1514_v36  ;;  %v545_v36 = vld [vmem:[%s2503_s3 + $0x58] sm:$0xff]  ;;  %v632_v13 = vld [vmem:[%s2505_s5 + $0x28] sm:$0xff]  ;;  %v633_v53 = vld [vmem:[%s2505_s5 + $0x30] sm:$0xff] }
  0x58   :  { %1545 = vmatpush3.bf16.msra.mxu1 %v1544_v35  ;;  %v544_v35 = vld [vmem:[%s2503_s3 + $0x50] sm:$0xff]  ;;  %v635_v56 = vld [vmem:[%s2505_s5 + $0x40] sm:$0xff]  ;;  %v636_v57 = vld [vmem:[%s2505_s5 + $0x48] sm:$0xff] }
  0x59   :  { %1547 = vmatprep.subr.bf16.mxu1 %v1546_v40  ;;  %v1578_v37 = vpack.c.bf16 %v545_v36, %v544_v35  ;;  %v1581_v40 = vpack.c.bf16 %v547_v39, %v546_v38  ;;  %v1599_v58 = vpack.c.bf16 %v636_v57, %v635_v56  ;;  %v637_v59 = vld [vmem:[%s2505_s5 + $0x50] sm:$0xff]  ;;  %v640_v63 = vld [vmem:[%s2505_s5 + $0x68] sm:$0xff]  ;;  %v642_v20 = vld [vmem:[%s2505_s5 + $0x78] sm:$0xff] }
  0x5a   :  { %1517 = vmatpush3.bf16.msra.mxu0 %v1516_v48  ;;  %v641_v19 = vld [vmem:[%s2505_s5 + $0x70] sm:$0xff]  ;;  %v721_v24 = vld [vmem:[#allocation2 + $0x8] sm:$0xff]  ;;  %v723_v27 = vld [vmem:[#allocation2 + $0x18] sm:$0xff] }
  0x5b   :  { %1519 = vmatprep.subr.bf16.mxu0 %v1518_v51  ;;  %v631_v51 = vld [vmem:[%s2505_s5 + $0x20] sm:$0xff]  ;;  %v1608_v21 = vpack.c.bf16 %v642_v20, %v641_v19  ;;  %v725_v30 = vld [vmem:[#allocation2 + $0x28] sm:$0xff]  ;;  %v730_v38 = vld [vmem:[#allocation2 + $0x50] sm:$0xff] }
  0x5c   :  { %1549 = vmatpush3.bf16.msra.mxu1 %v1548_v50  ;;  %v1590_v50 = vpack.c.bf16 %v630_v49, %v629_v47  ;;  %v1593_v52 = vpack.c.bf16 %v632_v13, %v631_v51  ;;  %v724_v29 = vld [vmem:[#allocation2 + $0x20] sm:$0xff]  ;;  %v729_v36 = vld [vmem:[#allocation2 + $0x48] sm:$0xff]  ;;  %v731_v39 = vld [vmem:[#allocation2 + $0x58] sm:$0xff] }
  0x5d   :  { %1551 = vmatprep.subr.bf16.mxu1 %v1550_v54  ;;  %v634_v54 = vld [vmem:[%s2505_s5 + $0x38] sm:$0xff]  ;;  %v728_v35 = vld [vmem:[#allocation2 + $0x40] sm:$0xff]  ;;  %v733_v42 = vld [vmem:[#allocation2 + $0x68] sm:$0xff] }
  0x5e   :  { %1521 = vmatpush3.bf16.msra.mxu0 %v1520_v60  ;;  %v1596_v55 = vpack.c.bf16 %v634_v54, %v633_v53  ;;  %v638_v60 = vld [vmem:[%s2505_s5 + $0x58] sm:$0xff]  ;;  %v732_v41 = vld [vmem:[#allocation2 + $0x60] sm:$0xff]  ;;  %v734_v49 = vld [vmem:[#allocation2 + $0x70] sm:$0xff] }
  0x5f   :  { %1523 = vmatprep.subr.bf16.mxu0 %v1522_v62  ;;  %v639_v62 = vld [vmem:[%s2505_s5 + $0x60] sm:$0xff]  ;;  %v815_v53 = vld [vmem:[#allocation5 + $0x10] sm:$0xff] }
  0x60   :  { %1553 = vmatpush3.bf16.msra.mxu1 %v1552_v61  ;;  %v1602_v61 = vpack.c.bf16 %v638_v60, %v637_v59  ;;  %v1605_v0 = vpack.c.bf16 %v640_v63, %v639_v62  ;;  %v813_v13 = vld [vmem:[#allocation5] sm:$0xff]  ;;  %v819_v60 = vld [vmem:[#allocation5 + $0x30] sm:$0xff] }
  0x61   :  { %1555 = vmatprep.subr.bf16.mxu1 %v1554_v2  ;;  %v1028_v2 = vld [vmem:[%s2502_s2] ss:$0 sm:$0xff] }
  0x62   :  { %1525 = vmatpush3.bf16.msra.mxu0 %v1524_v8  ;;  %v817_v57 = vld [vmem:[#allocation5 + $0x20] sm:$0xff] }
  0x63   :  { %1527 = vmatprep.subr.bf16.mxu0 %v1526_v10  ;;  %v821_v63 = vld [vmem:[#allocation5 + $0x40] sm:$0xff] }
  0x64   :  { %1557 = vmatpush3.bf16.msra.mxu1 %v1556_v9 }
  0x65   :  { %1559 = vmatprep.subr.bf16.mxu1 %v1558_v14 }
  0x66   :  { %1529 = vmatpush3.bf16.msra.mxu0 %v1528_v17 }
  0x67   :  { %1562 = vmatprep.subr.bf16.mxu0 %v1774_v22 }
  0x68   :  { %1561 = vmatpush3.bf16.msra.mxu1 %v1560_v18 }
  0x69   :  { %459 = vmatmul.mubr.f32.vlgmr.msra.gmra.mrb[2].mxu0 %v2183_v33  ;;  %1586 = vmatprep.subr.bf16.mxu1 %v1774_v22  ;;  %v543_v33 = vld [vmem:[%s2503_s3 + $0x48] sm:$0xff] }
  0x6a   :  { %1564 = vmatpush3.bf16.msra.mxu0 %v1563_v23  ;;  %v1575_v34 = vpack.c.bf16 %v543_v33, %v542_v32  ;;  %1291 = vmatprep.mubr.msk.f32.mxu0 %vm1775_vm0, %v1776_v44  ;;  %v720_v23 = vld [vmem:[#allocation2] sm:$0xff]  ;;  %v726_v32 = vld [vmem:[#allocation2 + $0x30] sm:$0xff]  ;;  %v727_v33 = vld [vmem:[#allocation2 + $0x38] sm:$0xff] }
  0x6b   :  { %529 = vmatmul.mubr.f32.vlgmr.msra.gmra.mrb[2].mxu1 %v243_v45  ;;  %1565 = vmatprep.subr.bf16.mxu0 %v1774_v22  ;;  %v627_v45 = vld [vmem:[%s2505_s5] sm:$0xff]  ;;  %v1611_v26 = vpack.c.bf16 %v721_v24, %v720_v23  ;;  %v911_v23 = vld [vmem:[%s2511_s11 + $0x28] sm:$0xff] }
  0x6c   :  { %1326 = vmatprep.mubr.msk.f32.mxu1 %vm1775_vm0, %v1776_v44  ;;  %v1587_v48 = vpack.c.bf16 %v628_v46, %v627_v45  ;;  %v1029_v45 = vld [vmem:[%s2504_s4] ss:$0 sm:$0xff] }
  0x6e   :  { %1567 = vmatpush3.bf16.msra.mxu0 %v1566_v25  ;;  %1588 = vmatpush3.bf16.msra.mxu1 %v1587_v48  ;;  %v722_v25 = vld [vmem:[#allocation2 + $0x10] sm:$0xff] }
  0x6f   :  { %1568 = vmatprep.subr.bf16.mxu0 %v1774_v22  ;;  %1589 = vmatprep.subr.bf16.mxu1 %v1774_v22 }
  0x72   :  { %1570 = vmatpush3.bf16.msra.mxu0 %v1569_v28  ;;  %1591 = vmatpush3.bf16.msra.mxu1 %v1590_v50  ;;  %v1614_v28 = vpack.c.bf16 %v723_v27, %v722_v25  ;;  %v735_v50 = vld [vmem:[#allocation2 + $0x78] sm:$0xff]  ;;  %v912_v25 = vld [vmem:[%s2511_s11 + $0x30] sm:$0xff] }
  0x73   :  { %1571 = vmatprep.subr.bf16.mxu0 %v1774_v22  ;;  %1592 = vmatprep.subr.bf16.mxu1 %v1774_v22  ;;  %v1632_v51 = vpack.c.bf16 %v735_v50, %v734_v49 }
  0x76   :  { %1573 = vmatpush3.bf16.msra.mxu0 %v1572_v31  ;;  %1594 = vmatpush3.bf16.msra.mxu1 %v1593_v52  ;;  %v1617_v31 = vpack.c.bf16 %v725_v30, %v724_v29  ;;  %v814_v52 = vld [vmem:[#allocation5 + $0x8] sm:$0xff] }
  0x77   :  { %1574 = vmatprep.subr.bf16.mxu0 %v1774_v22  ;;  %1595 = vmatprep.subr.bf16.mxu1 %v1774_v22  ;;  %v1635_v54 = vpack.c.bf16 %v814_v52, %v813_v13  ;;  %v915_v29 = vld [vmem:[%s2511_s11 + $0x48] sm:$0xff] }
  0x7a   :  { %1576 = vmatpush3.bf16.msra.mxu0 %v1575_v34  ;;  %1597 = vmatpush3.bf16.msra.mxu1 %v1596_v55  ;;  %v1620_v34 = vpack.c.bf16 %v727_v33, %v726_v32  ;;  %v816_v55 = vld [vmem:[#allocation5 + $0x18] sm:$0xff] }
  0x7b   :  { %1577 = vmatprep.subr.bf16.mxu0 %v1774_v22  ;;  %1598 = vmatprep.subr.bf16.mxu1 %v1774_v22  ;;  %v1638_v56 = vpack.c.bf16 %v816_v55, %v815_v53  ;;  %v917_v32 = vld [vmem:[%s2511_s11 + $0x58] sm:$0xff] }
  0x7e   :  { %1579 = vmatpush3.bf16.msra.mxu0 %v1578_v37  ;;  %1600 = vmatpush3.bf16.msra.mxu1 %v1599_v58  ;;  %v1623_v37 = vpack.c.bf16 %v729_v36, %v728_v35  ;;  %v818_v58 = vld [vmem:[#allocation5 + $0x28] sm:$0xff] }
  0x7f   :  { %1580 = vmatprep.subr.bf16.mxu0 %v1774_v22  ;;  %1601 = vmatprep.subr.bf16.mxu1 %v1774_v22  ;;  %v1641_v59 = vpack.c.bf16 %v818_v58, %v817_v57  ;;  %v919_v35 = vld [vmem:[%s2511_s11 + $0x68] sm:$0xff] }
  0x82   :  { %1582 = vmatpush3.bf16.msra.mxu0 %v1581_v40  ;;  %1603 = vmatpush3.bf16.msra.mxu1 %v1602_v61  ;;  %v1626_v40 = vpack.c.bf16 %v731_v39, %v730_v38  ;;  %v820_v61 = vld [vmem:[#allocation5 + $0x38] sm:$0xff] }
  0x83   :  { %1583 = vmatprep.subr.bf16.mxu0 %v1774_v22  ;;  %1604 = vmatprep.subr.bf16.mxu1 %v1774_v22  ;;  %v1644_v62 = vpack.c.bf16 %v820_v61, %v819_v60 }
  0x86   :  { %1585 = vmatpush3.bf16.msra.mxu0 %v1584_v43  ;;  %1606 = vmatpush3.bf16.msra.mxu1 %v1605_v0  ;;  %v1629_v43 = vpack.c.bf16 %v733_v42, %v732_v41  ;;  %v822_v0 = vld [vmem:[#allocation5 + $0x48] sm:$0xff]  ;;  %v920_v41 = vld [vmem:[%s2511_s11 + $0x70] sm:$0xff]  ;;  %v921_v42 = vld [vmem:[%s2511_s11 + $0x78] sm:$0xff] }
  0x87   :  { %1610 = vmatprep.subr.bf16.mxu0 %v1774_v22  ;;  %1607 = vmatprep.subr.bf16.mxu1 %v1774_v22 }
  0x8a   :  { %1609 = vmatpush3.bf16.msra.mxu1 %v1608_v21  ;;  %v910_v21 = vld [vmem:[%s2511_s11 + $0x20] sm:$0xff] }
  0x8b   :  { %1634 = vmatprep.subr.bf16.mxu1 %v1774_v22  ;;  %v1665_v24 = vpack.c.bf16 %v911_v23, %v910_v21 }
 0x11c   :  { %v1066_v1 = vpop.f32.mrb[0].mxu0 }
 0x11d   :  { %v1067_v3 = vpop.f32.mrb[1].mxu0 }
 0x11e   :  { %v1101_v4 = vpop.f32.mrb[0].mxu1  ;;  %v1068_v5 = vadd.f32 %v1067_v3, %v1066_v1  ;;  %v1647_v1 = vpack.c.bf16 %v822_v0, %v821_v63  ;;  %v824_v3 = vld [vmem:[#allocation5 + $0x58] sm:$0xff] }
 0x11f   :  { %v1102_v6 = vpop.f32.mrb[1].mxu1 }
 0x120   :  { %v1103_v7 = vadd.f32 %v1102_v6, %v1101_v4  ;;  %v321_v8 = vadd.f32 %v1068_v5, %v1028_v2  ;;  %v823_v2 = vld [vmem:[#allocation5 + $0x50] sm:$0xff]  ;;  %v825_v5 = vld [vmem:[#allocation5 + $0x60] sm:$0xff]  ;;  %v826_v6 = vld [vmem:[#allocation5 + $0x68] sm:$0xff] }
 0x121   :  { %v1650_v4 = vpack.c.bf16 %v824_v3, %v823_v2 }
 0x122   :  { %v391_v9 = vadd.f32 %v1103_v7, %v321_v8  ;;  %v1653_v7 = vpack.c.bf16 %v826_v6, %v825_v5  ;;  %v1030_v8 = vld [vmem:[%s2506_s6] ss:$0 sm:$0xff] }
 0x13c   :  { %v1136_v10 = vpop.f32.mrb[2].mxu0 }
 0x13d   :  { %v1137_v11 = vpop.f32.mrb[3].mxu0 }
 0x13e   :  { %v1171_v12 = vpop.f32.mrb[2].mxu1  ;;  %v1138_v14 = vadd.f32 %v1137_v11, %v1136_v10 }
 0x13f   :  { %v1172_v15 = vpop.f32.mrb[3].mxu1 }
 0x140   :  { %v1173_v16 = vadd.f32 %v1172_v15, %v1171_v12  ;;  %v461_v17 = vadd.f32 %v1138_v14, %v391_v9  ;;  %v827_v12 = vld [vmem:[#allocation5 + $0x70] sm:$0xff]  ;;  %v828_v14 = vld [vmem:[#allocation5 + $0x78] sm:$0xff] }
 0x141   :  { %v1656_v15 = vpack.c.bf16 %v828_v14, %v827_v12 }
 0x142   :  { %v531_v18 = vadd.f32 %v1173_v16, %v461_v17  ;;  %v906_v16 = vld [vmem:[%s2511_s11] sm:$0xff]  ;;  %v907_v17 = vld [vmem:[%s2511_s11 + $0x8] sm:$0xff] }
 0x143   :  { %v1659_v19 = vpack.c.bf16 %v907_v17, %v906_v16 }
 0x144   :  { %1292 = vmatmul.mubr.f32.vlgmr.msra.gmra.mrb[4].mxu0 %v531_v18  ;;  %v908_v18 = vld [vmem:[%s2511_s11 + $0x10] sm:$0xff] }
 0x145   :  { %1361 = vmatprep.mubr.msk.f32.mxu0 %vm1775_vm0, %v1776_v44  ;;  %1612 = vmatpush3.bf16.msra.mxu0 %v1611_v26  ;;  %v913_v26 = vld [vmem:[%s2511_s11 + $0x38] sm:$0xff] }
 0x146   :  { %1613 = vmatprep.subr.bf16.mxu0 %v1774_v22  ;;  %v1668_v27 = vpack.c.bf16 %v913_v26, %v912_v25 }
 0x149   :  { %1615 = vmatpush3.bf16.msra.mxu0 %v1614_v28  ;;  %v914_v28 = vld [vmem:[%s2511_s11 + $0x40] sm:$0xff] }
 0x14a   :  { %1616 = vmatprep.subr.bf16.mxu0 %v1774_v22  ;;  %v1671_v30 = vpack.c.bf16 %v915_v29, %v914_v28 }
 0x14d   :  { %1618 = vmatpush3.bf16.msra.mxu0 %v1617_v31  ;;  %v916_v31 = vld [vmem:[%s2511_s11 + $0x50] sm:$0xff] }
 0x14e   :  { %1619 = vmatprep.subr.bf16.mxu0 %v1774_v22  ;;  %v1674_v33 = vpack.c.bf16 %v917_v32, %v916_v31 }
 0x151   :  { %1621 = vmatpush3.bf16.msra.mxu0 %v1620_v34  ;;  %v918_v34 = vld [vmem:[%s2511_s11 + $0x60] sm:$0xff] }
 0x152   :  { %1622 = vmatprep.subr.bf16.mxu0 %v1774_v22  ;;  %v1677_v36 = vpack.c.bf16 %v919_v35, %v918_v34 }
 0x155   :  { %1624 = vmatpush3.bf16.msra.mxu0 %v1623_v37  ;;  %v1031_v37 = vld [vmem:[%s2508_s8] ss:$0 sm:$0xff] }
 0x156   :  { %1625 = vmatprep.subr.bf16.mxu0 %v1774_v22 }
 0x159   :  { %1627 = vmatpush3.bf16.msra.mxu0 %v1626_v40 }
 0x15a   :  { %1628 = vmatprep.subr.bf16.mxu0 %v1774_v22 }
 0x15d   :  { %1630 = vmatpush3.bf16.msra.mxu0 %v1629_v43  ;;  %v1680_v43 = vpack.c.bf16 %v921_v42, %v920_v41 }
 0x15e   :  { %1631 = vmatprep.subr.bf16.mxu0 %v1774_v22 }
 0x161   :  { %1633 = vmatpush3.bf16.msra.mxu0 %v1632_v51 }
 0x162   :  { %1658 = vmatprep.subr.bf16.mxu0 %v1774_v22 }
 0x217   :  { %v623_v46 = vpop.f32.mrb[4].mxu0 }
 0x218   :  { %v624_v47 = vadd.f32 %v1029_v45, %v623_v46  ;;  %v1293_v48 = vpop.f32.mrb[5].mxu0 }
 0x219   :  { %v1033_v48 = vld [vmem:[%s2512_s12] ss:$0 sm:$0xff] }
 0x21a   :  { %1327 = vmatmul.mubr.f32.vlgmr.msra.gmra.mrb[4].mxu1 %v624_v47 }
 0x21b   :  { %1396 = vmatprep.mubr.msk.f32.mxu1 %vm1775_vm0, %v1776_v44  ;;  %1636 = vmatpush3.bf16.msra.mxu1 %v1635_v54 }
 0x21c   :  { %1637 = vmatprep.subr.bf16.mxu1 %v1774_v22 }
 0x21f   :  { %1639 = vmatpush3.bf16.msra.mxu1 %v1638_v56 }
 0x220   :  { %1640 = vmatprep.subr.bf16.mxu1 %v1774_v22 }
 0x223   :  { %1642 = vmatpush3.bf16.msra.mxu1 %v1641_v59 }
 0x224   :  { %1643 = vmatprep.subr.bf16.mxu1 %v1774_v22 }
 0x227   :  { %1645 = vmatpush3.bf16.msra.mxu1 %v1644_v62 }
 0x228   :  { %1646 = vmatprep.subr.bf16.mxu1 %v1774_v22 }
 0x22b   :  { %1648 = vmatpush3.bf16.msra.mxu1 %v1647_v1 }
 0x22c   :  { %1649 = vmatprep.subr.bf16.mxu1 %v1774_v22 }
 0x22f   :  { %1651 = vmatpush3.bf16.msra.mxu1 %v1650_v4 }
 0x230   :  { %1652 = vmatprep.subr.bf16.mxu1 %v1774_v22 }
 0x233   :  { %1654 = vmatpush3.bf16.msra.mxu1 %v1653_v7 }
 0x234   :  { %1655 = vmatprep.subr.bf16.mxu1 %v1774_v22 }
 0x237   :  { %1657 = vmatpush3.bf16.msra.mxu1 %v1656_v15 }
 0x2ed   :  { %v716_v9 = vpop.f32.mrb[4].mxu1 }
 0x2ee   :  { %v717_v10 = vadd.f32 %v1030_v8, %v716_v9  ;;  %v1328_v11 = vpop.f32.mrb[5].mxu1 }
 0x2f0   :  { %1362 = vmatmul.mubr.f32.vlgmr.msra.gmra.mrb[6].mxu0 %v717_v10 }
 0x2f1   :  { %1431 = vmatprep.mubr.msk.f32.mxu0 %vm1775_vm0, %v1776_v44  ;;  %v909_v44 = vld [vmem:[%s2511_s11 + $0x18] sm:$0xff]  ;;  %1660 = vmatpush3.bf16.msra.mxu0 %v1659_v19 }
 0x2f2   :  { %v1662_v20 = vpack.c.bf16 %v909_v44, %v908_v18  ;;  %1661 = vmatprep.subr.bf16.mxu0 %v1774_v22 }
 0x2f5   :  { %1663 = vmatpush3.bf16.msra.mxu0 %v1662_v20 }
 0x2f6   :  { %1664 = vmatprep.subr.bf16.mxu0 %v1774_v22 }
 0x2f9   :  { %1666 = vmatpush3.bf16.msra.mxu0 %v1665_v24 }
 0x2fa   :  { %1667 = vmatprep.subr.bf16.mxu0 %v1774_v22 }
 0x2fd   :  { %1669 = vmatpush3.bf16.msra.mxu0 %v1668_v27 }
 0x2fe   :  { %1670 = vmatprep.subr.bf16.mxu0 %v1774_v22 }
 0x301   :  { %1672 = vmatpush3.bf16.msra.mxu0 %v1671_v30 }
 0x302   :  { %1673 = vmatprep.subr.bf16.mxu0 %v1774_v22 }
 0x305   :  { %1675 = vmatpush3.bf16.msra.mxu0 %v1674_v33 }
 0x306   :  { %1676 = vmatprep.subr.bf16.mxu0 %v1774_v22 }
 0x309   :  { %1678 = vmatpush3.bf16.msra.mxu0 %v1677_v36 }
 0x30a   :  { %1679 = vmatprep.subr.bf16.mxu0 %v1774_v22  ;;  %v1032_v22 = vld [vmem:[%s2510_s10] ss:$0 sm:$0xff]  ;;  %s1777_s10 = smov [#allocation7]  }
 0x30b   :  { %s1018_s11 = sshll.u32 %s1777_s10, 4  ;;  %s1019_s11 = int_to_ptr.vmem [resolvable:$true] %s1018_s11 }
 0x30c   :  { %s1741_s12 = scalar_lea.vmem %s1019_s11, 32  ;;  %p1746_p3 = scmp.lt.s32.totalorder %s1019_s11, %s1019_s11 }
 0x30d   :  { %1681 = vmatpush3.bf16.msra.mxu0 %v1680_v43  ;;  %p1742_p2 = scmp.ne.s32.totalorder %s1019_s11, %s1741_s12  ;;  %p1747_p4 = scmp.lt.s32.totalorder %s1741_s12, %s1741_s12 }
 0x30f   :  { %p1748_p5 = por %p1747_p4, %p1746_p3 }
 0x311   :  { %p1749_p6 = pnand %p1748_p5, %p1742_p2 }
 0x3c3   :  { %v809_v38 = vpop.f32.mrb[6].mxu0 }
 0x3c4   :  { %v810_v39 = vadd.f32 %v1031_v37, %v809_v38  ;;  %v1363_v40 = vpop.f32.mrb[7].mxu0 }
 0x3c6   :  { %1397 = vmatmul.mubr.f32.vlgmr.msra.gmra.mrb[6].mxu1 %v810_v39 }
 0x499   :  { %v902_v45 = vpop.f32.mrb[6].mxu1 }
 0x49a   :  { %v903_v46 = vadd.f32 %v1032_v22, %v902_v45  ;;  %v1398_v47 = vpop.f32.mrb[7].mxu1 }
 0x49c   :  { %1432 = vmatmul.mubr.f32.vlgmr.msra.gmra.mrb[8].mxu0 %v903_v46 }
 0x56f   :  { %v995_v49 = vpop.f32.mrb[8].mxu0 }
 0x570   :  { %v996_v50 = vadd.f32 %v1033_v48, %v995_v49  ;;  %v1433_v51 = vpop.f32.mrb[9].mxu0 }
 0x572   :  { %v1000_v13 = vsel %vm999_vm1, %v996_v50, -inf }
 0x573   :  { %1001 = vmax.xlane.f32.xlu0 %v1000_v13 }
 0x600   :  { %v1002_v52 = vpop.xlane.xlu0 %1001 }
 0x601   :  { %v1003_v53 = vsub.f32 %v996_v50, %v1002_v52 }
 0x603   :  { %v1004_v54 = vmul.f32 1.442695, %v1003_v53 }
 0x605   :  { %1693 = vpow2.f32 %v1004_v54 }
 0x60f   :  { %v1694_v55 = vpop.eup %1693 }
 0x610   :  { %v1006_v56 = vsel %vm999_vm1, %v1694_v55, 0.0 }
 0x611   :  { %1007 = vadd.xlane.f32.xlu0 %v1006_v56 }
 0x69e   :  { %v1008_v57 = vpop.xlane.xlu0 %1007 }
 0x69f   :  { %1695 = vrcp.f32 %v1008_v57 }
 0x6a9   :  { %v1696_v58 = vpop.eup %1695 }
 0x6aa   :  { %v1010_v59 = vmul.f32 %v1696_v58, %v1694_v55 }
 0x6ac   :  { %1011 = vst.msk [vmem:[#allocation7] sm:$0x3] %vm999_vm1, %v1010_v59 }
 0x6ad   :  { %1752 = shalt.err (!%p1749_p6)
}
 0x6ae   :  { %s1753_s21 = scalar_lea.hbm %s2513_s13, 32 }
 0x6af   :  { %p1754_p7 = scmp.ne.s32.totalorder %s2513_s13, %s1753_s21  ;;  %p1757_p8 = scmp.lt.u32.totalorder %s1753_s21, %s2513_s13 }
 0x6b1   :  { %p1759_p9 = pnand %p1757_p8, %p1754_p7 }
 0x6b3   :  { %1762 = shalt.err (!%p1759_p9)
}
 0x6b4   :  { %1021 = dma.vmem_to_hbm [thread:$0]  %s1019_s11, 32, %s2513_s13, [#allocation4]  }
 0x6b5   :  { %1767 = dma.done.wait [#allocation4], 32  }
 0x6b6   :  { %1768 = vsyncadd [#allocation4], 4294967264 }
 0x6b7   :  { %1025 = vsyncpa [#allocation3], 1 }
 0x6b8   :  { %1026 = vsyncpa [#allocation6], 1 }
 0x6b9   :  { %1027 = vsyncpa [#allocation4], 1 }

// kernel: test_leak_model_forward.2
= control target key start
LH: loop header
LB: loop body
LE: loop exit
PB: predicated region body
PF: predicated region fallthrough
CT: control target
= control target key end

     0   :  { %16 = vsyncpa [#allocation5], 0  ;;  %s17071_s0 = inlined_call_operand.vmem [shape: f32[2,8,8,20], index: 0, kind: input, shape index: {}]   ;;  %s17072_s1 = inlined_call_operand.vmem [shape: f32[9,20,16], index: 1, kind: input, shape index: {}]   ;;  %s17073_s2 = inlined_call_operand.vmem [shape: f32[1,16], index: 2, kind: input, shape index: {}]   ;;  %s17074_s3 = inlined_call_operand.vmem [shape: f32[9,16,16], index: 3, kind: input, shape index: {}]   ;;  %s17075_s4 = inlined_call_operand.vmem [shape: f32[1,16], index: 4, kind: input, shape index: {}]   ;;  %s17076_s5 = inlined_call_operand.vmem [shape: f32[9,16,16], index: 5, kind: input, shape index: {}]   ;;  %s17077_s6 = inlined_call_operand.vmem [shape: f32[1,16], index: 6, kind: input, shape index: {}]   ;;  %s17078_s7 = inlined_call_operand.hbm [shape: f32[9,16,16], index: 7, kind: input, shape index: {}]   ;;  %s17079_s8 = inlined_call_operand.hbm [shape: f32[1,16], index: 8, kind: input, shape index: {}]   ;;  %s17080_s9 = inlined_call_operand.hbm [shape: f32[9,16,16], index: 9, kind: input, shape index: {}]   ;;  %s17081_s10 = inlined_call_operand.hbm [shape: f32[1,16], index: 10, kind: input, shape index: {}]   ;;  %s17082_s11 = inlined_call_operand.vmem [shape: f32[2,64,16], index: 11, kind: output, shape index: {}]  }
   0x1   :  { %17 = vsyncpa [#allocation7], 0 }
   0x2   :  { %18 = vsyncpa [#allocation10], 0  ;;  %s14353_s17 = smov [#allocation6]   ;;  %s14354_s19 = smov [#allocation4]  }
   0x3   :  { %s51_s18 = sshll.u32 %s14353_s17, 4  ;;  %s38_s20 = sshll.u32 %s14354_s19, 4  ;;  %s52_s18 = int_to_ptr.vmem [resolvable:$true] %s51_s18  ;;  %s14420_s20 = int_to_ptr.vmem [resolvable:$true] %s38_s20 }
   0x4   :  { %s14259_s23 = scalar_lea.hbm %s17079_s8, 16 }
   0x5   :  { %p14260_p0 = scmp.ne.s32.totalorder %s17079_s8, %s14259_s23  ;;  %p14263_p1 = scmp.lt.u32.totalorder %s14259_s23, %s17079_s8 }
   0x7   :  { %p14265_p2 = pnand %p14263_p1, %p14260_p0 }
   0x9   :  { %14268 = shalt.err (!%p14265_p2)
}
   0xa   :  { %s14269_s28 = scalar_lea.vmem %s52_s18, 16  ;;  %s14273_s29 = scalar_lea.vmem %s52_s18, 32 }
   0xb   :  { %p14270_p3 = scmp.ne.s32.totalorder %s52_s18, %s14269_s28  ;;  %p14274_p4 = scmp.lt.s32.totalorder %s52_s18, %s52_s18 }
   0xc   :  { %p14275_p5 = scmp.lt.s32.totalorder %s14273_s29, %s14269_s28 }
   0xe   :  { %p14276_p6 = por %p14275_p5, %p14274_p4 }
  0x10   :  { %p14277_p7 = pnand %p14276_p6, %p14270_p3 }
  0x12   :  { %14280 = shalt.err (!%p14277_p7)
}
  0x13   :  { %54 = dma.hbm_to_vmem [thread:$0]  %s17079_s8, 16, %s52_s18, [#allocation7]  }
  0x14   :  { %s14281_s15 = scalar_lea.hbm %s17078_s7, 2304 }
  0x15   :  { %p14282_p8 = scmp.ne.s32.totalorder %s17078_s7, %s14281_s15  ;;  %p14285_p9 = scmp.lt.u32.totalorder %s14281_s15, %s17078_s7 }
  0x17   :  { %p14287_p10 = pnand %p14285_p9, %p14282_p8 }
  0x19   :  { %14290 = shalt.err (!%p14287_p10)
}
  0x1a   :  { %s14291_s22 = scalar_lea.vmem %s14420_s20, 2304  ;;  %p14296_p12 = scmp.lt.s32.totalorder %s14420_s20, %s14420_s20 }
  0x1b   :  { %p14292_p11 = scmp.ne.s32.totalorder %s14420_s20, %s14291_s22  ;;  %p14297_p13 = scmp.lt.s32.totalorder %s14291_s22, %s14291_s22 }
  0x1d   :  { %p14298_p0 = por %p14297_p13, %p14296_p12 }
  0x1f   :  { %p14299_p1 = pnand %p14298_p0, %p14292_p11 }
  0x21   :  { %14302 = shalt.err (!%p14299_p1)
}
  0x22   :  { %s14355_s8 = smov 128   ;;  %s14356_s18 = smov 8  }
  0x23   :  { %44 = dma.hbm_to_vmem [thread:$0]  %s17078_s7, 2304, %s14420_s20, [#allocation5], %s14355_s8, %s14355_s8, %s14356_s18  }
  0x24   :  { %s14357_s25 = smov [#allocation8]   ;;  %s14358_s27 = smov [#allocation9]  }
  0x25   :  { %s60_s26 = sshll.u32 %s14357_s25, 4  ;;  %s73_s28 = sshll.u32 %s14358_s27, 4  ;;  %s61_s26 = int_to_ptr.vmem [resolvable:$true] %s60_s26  ;;  %s74_s28 = int_to_ptr.vmem [resolvable:$true] %s73_s28 }
  0x26   :  { %s14303_s12 = scalar_lea.hbm %s17080_s9, 2304 }
  0x27   :  { %p14304_p2 = scmp.ne.s32.totalorder %s17080_s9, %s14303_s12  ;;  %p14307_p3 = scmp.lt.u32.totalorder %s14303_s12, %s17080_s9 }
  0x29   :  { %p14309_p4 = pnand %p14307_p3, %p14304_p2 }
  0x2b   :  { %14312 = shalt.err (!%p14309_p4)
}
  0x2c   :  { %s14313_s7 = scalar_lea.vmem %s61_s26, 2304  ;;  %p14318_p6 = scmp.lt.s32.totalorder %s61_s26, %s61_s26 }
  0x2d   :  { %p14314_p5 = scmp.ne.s32.totalorder %s61_s26, %s14313_s7  ;;  %p14319_p7 = scmp.lt.s32.totalorder %s14313_s7, %s14313_s7 }
  0x2f   :  { %p14320_p8 = por %p14319_p7, %p14318_p6 }
  0x31   :  { %p14321_p9 = pnand %p14320_p8, %p14314_p5 }
  0x33   :  { %14324 = shalt.err (!%p14321_p9)
}
  0x34   :  { %66 = dma.hbm_to_vmem [thread:$0]  %s17080_s9, 2304, %s61_s26, [#allocation7], %s14355_s8, %s14355_s8, %s14356_s18  }
  0x35   :  { %s14325_s22 = scalar_lea.hbm %s17081_s10, 16 }
  0x36   :  { %p14326_p10 = scmp.ne.s32.totalorder %s17081_s10, %s14325_s22  ;;  %p14329_p11 = scmp.lt.u32.totalorder %s14325_s22, %s17081_s10 }
  0x38   :  { %p14331_p12 = pnand %p14329_p11, %p14326_p10 }
  0x3a   :  { %14334 = shalt.err (!%p14331_p12)
}
  0x3b   :  { %s14335_s29 = scalar_lea.vmem %s74_s28, 16  ;;  %s14339_s30 = scalar_lea.vmem %s74_s28, 32 }
  0x3c   :  { %p14336_p13 = scmp.ne.s32.totalorder %s74_s28, %s14335_s29  ;;  %p14340_p0 = scmp.lt.s32.totalorder %s74_s28, %s74_s28 }
  0x3d   :  { %p14341_p1 = scmp.lt.s32.totalorder %s14339_s30, %s14335_s29 }
  0x3f   :  { %p14342_p2 = por %p14341_p1, %p14340_p0 }
  0x41   :  { %p14343_p3 = pnand %p14342_p2, %p14336_p13 }
  0x43   :  { %14346 = shalt.err (!%p14343_p3)
}
  0x44   :  { %76 = dma.hbm_to_vmem [thread:$0]  %s17081_s10, 16, %s74_s28, [#allocation10]  }
  0x45   :  { %14347 = dma.done.wait [#allocation5], 2304  }
  0x46   :  { %14348 = vsyncadd [#allocation5], 4294964992 }
  0x47   :  { %14349 = dma.done.wait [#allocation7], 2320  }
  0x48   :  { %14350 = vsyncadd [#allocation7], 4294964976 }
  0x49   :  { %14351 = dma.done.wait [#allocation10], 16  }
  0x4a   :  { %14352 = vsyncadd [#allocation10], 4294967280  ;;  %vm89_vm0 = vcmask 162816   ;;  %vm91_vm1 = vcmask 156672   ;;  %v14359_v0 = vmov 0.0   ;;  %v10543_v1 = vld [vmem:[%s17072_s1 + $0x18] sm:$0xff] }
  0x4b   :  { %90 = vst.msk [vmem:[#allocation2] sm:$0xff] %vm89_vm0, %v14359_v0  ;;  %93 = vst.msk [vmem:[#allocation2 + $0x10] sm:$0xff] %vm89_vm0, %v14359_v0  ;;  %v10544_v2 = vld [vmem:[%s17072_s1 + $0x20] sm:$0xff]  ;;  %v10545_v3 = vld [vmem:[%s17072_s1 + $0x28] sm:$0xf]  ;;  %vm293_vm2 = vcmask 1043456  }
  0x4c   :  { %92 = vst.msk [vmem:[#allocation2 + $0x8] sm:$0x3] %vm91_vm1, %v14359_v0  ;;  %94 = vst.msk [vmem:[#allocation2 + $0x18] sm:$0x3] %vm91_vm1, %v14359_v0  ;;  %v13430_v4 = vpack.c.bf16 %v10544_v2, %v10543_v1  ;;  %v173_v6 = vld [vmem:[%s17071_s0] sm:$0xff]  ;;  %v223_v8 = vld [vmem:[%s17072_s1 + $0x8] sm:$0xff] }
  0x4d   :  { %95 = vst.msk [vmem:[#allocation2 + $0x20] sm:$0xff] %vm89_vm0, %v14359_v0  ;;  %97 = vst.msk [vmem:[#allocation2 + $0x30] sm:$0xff] %vm89_vm0, %v14359_v0  ;;  %v222_v7 = vld [vmem:[%s17072_s1] sm:$0xff]  ;;  %v174_v9 = vld [vmem:[%s17071_s0 + $0x8] sm:$0xff]  ;;  %vm131_vm3 = vcmask 130048   ;;  %vm133_vm4 = vcmask 123904  }
  0x4e   :  { %96 = vst.msk [vmem:[#allocation2 + $0x28] sm:$0x3] %vm91_vm1, %v14359_v0  ;;  %98 = vst.msk [vmem:[#allocation2 + $0x38] sm:$0x3] %vm91_vm1, %v14359_v0  ;;  %v175_v10 = vld [vmem:[%s17071_s0 + $0x10] sm:$0xff]  ;;  %13431 = vmatprep.subr.bf16.mxu0 %v13430_v4  ;;  %v176_v11 = vld [vmem:[%s17071_s0 + $0x18] sm:$0xff]  ;;  %v13434_v16 = vpack.c.bf16 %v223_v8, %v222_v7 }
  0x4f   :  { %99 = vst.msk [vmem:[#allocation2 + $0x40] sm:$0xff] %vm89_vm0, %v14359_v0  ;;  %101 = vst.msk [vmem:[#allocation2 + $0x50] sm:$0xff] %vm89_vm0, %v14359_v0  ;;  %v177_v12 = vld [vmem:[%s17071_s0 + $0x20] sm:$0xff]  ;;  %v178_v13 = vld [vmem:[%s17071_s0 + $0x28] sm:$0xff]  ;;  %13433 = vmatpush3.bf16.msra.mxu0 %v13430_v4 }
  0x50   :  { %100 = vst.msk [vmem:[#allocation2 + $0x48] sm:$0x3] %vm91_vm1, %v14359_v0  ;;  %102 = vst.msk [vmem:[#allocation2 + $0x58] sm:$0x3] %vm91_vm1, %v14359_v0  ;;  %v179_v14 = vld [vmem:[%s17071_s0 + $0x30] sm:$0xff]  ;;  %v181_v15 = vld [vmem:[%s17071_s0 + $0x40] sm:$0xff]  ;;  %12156 = vmatprep.subr.msk.mxu0 %vm293_vm2, %v10545_v3 }
  0x51   :  { %103 = vst.msk [vmem:[#allocation2 + $0x60] sm:$0xff] %vm89_vm0, %v14359_v0  ;;  %105 = vst.msk [vmem:[#allocation2 + $0x70] sm:$0xff] %vm89_vm0, %v14359_v0  ;;  %v182_v17 = vld [vmem:[%s17071_s0 + $0x48] sm:$0xff]  ;;  %v183_v18 = vld [vmem:[%s17071_s0 + $0x50] sm:$0xff] }
  0x52   :  { %104 = vst.msk [vmem:[#allocation2 + $0x68] sm:$0x3] %vm91_vm1, %v14359_v0  ;;  %106 = vst.msk [vmem:[#allocation2 + $0x78] sm:$0x3] %vm91_vm1, %v14359_v0  ;;  %v184_v19 = vld [vmem:[%s17071_s0 + $0x58] sm:$0xff]  ;;  %v185_v20 = vld [vmem:[%s17071_s0 + $0x60] sm:$0xff] }
  0x53   :  { %107 = vst.msk [vmem:[#allocation2 + $0x80] sm:$0xff] %vm89_vm0, %v14359_v0  ;;  %109 = vst.msk [vmem:[#allocation2 + $0x90] sm:$0xff] %vm89_vm0, %v14359_v0  ;;  %v225_v5 = vld [vmem:[#allocation2 + $0x1] sm:$0xff]  ;;  %v187_v22 = vld [vmem:[%s17071_s0 + $0x70] sm:$0xff]  ;;  %12157 = vmatpush3.msk.msra.mxu0 %vm293_vm2, %v10545_v3 }
  0x54   :  { %108 = vst.msk [vmem:[#allocation2 + $0x88] sm:$0x3] %vm91_vm1, %v14359_v0  ;;  %110 = vst.msk [vmem:[#allocation2 + $0x98] sm:$0x3] %vm91_vm1, %v14359_v0  ;;  %12158 = vmatprep.mubr.msk.f32.mxu0 %vm89_vm0, %v225_v5  ;;  %v186_v21 = vld [vmem:[%s17071_s0 + $0x68] sm:$0xff]  ;;  %13435 = vmatprep.subr.bf16.mxu0 %v13434_v16  ;;  %v10580_v25 = vld [vmem:[%s17072_s1 + $0x30] sm:$0xff] }
  0x55   :  { %111 = vst.msk [vmem:[#allocation2 + $0xa0] sm:$0xff] %vm89_vm0, %v14359_v0  ;;  %113 = vst.msk [vmem:[#allocation2 + $0xb0] sm:$0xff] %vm89_vm0, %v14359_v0  ;;  %v224_v23 = vld [vmem:[%s17072_s1 + $0x10] sm:$0xf]  ;;  %v10581_v26 = vld [vmem:[%s17072_s1 + $0x38] sm:$0xff] }
  0x56   :  { %112 = vst.msk [vmem:[#allocation2 + $0xa8] sm:$0x3] %vm91_vm1, %v14359_v0  ;;  %114 = vst.msk [vmem:[#allocation2 + $0xb8] sm:$0x3] %vm91_vm1, %v14359_v0  ;;  %v13438_v30 = vpack.c.bf16 %v10581_v26, %v10580_v25  ;;  %v180_v37 = vld [vmem:[%s17071_s0 + $0x38] sm:$0xff]  ;;  %v206_v44 = vld [vmem:[#allocation2] sm:$0xff] }
  0x57   :  { %115 = vst.msk [vmem:[#allocation2 + $0xc0] sm:$0xff] %vm89_vm0, %v14359_v0  ;;  %117 = vst.msk [vmem:[#allocation2 + $0xd0] sm:$0xff] %vm89_vm0, %v14359_v0  ;;  %v188_v38 = vld [vmem:[%s17071_s0 + $0x78] sm:$0xff]  ;;  %v10582_v47 = vld [vmem:[%s17072_s1 + $0x40] sm:$0xf] }
  0x58   :  { %116 = vst.msk [vmem:[#allocation2 + $0xc8] sm:$0x3] %vm91_vm1, %v14359_v0  ;;  %118 = vst.msk [vmem:[#allocation2 + $0xd8] sm:$0x3] %vm91_vm1, %v14359_v0  ;;  %v10600_v48 = vld [vmem:[%s17072_s1 + $0x48] sm:$0xff]  ;;  %v10601_v49 = vld [vmem:[%s17072_s1 + $0x50] sm:$0xff] }
  0x59   :  { %119 = vst.msk [vmem:[#allocation2 + $0xe0] sm:$0xff] %vm89_vm0, %v14359_v0  ;;  %121 = vst.msk [vmem:[#allocation2 + $0xf0] sm:$0xff] %vm89_vm0, %v14359_v0  ;;  %v13442_v52 = vpack.c.bf16 %v10601_v49, %v10600_v48  ;;  %v638_v1 = vld [vmem:[#allocation2 + $0x2] sm:$0xff]  ;;  %v10602_v4 = vld [vmem:[%s17072_s1 + $0x58] sm:$0xf] }
  0x5a   :  { %120 = vst.msk [vmem:[#allocation2 + $0xe8] sm:$0x3] %vm91_vm1, %v14359_v0  ;;  %122 = vst.msk [vmem:[#allocation2 + $0xf8] sm:$0x3] %vm91_vm1, %v14359_v0  ;;  %v10620_v5 = vld [vmem:[%s17072_s1 + $0x60] sm:$0xff]  ;;  %v10681_v48 = vld [vmem:[%s17072_s1 + $0xb0] sm:$0xff] }
  0x5b   :  { %123 = vst.msk [vmem:[#allocation2 + $0x100] sm:$0xff] %vm89_vm0, %v14359_v0  ;;  %125 = vst.msk [vmem:[#allocation2 + $0x110] sm:$0xff] %vm89_vm0, %v14359_v0 }
  0x5c   :  { %124 = vst.msk [vmem:[#allocation2 + $0x108] sm:$0x3] %vm91_vm1, %v14359_v0  ;;  %126 = vst.msk [vmem:[#allocation2 + $0x118] sm:$0x3] %vm91_vm1, %v14359_v0  ;;  %v214_v56 = vld [vmem:[#allocation2 + $0xa0] sm:$0xff] }
  0x5d   :  { %127 = vst.msk [vmem:[#allocation2 + $0x120] sm:$0xff] %vm89_vm0, %v14359_v0  ;;  %129 = vst.msk [vmem:[#allocation2 + $0x130] sm:$0xff] %vm89_vm0, %v14359_v0  ;;  %v233_v34 = vld [vmem:[#allocation2 + $0xa1] sm:$0xff] }
  0x5e   :  { %128 = vst.msk [vmem:[#allocation2 + $0x128] sm:$0x3] %vm91_vm1, %v14359_v0  ;;  %130 = vst.msk [vmem:[#allocation2 + $0x138] sm:$0x3] %vm91_vm1, %v14359_v0 }
  0x5f   :  { %190 = vst.msk [vmem:[#allocation2 + $0x11] sm:$0xff] %vm89_vm0, %v173_v6  ;;  %191 = vst.msk [vmem:[#allocation2 + $0x21] sm:$0xff] %vm89_vm0, %v174_v9  ;;  %v10621_v6 = vld [vmem:[%s17072_s1 + $0x68] sm:$0xff] }
  0x60   :  { %192 = vst.msk [vmem:[#allocation2 + $0x31] sm:$0xff] %vm89_vm0, %v175_v10  ;;  %193 = vst.msk [vmem:[#allocation2 + $0x41] sm:$0xff] %vm89_vm0, %v176_v11  ;;  %v13446_v9 = vpack.c.bf16 %v10621_v6, %v10620_v5 }
  0x61   :  { %194 = vst.msk [vmem:[#allocation2 + $0x51] sm:$0xff] %vm89_vm0, %v177_v12  ;;  %195 = vst.msk [vmem:[#allocation2 + $0x61] sm:$0xff] %vm89_vm0, %v178_v13  ;;  %v646_v13 = vld [vmem:[#allocation2 + $0xa2] sm:$0xff] }
  0x62   :  { %196 = vst.msk [vmem:[#allocation2 + $0x71] sm:$0xff] %vm89_vm0, %v179_v14  ;;  %198 = vst.msk [vmem:[#allocation2 + $0xb1] sm:$0xff] %vm89_vm0, %v181_v15 }
  0x63   :  { %199 = vst.msk [vmem:[#allocation2 + $0xc1] sm:$0xff] %vm89_vm0, %v182_v17  ;;  %200 = vst.msk [vmem:[#allocation2 + $0xd1] sm:$0xff] %vm89_vm0, %v183_v18 }
  0x64   :  { %201 = vst.msk [vmem:[#allocation2 + $0xe1] sm:$0xff] %vm89_vm0, %v184_v19  ;;  %202 = vst.msk [vmem:[#allocation2 + $0xf1] sm:$0xff] %vm89_vm0, %v185_v20 }
  0x65   :  { %203 = vst.msk [vmem:[#allocation2 + $0x101] sm:$0xff] %vm89_vm0, %v186_v21  ;;  %204 = vst.msk [vmem:[#allocation2 + $0x111] sm:$0xff] %vm89_vm0, %v187_v22  ;;  %v10622_v21 = vld [vmem:[%s17072_s1 + $0x70] sm:$0xf]  ;;  %v10640_v22 = vld [vmem:[%s17072_s1 + $0x78] sm:$0xff] }
  0x66   :  { %v14632_v24 = vld [vmem:[#allocation2 + $0x11] sm:$0xff]  ;;  %v14642_v27 = vld [vmem:[#allocation2 + $0x21] sm:$0xff]  ;;  %197 = vst.msk [vmem:[#allocation2 + $0x81] sm:$0xff] %vm89_vm0, %v180_v37  ;;  %205 = vst.msk [vmem:[#allocation2 + $0x121] sm:$0xff] %vm89_vm0, %v188_v38 }
  0x67   :  { %12159 = vmatmul.mubr.msk.f32.vlgmr.msra.gmra.mrb[0].mxu0 %vm89_vm0, %v14632_v24  ;;  %v14646_v28 = vld [vmem:[#allocation2 + $0x31] sm:$0xff]  ;;  %v14648_v29 = vld [vmem:[#allocation2 + $0x41] sm:$0xff]  ;;  %137 = vst.msk [vmem:[#allocation3 + $0x20] sm:$0xff] %vm131_vm3, %v14359_v0  ;;  %132 = vst.msk [vmem:[#allocation3] sm:$0xff] %vm131_vm3, %v14359_v0 }
  0x68   :  { %13437 = vmatpush3.bf16.msra.mxu0 %v13434_v16  ;;  %12161 = vmatprep.mubr.msk.f32.mxu0 %vm89_vm0, %v14642_v27  ;;  %v14655_v31 = vld [vmem:[#allocation2 + $0x51] sm:$0xff]  ;;  %v14658_v32 = vld [vmem:[#allocation2 + $0x61] sm:$0xff]  ;;  %138 = vst.msk [vmem:[#allocation3 + $0x28] sm:$0x3] %vm133_vm4, %v14359_v0  ;;  %134 = vst.msk [vmem:[#allocation3 + $0x8] sm:$0x3] %vm133_vm4, %v14359_v0 }
  0x69   :  { %12186 = vmatprep.subr.msk.mxu0 %vm293_vm2, %v224_v23  ;;  %v14664_v33 = vld [vmem:[#allocation2 + $0x71] sm:$0xff]  ;;  %v14708_v46 = vld [vmem:[#allocation2 + $0x20] sm:$0xff]  ;;  %135 = vst.msk [vmem:[#allocation3 + $0x10] sm:$0xff] %vm131_vm3, %v14359_v0  ;;  %139 = vst.msk [vmem:[#allocation3 + $0x30] sm:$0xff] %vm131_vm3, %v14359_v0 }
  0x6a   :  { %v14669_v35 = vld [vmem:[#allocation2 + $0xb1] sm:$0xff]  ;;  %v14671_v36 = vld [vmem:[#allocation2 + $0xc1] sm:$0xff]  ;;  %136 = vst.msk [vmem:[#allocation3 + $0x18] sm:$0x3] %vm133_vm4, %v14359_v0  ;;  %140 = vst.msk [vmem:[#allocation3 + $0x38] sm:$0x3] %vm133_vm4, %v14359_v0 }
  0x6b   :  { %12162 = vmatmul.mubr.msk.f32.gmra.mrb[2].mxu0 %vm89_vm0, %v14646_v28  ;;  %v14684_v39 = vld [vmem:[#allocation2 + $0xd1] sm:$0xff]  ;;  %v14687_v40 = vld [vmem:[#allocation2 + $0xe1] sm:$0xff]  ;;  %141 = vst.msk [vmem:[#allocation3 + $0x40] sm:$0xff] %vm131_vm3, %v14359_v0  ;;  %143 = vst.msk [vmem:[#allocation3 + $0x50] sm:$0xff] %vm131_vm3, %v14359_v0 }
  0x6c   :  { %12164 = vmatprep.mubr.msk.f32.mxu0 %vm89_vm0, %v14648_v29  ;;  %12187 = vmatpush3.msk.msra.mxu0 %vm293_vm2, %v224_v23  ;;  %v14693_v41 = vld [vmem:[#allocation2 + $0xf1] sm:$0xff]  ;;  %v14695_v42 = vld [vmem:[#allocation2 + $0x101] sm:$0xff]  ;;  %142 = vst.msk [vmem:[#allocation3 + $0x48] sm:$0x3] %vm133_vm4, %v14359_v0  ;;  %144 = vst.msk [vmem:[#allocation3 + $0x58] sm:$0x3] %vm133_vm4, %v14359_v0 }
  0x6d   :  { %13439 = vmatprep.subr.bf16.mxu0 %v13438_v30  ;;  %v14701_v43 = vld [vmem:[#allocation2 + $0x111] sm:$0xff]  ;;  %v14725_v51 = vld [vmem:[#allocation2 + $0x40] sm:$0xff]  ;;  %145 = vst.msk [vmem:[#allocation3 + $0x60] sm:$0xff] %vm131_vm3, %v14359_v0  ;;  %147 = vst.msk [vmem:[#allocation3 + $0x70] sm:$0xff] %vm131_vm3, %v14359_v0 }
  0x6e   :  { %v14706_v45 = vld [vmem:[#allocation2 + $0x10] sm:$0xff]  ;;  %v14735_v54 = vld [vmem:[#allocation2 + $0x60] sm:$0xff]  ;;  %v10661_v38 = vld [vmem:[%s17072_s1 + $0x98] sm:$0xff]  ;;  %146 = vst.msk [vmem:[#allocation3 + $0x68] sm:$0x3] %vm133_vm4, %v14359_v0 }
  0x6f   :  { %12165 = vmatmul.mubr.msk.f32.gmra.mrb[4].mxu0 %vm89_vm0, %v14655_v31  ;;  %v14723_v50 = vld [vmem:[#allocation2 + $0x30] sm:$0xff]  ;;  %v14748_v58 = vld [vmem:[#allocation2 + $0xc0] sm:$0xff]  ;;  %148 = vst.msk [vmem:[#allocation3 + $0x78] sm:$0x3] %vm133_vm4, %v14359_v0  ;;  %150 = vst.msk [vmem:[#allocation3 + $0x88] sm:$0x3] %vm133_vm4, %v14359_v0 }
  0x70   :  { %12167 = vmatprep.mubr.msk.f32.mxu0 %vm89_vm0, %v14658_v32  ;;  %v14732_v53 = vld [vmem:[#allocation2 + $0x50] sm:$0xff]  ;;  %v14756_v60 = vld [vmem:[#allocation2 + $0xe0] sm:$0xff]  ;;  %149 = vst.msk [vmem:[#allocation3 + $0x80] sm:$0xff] %vm131_vm3, %v14359_v0  ;;  %151 = vst.msk [vmem:[#allocation3 + $0x90] sm:$0xff] %vm131_vm3, %v14359_v0 }
  0x71   :  { %v14741_v55 = vld [vmem:[#allocation2 + $0x70] sm:$0xff]  ;;  %v14764_v62 = vld [vmem:[#allocation2 + $0x100] sm:$0xff]  ;;  %152 = vst.msk [vmem:[#allocation3 + $0x98] sm:$0x3] %vm133_vm4, %v14359_v0  ;;  %154 = vst.msk [vmem:[#allocation3 + $0xa8] sm:$0x3] %vm133_vm4, %v14359_v0 }
  0x72   :  { %v14746_v57 = vld [vmem:[#allocation2 + $0xb0] sm:$0xff]  ;;  %v14777_v3 = vld [vmem:[#allocation2 + $0x22] sm:$0xff]  ;;  %153 = vst.msk [vmem:[#allocation3 + $0xa0] sm:$0xff] %vm131_vm3, %v14359_v0  ;;  %155 = vst.msk [vmem:[#allocation3 + $0xb0] sm:$0xff] %vm131_vm3, %v14359_v0 }
  0x73   :  { %12168 = vmatmul.mubr.msk.f32.gmra.mrb[6].mxu0 %vm89_vm0, %v14664_v33  ;;  %v14754_v59 = vld [vmem:[#allocation2 + $0xd0] sm:$0xff]  ;;  %v14794_v8 = vld [vmem:[#allocation2 + $0x42] sm:$0xff]  ;;  %156 = vst.msk [vmem:[#allocation3 + $0xb8] sm:$0x3] %vm133_vm4, %v14359_v0  ;;  %158 = vst.msk [vmem:[#allocation3 + $0xc8] sm:$0x3] %vm133_vm4, %v14359_v0 }
  0x74   :  { %12170 = vmatprep.mubr.msk.f32.mxu0 %vm89_vm0, %v233_v34  ;;  %v14762_v61 = vld [vmem:[#allocation2 + $0xf0] sm:$0xff]  ;;  %v14804_v11 = vld [vmem:[#allocation2 + $0x62] sm:$0xff]  ;;  %157 = vst.msk [vmem:[#allocation3 + $0xc0] sm:$0xff] %vm131_vm3, %v14359_v0  ;;  %159 = vst.msk [vmem:[#allocation3 + $0xd0] sm:$0xff] %vm131_vm3, %v14359_v0 }
  0x75   :  { %v14770_v63 = vld [vmem:[#allocation2 + $0x110] sm:$0xff]  ;;  %v14817_v15 = vld [vmem:[#allocation2 + $0xc2] sm:$0xff]  ;;  %160 = vst.msk [vmem:[#allocation3 + $0xd8] sm:$0x3] %vm133_vm4, %v14359_v0  ;;  %162 = vst.msk [vmem:[#allocation3 + $0xe8] sm:$0x3] %vm133_vm4, %v14359_v0 }
  0x76   :  { %v14775_v2 = vld [vmem:[#allocation2 + $0x12] sm:$0xff]  ;;  %v14825_v17 = vld [vmem:[#allocation2 + $0xe2] sm:$0xff]  ;;  %161 = vst.msk [vmem:[#allocation3 + $0xe0] sm:$0xff] %vm131_vm3, %v14359_v0  ;;  %163 = vst.msk [vmem:[#allocation3 + $0xf0] sm:$0xff] %vm131_vm3, %v14359_v0 }
  0x77   :  { %12171 = vmatmul.mubr.msk.f32.gmra.mrb[8].mxu0 %vm89_vm0, %v14669_v35  ;;  %v14792_v7 = vld [vmem:[#allocation2 + $0x32] sm:$0xff]  ;;  %v14833_v19 = vld [vmem:[#allocation2 + $0x102] sm:$0xff]  ;;  %164 = vst.msk [vmem:[#allocation3 + $0xf8] sm:$0x3] %vm133_vm4, %v14359_v0  ;;  %166 = vst.msk [vmem:[#allocation3 + $0x108] sm:$0x3] %vm133_vm4, %v14359_v0 }
  0x78   :  { %12173 = vmatprep.mubr.msk.f32.mxu0 %vm89_vm0, %v14671_v36  ;;  %v14801_v10 = vld [vmem:[#allocation2 + $0x52] sm:$0xff]  ;;  %v10641_v23 = vld [vmem:[%s17072_s1 + $0x80] sm:$0xff]  ;;  %v10642_v34 = vld [vmem:[%s17072_s1 + $0x88] sm:$0xf]  ;;  %165 = vst.msk [vmem:[#allocation3 + $0x100] sm:$0xff] %vm131_vm3, %v14359_v0 }
  0x79   :  { %v14810_v12 = vld [vmem:[#allocation2 + $0x72] sm:$0xff]  ;;  %v13450_v25 = vpack.c.bf16 %v10641_v23, %v10640_v22  ;;  %v14868_v26 = vld [vmem:[#allocation2 + $0x80] sm:$0xff]  ;;  %167 = vst.msk [vmem:[#allocation3 + $0x110] sm:$0xff] %vm131_vm3, %v14359_v0  ;;  %169 = vst.msk [vmem:[#allocation3 + $0x120] sm:$0xff] %vm131_vm3, %v14359_v0 }
  0x7a   :  { %v14815_v14 = vld [vmem:[#allocation2 + $0xb2] sm:$0xff]  ;;  %168 = vst.msk [vmem:[#allocation3 + $0x118] sm:$0x3] %vm133_vm4, %v14359_v0  ;;  %170 = vst.msk [vmem:[#allocation3 + $0x128] sm:$0x3] %vm133_vm4, %v14359_v0  ;;  %v15046_v49 = vld [vmem:[#allocation2 + $0x82] sm:$0xff] }
  0x7b   :  { %12174 = vmatmul.mubr.msk.f32.gmra.mrb[10].mxu0 %vm89_vm0, %v14684_v39  ;;  %v14823_v16 = vld [vmem:[#allocation2 + $0xd2] sm:$0xff]  ;;  %171 = vst.msk [vmem:[#allocation3 + $0x130] sm:$0xff] %vm131_vm3, %v14359_v0 }
  0x7c   :  { %12176 = vmatprep.mubr.msk.f32.mxu0 %vm89_vm0, %v14687_v40  ;;  %v14831_v18 = vld [vmem:[#allocation2 + $0xf2] sm:$0xff]  ;;  %172 = vst.msk [vmem:[#allocation3 + $0x138] sm:$0x3] %vm133_vm4, %v14359_v0 }
  0x7d   :  { %v14839_v20 = vld [vmem:[#allocation2 + $0x112] sm:$0xff] }
  0x7e   :  { %v10660_v37 = vld [vmem:[%s17072_s1 + $0x90] sm:$0xff] }
  0x7f   :  { %12177 = vmatmul.mubr.msk.f32.gmra.mrb[12].mxu0 %vm89_vm0, %v14693_v41 }
  0x80   :  { %12179 = vmatprep.mubr.msk.f32.mxu0 %vm89_vm0, %v14695_v42 }
  0x83   :  { %12180 = vmatmul.mubr.msk.f32.gmra.mrb[14].mxu0 %vm89_vm0, %v14701_v43 }
  0x84   :  { %12188 = vmatprep.mubr.msk.f32.mxu0 %vm89_vm0, %v206_v44  ;;  %v14918_v44 = vld [vmem:[#allocation2 + $0x81] sm:$0xff] }
  0x87   :  { %12189 = vmatmul.mubr.msk.f32.vlgmr.msra.gmra.mrb[0].mxu0 %vm89_vm0, %v14706_v45 }
  0x88   :  { %13441 = vmatpush3.bf16.msra.mxu0 %v13438_v30  ;;  %12191 = vmatprep.mubr.msk.f32.mxu0 %vm89_vm0, %v14708_v46  ;;  %v14886_v30 = vld [vmem:[#allocation2 + $0x120] sm:$0xff] }
  0x89   :  { %12216 = vmatprep.subr.msk.mxu0 %vm293_vm2, %v10582_v47 }
  0x8b   :  { %12192 = vmatmul.mubr.msk.f32.gmra.mrb[2].mxu0 %vm89_vm0, %v14723_v50 }
  0x8c   :  { %12194 = vmatprep.mubr.msk.f32.mxu0 %vm89_vm0, %v14725_v51  ;;  %12217 = vmatpush3.msk.msra.mxu0 %vm293_vm2, %v10582_v47  ;;  %v10680_v47 = vld [vmem:[%s17072_s1 + $0xa8] sm:$0xff] }
  0x8d   :  { %13443 = vmatprep.subr.bf16.mxu0 %v13442_v52  ;;  %v13458_v0 = vpack.c.bf16 %v10681_v48, %v10680_v47  ;;  %v15275_v48 = vld [vmem:[#allocation3 + $0xa1] sm:$0xff] }
  0x8f   :  { %12195 = vmatmul.mubr.msk.f32.gmra.mrb[4].mxu0 %vm89_vm0, %v14732_v53 }
  0x90   :  { %12197 = vmatprep.mubr.msk.f32.mxu0 %vm89_vm0, %v14735_v54 }
  0x93   :  { %12198 = vmatmul.mubr.msk.f32.gmra.mrb[6].mxu0 %vm89_vm0, %v14741_v55 }
  0x94   :  { %12200 = vmatprep.mubr.msk.f32.mxu0 %vm89_vm0, %v214_v56  ;;  %v10682_v56 = vld [vmem:[%s17072_s1 + $0xb8] sm:$0xf] }
  0x97   :  { %12201 = vmatmul.mubr.msk.f32.gmra.mrb[8].mxu0 %vm89_vm0, %v14746_v57 }
  0x98   :  { %12203 = vmatprep.mubr.msk.f32.mxu0 %vm89_vm0, %v14748_v58 }
  0x9b   :  { %12204 = vmatmul.mubr.msk.f32.gmra.mrb[10].mxu0 %vm89_vm0, %v14754_v59 }
  0x9c   :  { %12206 = vmatprep.mubr.msk.f32.mxu0 %vm89_vm0, %v14756_v60 }
  0x9f   :  { %12207 = vmatmul.mubr.msk.f32.gmra.mrb[12].mxu0 %vm89_vm0, %v14762_v61 }
  0xa0   :  { %12209 = vmatprep.mubr.msk.f32.mxu0 %vm89_vm0, %v14764_v62 }
  0xa3   :  { %12210 = vmatmul.mubr.msk.f32.gmra.mrb[14].mxu0 %vm89_vm0, %v14770_v63 }
  0xa4   :  { %12218 = vmatprep.mubr.msk.f32.mxu0 %vm89_vm0, %v638_v1  ;;  %v10701_v1 = vld [vmem:[%s17072_s1 + $0xc8] sm:$0xff] }
  0xa7   :  { %12219 = vmatmul.mubr.msk.f32.vlgmr.msra.gmra.mrb[0].mxu0 %vm89_vm0, %v14775_v2 }
  0xa8   :  { %13445 = vmatpush3.bf16.msra.mxu0 %v13442_v52  ;;  %12221 = vmatprep.mubr.msk.f32.mxu0 %vm89_vm0, %v14777_v3  ;;  %v15064_v52 = vld [vmem:[#allocation2 + $0x122] sm:$0xff] }
  0xa9   :  { %12246 = vmatprep.subr.msk.mxu0 %vm293_vm2, %v10602_v4 }
  0xab   :  { %12222 = vmatmul.mubr.msk.f32.gmra.mrb[2].mxu0 %vm89_vm0, %v14792_v7 }
  0xac   :  { %12224 = vmatprep.mubr.msk.f32.mxu0 %vm89_vm0, %v14794_v8  ;;  %12247 = vmatpush3.msk.msra.mxu0 %vm293_vm2, %v10602_v4 }
  0xad   :  { %13447 = vmatprep.subr.bf16.mxu0 %v13446_v9 }
  0xaf   :  { %12225 = vmatmul.mubr.msk.f32.gmra.mrb[4].mxu0 %vm89_vm0, %v14801_v10 }
  0xb0   :  { %12227 = vmatprep.mubr.msk.f32.mxu0 %vm89_vm0, %v14804_v11 }
  0xb3   :  { %12228 = vmatmul.mubr.msk.f32.gmra.mrb[6].mxu0 %vm89_vm0, %v14810_v12 }
  0xb4   :  { %12230 = vmatprep.mubr.msk.f32.mxu0 %vm89_vm0, %v646_v13 }
  0xb7   :  { %12231 = vmatmul.mubr.msk.f32.gmra.mrb[8].mxu0 %vm89_vm0, %v14815_v14 }
  0xb8   :  { %12233 = vmatprep.mubr.msk.f32.mxu0 %vm89_vm0, %v14817_v15 }
  0xbb   :  { %12234 = vmatmul.mubr.msk.f32.gmra.mrb[10].mxu0 %vm89_vm0, %v14823_v16 }
  0xbc   :  { %12236 = vmatprep.mubr.msk.f32.mxu0 %vm89_vm0, %v14825_v17 }
  0xbf   :  { %12237 = vmatmul.mubr.msk.f32.gmra.mrb[12].mxu0 %vm89_vm0, %v14831_v18 }
  0xc0   :  { %12239 = vmatprep.mubr.msk.f32.mxu0 %vm89_vm0, %v14833_v19 }
  0xc3   :  { %12240 = vmatmul.mubr.msk.f32.gmra.mrb[14].mxu0 %vm89_vm0, %v14839_v20 }
  0xc4   :  { %12248 = vmatprep.mubr.msk.f32.mxu0 %vm89_vm0, %v14706_v45  ;;  %v14936_v45 = vld [vmem:[#allocation2 + $0x121] sm:$0xff] }
  0xc7   :  { %12249 = vmatmul.mubr.msk.f32.vlgmr.msra.gmra.mrb[0].mxu0 %vm89_vm0, %v14708_v46 }
  0xc8   :  { %13449 = vmatpush3.bf16.msra.mxu0 %v13446_v9  ;;  %12251 = vmatprep.mubr.msk.f32.mxu0 %vm89_vm0, %v14723_v50  ;;  %v10756_v9 = vld [vmem:[%s17074_s3 + $0x28] sm:$0xff] }
  0xc9   :  { %12276 = vmatprep.subr.msk.mxu0 %vm293_vm2, %v10622_v21 }
  0xcb   :  { %12252 = vmatmul.mubr.msk.f32.gmra.mrb[2].mxu0 %vm89_vm0, %v14725_v51 }
  0xcc   :  { %12254 = vmatprep.mubr.msk.f32.mxu0 %vm89_vm0, %v14732_v53  ;;  %12277 = vmatpush3.msk.msra.mxu0 %vm293_vm2, %v10622_v21 }
  0xcd   :  { %13451 = vmatprep.subr.bf16.mxu0 %v13450_v25 }
  0xcf   :  { %12255 = vmatmul.mubr.msk.f32.gmra.mrb[4].mxu0 %vm89_vm0, %v14735_v54 }
  0xd0   :  { %12257 = vmatprep.mubr.msk.f32.mxu0 %vm89_vm0, %v14741_v55 }
  0xd3   :  { %12258 = vmatmul.mubr.msk.f32.gmra.mrb[6].mxu0 %vm89_vm0, %v14868_v26 }
  0xd4   :  { %12260 = vmatprep.mubr.msk.f32.mxu0 %vm89_vm0, %v14746_v57  ;;  %v10700_v57 = vld [vmem:[%s17072_s1 + $0xc0] sm:$0xff] }
  0xd7   :  { %12261 = vmatmul.mubr.msk.f32.gmra.mrb[8].mxu0 %vm89_vm0, %v14748_v58 }
  0xd8   :  { %12263 = vmatprep.mubr.msk.f32.mxu0 %vm89_vm0, %v14754_v59 }
  0xdb   :  { %12264 = vmatmul.mubr.msk.f32.gmra.mrb[10].mxu0 %vm89_vm0, %v14756_v60 }
  0xdc   :  { %12266 = vmatprep.mubr.msk.f32.mxu0 %vm89_vm0, %v14762_v61 }
  0xdf   :  { %12267 = vmatmul.mubr.msk.f32.gmra.mrb[12].mxu0 %vm89_vm0, %v14764_v62 }
  0xe0   :  { %12269 = vmatprep.mubr.msk.f32.mxu0 %vm89_vm0, %v14770_v63 }
  0xe3   :  { %12270 = vmatmul.mubr.msk.f32.gmra.mrb[14].mxu0 %vm89_vm0, %v14886_v30 }
  0xe4   :  { %12278 = vmatprep.mubr.msk.f32.mxu0 %vm89_vm0, %v14632_v24  ;;  %v14906_v24 = vpack.c.bf16 %v10661_v38, %v10660_v37 }
  0xe7   :  { %12279 = vmatmul.mubr.msk.f32.vlgmr.msra.gmra.mrb[0].mxu0 %vm89_vm0, %v14642_v27 }
  0xe8   :  { %13453 = vmatpush3.bf16.msra.mxu0 %v13450_v25  ;;  %12281 = vmatprep.mubr.msk.f32.mxu0 %vm89_vm0, %v14646_v28 }
  0xe9   :  { %12306 = vmatprep.subr.msk.mxu0 %vm293_vm2, %v10642_v34 }
  0xeb   :  { %12282 = vmatmul.mubr.msk.f32.gmra.mrb[2].mxu0 %vm89_vm0, %v14648_v29 }
  0xec   :  { %12284 = vmatprep.mubr.msk.f32.mxu0 %vm89_vm0, %v14655_v31  ;;  %12307 = vmatpush3.msk.msra.mxu0 %vm293_vm2, %v10642_v34 }
  0xed   :  { %13455 = vmatprep.subr.bf16.mxu0 %v14906_v24 }
  0xef   :  { %12285 = vmatmul.mubr.msk.f32.gmra.mrb[4].mxu0 %vm89_vm0, %v14658_v32 }
  0xf0   :  { %12287 = vmatprep.mubr.msk.f32.mxu0 %vm89_vm0, %v14664_v33 }
  0xf3   :  { %12288 = vmatmul.mubr.msk.f32.gmra.mrb[6].mxu0 %vm89_vm0, %v14918_v44 }
  0xf4   :  { %12290 = vmatprep.mubr.msk.f32.mxu0 %vm89_vm0, %v14669_v35  ;;  %v10662_v35 = vld [vmem:[%s17072_s1 + $0xa0] sm:$0xf] }
  0xf7   :  { %12291 = vmatmul.mubr.msk.f32.gmra.mrb[8].mxu0 %vm89_vm0, %v14671_v36 }
  0xf8   :  { %12293 = vmatprep.mubr.msk.f32.mxu0 %vm89_vm0, %v14684_v39 }
  0xfb   :  { %12294 = vmatmul.mubr.msk.f32.gmra.mrb[10].mxu0 %vm89_vm0, %v14687_v40 }
  0xfc   :  { %12296 = vmatprep.mubr.msk.f32.mxu0 %vm89_vm0, %v14693_v41 }
  0xff   :  { %12297 = vmatmul.mubr.msk.f32.gmra.mrb[12].mxu0 %vm89_vm0, %v14695_v42 }
 0x100   :  { %12299 = vmatprep.mubr.msk.f32.mxu0 %vm89_vm0, %v14701_v43 }
 0x103   :  { %12300 = vmatmul.mubr.msk.f32.gmra.mrb[14].mxu0 %vm89_vm0, %v14936_v45 }
 0x104   :  { %12308 = vmatprep.mubr.msk.f32.mxu0 %vm89_vm0, %v14775_v2 }
 0x107   :  { %12309 = vmatmul.mubr.msk.f32.vlgmr.msra.gmra.mrb[0].mxu0 %vm89_vm0, %v14777_v3 }
 0x108   :  { %13457 = vmatpush3.bf16.msra.mxu0 %v14906_v24  ;;  %12311 = vmatprep.mubr.msk.f32.mxu0 %vm89_vm0, %v14792_v7  ;;  %v10827_v24 = vld [vmem:[%s17074_s3 + $0x60] sm:$0xff] }
 0x109   :  { %12336 = vmatprep.subr.msk.mxu0 %vm293_vm2, %v10662_v35 }
 0x10b   :  { %12312 = vmatmul.mubr.msk.f32.gmra.mrb[2].mxu0 %vm89_vm0, %v14794_v8 }
 0x10c   :  { %12314 = vmatprep.mubr.msk.f32.mxu0 %vm89_vm0, %v14801_v10  ;;  %12337 = vmatpush3.msk.msra.mxu0 %vm293_vm2, %v10662_v35 }
 0x10d   :  { %13459 = vmatprep.subr.bf16.mxu0 %v13458_v0 }
 0x10f   :  { %12315 = vmatmul.mubr.msk.f32.gmra.mrb[4].mxu0 %vm89_vm0, %v14804_v11 }
 0x110   :  { %12317 = vmatprep.mubr.msk.f32.mxu0 %vm89_vm0, %v14810_v12 }
 0x113   :  { %12318 = vmatmul.mubr.msk.f32.gmra.mrb[6].mxu0 %vm89_vm0, %v15046_v49 }
 0x114   :  { %12320 = vmatprep.mubr.msk.f32.mxu0 %vm89_vm0, %v14815_v14 }
 0x117   :  { %12321 = vmatmul.mubr.msk.f32.gmra.mrb[8].mxu0 %vm89_vm0, %v14817_v15 }
 0x118   :  { %12323 = vmatprep.mubr.msk.f32.mxu0 %vm89_vm0, %v14823_v16 }
 0x11b   :  { %12324 = vmatmul.mubr.msk.f32.gmra.mrb[10].mxu0 %vm89_vm0, %v14825_v17 }
 0x11c   :  { %12326 = vmatprep.mubr.msk.f32.mxu0 %vm89_vm0, %v14831_v18 }
 0x11f   :  { %12327 = vmatmul.mubr.msk.f32.gmra.mrb[12].mxu0 %vm89_vm0, %v14833_v19 }
 0x120   :  { %12329 = vmatprep.mubr.msk.f32.mxu0 %vm89_vm0, %v14839_v20 }
 0x123   :  { %12330 = vmatmul.mubr.msk.f32.gmra.mrb[14].mxu0 %vm89_vm0, %v15064_v52 }
 0x124   :  { %12338 = vmatprep.mubr.msk.f32.mxu0 %vm89_vm0, %v14708_v46  ;;  %v13462_v46 = vpack.c.bf16 %v10701_v1, %v10700_v57 }
 0x127   :  { %12339 = vmatmul.mubr.msk.f32.vlgmr.msra.gmra.mrb[0].mxu0 %vm89_vm0, %v14723_v50  ;;  %v1574_v50 = vld [vmem:[#allocation2 + $0x90] sm:$0xff] }
 0x128   :  { %13461 = vmatpush3.bf16.msra.mxu0 %v13458_v0  ;;  %12341 = vmatprep.mubr.msk.f32.mxu0 %vm89_vm0, %v14725_v51  ;;  %v1582_v51 = vld [vmem:[#allocation2 + $0x130] sm:$0xff] }
 0x129   :  { %12366 = vmatprep.subr.msk.mxu0 %vm293_vm2, %v10682_v56 }
 0x12b   :  { %12342 = vmatmul.mubr.msk.f32.gmra.mrb[2].mxu0 %vm89_vm0, %v14732_v53  ;;  %v10702_v53 = vld [vmem:[%s17072_s1 + $0xd0] sm:$0xf] }
 0x12c   :  { %12344 = vmatprep.mubr.msk.f32.mxu0 %vm89_vm0, %v14735_v54  ;;  %12367 = vmatpush3.msk.msra.mxu0 %vm293_vm2, %v10682_v56  ;;  %v10721_v54 = vld [vmem:[%s17074_s3 + $0x10] sm:$0xff] }
 0x12d   :  { %13463 = vmatprep.subr.bf16.mxu0 %v13462_v46 }
 0x12f   :  { %12345 = vmatmul.mubr.msk.f32.gmra.mrb[4].mxu0 %vm89_vm0, %v14741_v55  ;;  %v10722_v55 = vld [vmem:[%s17074_s3 + $0x18] sm:$0xff] }
 0x130   :  { %12347 = vmatprep.mubr.msk.f32.mxu0 %vm89_vm0, %v14868_v26 }
 0x133   :  { %12348 = vmatmul.mubr.msk.f32.gmra.mrb[6].mxu0 %vm89_vm0, %v1574_v50 }
 0x134   :  { %12350 = vmatprep.mubr.msk.f32.mxu0 %vm89_vm0, %v14748_v58  ;;  %v10809_v58 = vld [vmem:[%s17074_s3 + $0x50] sm:$0xff] }
 0x137   :  { %12351 = vmatmul.mubr.msk.f32.gmra.mrb[8].mxu0 %vm89_vm0, %v14754_v59  ;;  %v10810_v59 = vld [vmem:[%s17074_s3 + $0x58] sm:$0xff] }
 0x138   :  { %12353 = vmatprep.mubr.msk.f32.mxu0 %vm89_vm0, %v14756_v60  ;;  %v15206_v60 = vpack.c.bf16 %v10810_v59, %v10809_v58  ;;  %v10845_v59 = vld [vmem:[%s17074_s3 + $0x70] sm:$0xff] }
 0x13b   :  { %12354 = vmatmul.mubr.msk.f32.gmra.mrb[10].mxu0 %vm89_vm0, %v14762_v61  ;;  %v15212_v61 = vld [vmem:[%s17073_s2] ss:$0 sm:$0xff] }
 0x13c   :  { %12356 = vmatprep.mubr.msk.f32.mxu0 %vm89_vm0, %v14764_v62 }
 0x13f   :  { %12357 = vmatmul.mubr.msk.f32.gmra.mrb[12].mxu0 %vm89_vm0, %v14770_v63 }
 0x140   :  { %12359 = vmatprep.mubr.msk.f32.mxu0 %vm89_vm0, %v14886_v30 }
 0x143   :  { %12360 = vmatmul.mubr.msk.f32.gmra.mrb[14].mxu0 %vm89_vm0, %v1582_v51 }
 0x144   :  { %12368 = vmatprep.mubr.msk.f32.mxu0 %vm89_vm0, %v14642_v27  ;;  %v13466_v27 = vpack.c.bf16 %v10722_v55, %v10721_v54 }
 0x147   :  { %12369 = vmatmul.mubr.msk.f32.vlgmr.msra.gmra.mrb[0].mxu0 %vm89_vm0, %v14646_v28  ;;  %v1806_v28 = vld [vmem:[#allocation2 + $0x91] sm:$0xff] }
 0x148   :  { %13465 = vmatpush3.bf16.msra.mxu0 %v13462_v46  ;;  %12371 = vmatprep.mubr.msk.f32.mxu0 %vm89_vm0, %v14648_v29  ;;  %v1814_v29 = vld [vmem:[#allocation2 + $0x131] sm:$0xff] }
 0x149   :  { %12396 = vmatprep.subr.msk.mxu0 %vm293_vm2, %v10702_v53 }
 0x14b   :  { %12372 = vmatmul.mubr.msk.f32.gmra.mrb[2].mxu0 %vm89_vm0, %v14655_v31  ;;  %v2038_v31 = vld [vmem:[#allocation2 + $0x92] sm:$0xff] }
 0x14c   :  { %12374 = vmatprep.mubr.msk.f32.mxu0 %vm89_vm0, %v14658_v32  ;;  %12397 = vmatpush3.msk.msra.mxu0 %vm293_vm2, %v10702_v53  ;;  %v2046_v32 = vld [vmem:[#allocation2 + $0x132] sm:$0xff] }
 0x14d   :  { %13467 = vmatprep.subr.bf16.mxu0 %v13466_v27 }
 0x14f   :  { %12375 = vmatmul.mubr.msk.f32.gmra.mrb[4].mxu0 %vm89_vm0, %v14664_v33  ;;  %v15180_v33 = vld [vmem:[#allocation3 + $0x1] sm:$0xff] }
 0x150   :  { %12377 = vmatprep.mubr.msk.f32.mxu0 %vm89_vm0, %v14918_v44  ;;  %v10828_v44 = vld [vmem:[%s17074_s3 + $0x68] sm:$0xff] }
 0x153   :  { %12378 = vmatmul.mubr.msk.f32.gmra.mrb[6].mxu0 %vm89_vm0, %v1806_v28 }
 0x154   :  { %12380 = vmatprep.mubr.msk.f32.mxu0 %vm89_vm0, %v14671_v36  ;;  %v2319_v36 = vld [vmem:[%s17074_s3] sm:$0xff] }
 0x157   :  { %12381 = vmatmul.mubr.msk.f32.gmra.mrb[8].mxu0 %vm89_vm0, %v14684_v39  ;;  %v2320_v39 = vld [vmem:[%s17074_s3 + $0x8] sm:$0xff] }
 0x158   :  { %12383 = vmatprep.mubr.msk.f32.mxu0 %vm89_vm0, %v14687_v40  ;;  %v13470_v40 = vpack.c.bf16 %v2320_v39, %v2319_v36  ;;  %v15335_v36 = vld [vmem:[#allocation3] sm:$0xff] }
 0x15b   :  { %12384 = vmatmul.mubr.msk.f32.gmra.mrb[10].mxu0 %vm89_vm0, %v14693_v41  ;;  %v10791_v41 = vld [vmem:[%s17074_s3 + $0x40] sm:$0xff] }
 0x15c   :  { %12386 = vmatprep.mubr.msk.f32.mxu0 %vm89_vm0, %v14695_v42  ;;  %v10792_v42 = vld [vmem:[%s17074_s3 + $0x48] sm:$0xff] }
 0x15f   :  { %12387 = vmatmul.mubr.msk.f32.gmra.mrb[12].mxu0 %vm89_vm0, %v14701_v43  ;;  %v15196_v43 = vpack.c.bf16 %v10792_v42, %v10791_v41  ;;  %v10773_v41 = vld [vmem:[%s17074_s3 + $0x30] sm:$0xff]  ;;  %v10774_v42 = vld [vmem:[%s17074_s3 + $0x38] sm:$0xff] }
 0x160   :  { %12389 = vmatprep.mubr.msk.f32.mxu0 %vm89_vm0, %v14936_v45 }
 0x161   :  { %13610 = vmatprep.subr.bf16.mxu1 %v15196_v43 }
 0x162   :  { %13611 = vmatpush3.bf16.msra.mxu1 %v15196_v43 }
 0x163   :  { %12390 = vmatmul.mubr.msk.f32.gmra.mrb[14].mxu0 %vm89_vm0, %v1814_v29  ;;  %13487 = vmatprep.subr.bf16.mxu1 %v15206_v60 }
 0x164   :  { %12398 = vmatprep.mubr.msk.f32.mxu0 %vm89_vm0, %v14777_v3 }
 0x167   :  { %12399 = vmatmul.mubr.msk.f32.vlgmr.msra.gmra.mrb[0].mxu0 %vm89_vm0, %v14792_v7 }
 0x168   :  { %12401 = vmatprep.mubr.msk.f32.mxu0 %vm89_vm0, %v14794_v8  ;;  %13469 = vmatpush3.bf16.msra.mxu0 %v13466_v27  ;;  %v10755_v8 = vld [vmem:[%s17074_s3 + $0x20] sm:$0xff] }
 0x169   :  { %13471 = vmatprep.subr.bf16.mxu0 %v13470_v40  ;;  %v15230_v14 = vpack.c.bf16 %v10756_v9, %v10755_v8 }
 0x16b   :  { %12402 = vmatmul.mubr.msk.f32.gmra.mrb[2].mxu0 %vm89_vm0, %v14801_v10 }
 0x16c   :  { %12404 = vmatprep.mubr.msk.f32.mxu0 %vm89_vm0, %v14804_v11 }
 0x16f   :  { %12405 = vmatmul.mubr.msk.f32.gmra.mrb[4].mxu0 %vm89_vm0, %v14810_v12 }
 0x170   :  { %12407 = vmatprep.mubr.msk.f32.mxu0 %vm89_vm0, %v15046_v49  ;;  %v15280_v49 = vpack.c.bf16 %v10828_v44, %v10827_v24 }
 0x173   :  { %12408 = vmatmul.mubr.msk.f32.gmra.mrb[6].mxu0 %vm89_vm0, %v2038_v31 }
 0x174   :  { %12410 = vmatprep.mubr.msk.f32.mxu0 %vm89_vm0, %v14817_v15 }
 0x177   :  { %12411 = vmatmul.mubr.msk.f32.gmra.mrb[8].mxu0 %vm89_vm0, %v14823_v16 }
 0x178   :  { %12413 = vmatprep.mubr.msk.f32.mxu0 %vm89_vm0, %v14825_v17 }
 0x17b   :  { %12414 = vmatmul.mubr.msk.f32.gmra.mrb[10].mxu0 %vm89_vm0, %v14831_v18 }
 0x17c   :  { %12416 = vmatprep.mubr.msk.f32.mxu0 %vm89_vm0, %v14833_v19 }
 0x17f   :  { %12417 = vmatmul.mubr.msk.f32.gmra.mrb[12].mxu0 %vm89_vm0, %v14839_v20 }
 0x180   :  { %12419 = vmatprep.mubr.msk.f32.mxu0 %vm89_vm0, %v15064_v52 }
 0x183   :  { %12420 = vmatmul.mubr.msk.f32.gmra.mrb[14].mxu0 %vm89_vm0, %v2046_v32 }
 0x184   :  { %12426 = vmatprep.mubr.msk.f32.mxu0 %vm131_vm3, %v15180_v33 }
 0x23a   :  { %v12400_v62 = vpop.f32.mrb[0].mxu0 }
 0x23b   :  { %v2271_v63 = vadd.f32 %v12400_v62, %v15212_v61  ;;  %v2168_v2 = vpop.f32.mrb[1].mxu0  ;;  %v15367_v62 = vpack.c.bf16 %v10774_v42, %v10773_v41  ;;  %v15562_v41 = vld [vmem:[#allocation3 + $0x130] sm:$0xff] }
 0x23c   :  { %v2270_v3 = vadd.f32 %v15212_v61, %v2168_v2 }
 0x23d   :  { %2288 = vst.msk [vmem:[#allocation3 + $0x21] sm:$0xff] %vm131_vm3, %v2271_v63 }
 0x23e   :  { %2287 = vst.msk [vmem:[#allocation3 + $0x11] sm:$0xff] %vm131_vm3, %v2270_v3  ;;  %v12403_v4 = vpop.f32.mrb[2].mxu0 }
 0x23f   :  { %v2273_v5 = vadd.f32 %v12403_v4, %v15212_v61  ;;  %v2178_v6 = vpop.f32.mrb[3].mxu0 }
 0x240   :  { %v2272_v7 = vadd.f32 %v15212_v61, %v2178_v6 }
 0x241   :  { %2290 = vst.msk [vmem:[#allocation3 + $0x41] sm:$0xff] %vm131_vm3, %v2273_v5 }
 0x242   :  { %2289 = vst.msk [vmem:[#allocation3 + $0x31] sm:$0xff] %vm131_vm3, %v2272_v7  ;;  %v12406_v10 = vpop.f32.mrb[4].mxu0 }
 0x243   :  { %v2275_v11 = vadd.f32 %v12406_v10, %v15212_v61  ;;  %v2188_v12 = vpop.f32.mrb[5].mxu0 }
 0x244   :  { %v2274_v13 = vadd.f32 %v15212_v61, %v2188_v12  ;;  %v15238_v17 = vld [vmem:[#allocation3 + $0x21] sm:$0xff] }
 0x245   :  { %2292 = vst.msk [vmem:[#allocation3 + $0x61] sm:$0xff] %vm131_vm3, %v2275_v11  ;;  %v15233_v15 = vld [vmem:[#allocation3 + $0x11] sm:$0xff]  ;;  %v15371_v63 = vld [vmem:[#allocation3 + $0x20] sm:$0xff] }
 0x246   :  { %2291 = vst.msk [vmem:[#allocation3 + $0x51] sm:$0xff] %vm131_vm3, %v2274_v13  ;;  %v12409_v16 = vpop.f32.mrb[6].mxu0  ;;  %12427 = vmatmul.mubr.msk.f32.vlgmr.msra.gmra.mrb[16].mxu0 %vm131_vm3, %v15233_v15  ;;  %v15353_v58 = vld [vmem:[#allocation3 + $0x12] sm:$0xff]  ;;  %v15373_v2 = vld [vmem:[#allocation3 + $0x22] sm:$0xff] }
 0x247   :  { %v2277_v18 = vadd.f32 %v12409_v16, %v15212_v61  ;;  %v2198_v19 = vpop.f32.mrb[7].mxu0  ;;  %12429 = vmatprep.mubr.msk.f32.mxu0 %vm131_vm3, %v15238_v17  ;;  %13473 = vmatpush3.bf16.msra.mxu0 %v13470_v40  ;;  %v15421_v13 = vld [vmem:[#allocation3 + $0xa0] sm:$0xff] }
 0x248   :  { %v2276_v20 = vadd.f32 %v15212_v61, %v2198_v19  ;;  %13475 = vmatprep.subr.bf16.mxu0 %v15230_v14  ;;  %v15251_v23 = vld [vmem:[#allocation3 + $0x41] sm:$0xff] }
 0x249   :  { %2294 = vst.msk [vmem:[#allocation3 + $0x81] sm:$0xff] %vm131_vm3, %v2277_v18  ;;  %v15246_v21 = vld [vmem:[#allocation3 + $0x31] sm:$0xff]  ;;  %v15392_v6 = vld [vmem:[#allocation3 + $0x40] sm:$0xff] }
 0x24a   :  { %2293 = vst.msk [vmem:[#allocation3 + $0x71] sm:$0xff] %vm131_vm3, %v2276_v20  ;;  %v12412_v22 = vpop.f32.mrb[8].mxu0  ;;  %12430 = vmatmul.mubr.msk.f32.gmra.mrb[18].mxu0 %vm131_vm3, %v15246_v21  ;;  %v15381_v4 = vld [vmem:[#allocation3 + $0x32] sm:$0xff]  ;;  %v15394_v7 = vld [vmem:[#allocation3 + $0x42] sm:$0xff] }
 0x24b   :  { %v2279_v25 = vadd.f32 %v12412_v22, %v15212_v61  ;;  %v2208_v26 = vpop.f32.mrb[9].mxu0  ;;  %12432 = vmatprep.mubr.msk.f32.mxu0 %vm131_vm3, %v15251_v23  ;;  %v15387_v5 = vld [vmem:[#allocation3 + $0x30] sm:$0xff] }
 0x24c   :  { %v2278_v30 = vadd.f32 %v15212_v61, %v2208_v26  ;;  %v15263_v38 = vld [vmem:[#allocation3 + $0x61] sm:$0xff] }
 0x24d   :  { %2296 = vst.msk [vmem:[#allocation3 + $0xc1] sm:$0xff] %vm131_vm3, %v2279_v25  ;;  %v15258_v34 = vld [vmem:[#allocation3 + $0x51] sm:$0xff]  ;;  %v15409_v10 = vld [vmem:[#allocation3 + $0x60] sm:$0xff] }
 0x24e   :  { %2295 = vst.msk [vmem:[#allocation3 + $0xb1] sm:$0xff] %vm131_vm3, %v2278_v30  ;;  %v12415_v37 = vpop.f32.mrb[10].mxu0  ;;  %12433 = vmatmul.mubr.msk.f32.gmra.mrb[20].mxu0 %vm131_vm3, %v15258_v34  ;;  %v15401_v8 = vld [vmem:[#allocation3 + $0x52] sm:$0xff]  ;;  %v15411_v11 = vld [vmem:[#allocation3 + $0x62] sm:$0xff] }
 0x24f   :  { %v2281_v45 = vadd.f32 %v12415_v37, %v15212_v61  ;;  %v2218_v35 = vpop.f32.mrb[11].mxu0  ;;  %12435 = vmatprep.mubr.msk.f32.mxu0 %vm131_vm3, %v15263_v38  ;;  %v15405_v9 = vld [vmem:[#allocation3 + $0x50] sm:$0xff] }
 0x250   :  { %v2280_v47 = vadd.f32 %v15212_v61, %v2218_v35  ;;  %v15287_v56 = vld [vmem:[#allocation3 + $0x81] sm:$0xff] }
 0x251   :  { %2298 = vst.msk [vmem:[#allocation3 + $0xe1] sm:$0xff] %vm131_vm3, %v2281_v45  ;;  %v15278_v0 = vld [vmem:[#allocation3 + $0x71] sm:$0xff]  ;;  %v15427_v16 = vld [vmem:[#allocation3 + $0x82] sm:$0xff] }
 0x252   :  { %2297 = vst.msk [vmem:[#allocation3 + $0xd1] sm:$0xff] %vm131_vm3, %v2280_v47  ;;  %v12418_v52 = vpop.f32.mrb[12].mxu0  ;;  %12436 = vmatmul.mubr.msk.f32.gmra.mrb[22].mxu0 %vm131_vm3, %v15278_v0  ;;  %12547 = vmatprep.mubr.msk.f32.mxu1 %vm131_vm3, %v15278_v0  ;;  %v15417_v12 = vld [vmem:[#allocation3 + $0x72] sm:$0xff] }
 0x253   :  { %v2283_v57 = vadd.f32 %v12418_v52, %v15212_v61  ;;  %v2228_v1 = vpop.f32.mrb[13].mxu0  ;;  %12548 = vmatmul.mubr.msk.f32.vlgmr.msra.gmra.mrb[0].mxu1 %vm131_vm3, %v15287_v56  ;;  %12438 = vmatprep.mubr.msk.f32.mxu0 %vm131_vm3, %v15275_v48 }
 0x254   :  { %v2282_v46 = vadd.f32 %v15212_v61, %v2228_v1  ;;  %13489 = vmatpush3.bf16.msra.mxu1 %v15206_v60  ;;  %v15301_v53 = vld [vmem:[#allocation3 + $0xc1] sm:$0xff]  ;;  %v10846_v60 = vld [vmem:[%s17074_s3 + $0x78] sm:$0xff] }
 0x255   :  { %2300 = vst.msk [vmem:[#allocation3 + $0x101] sm:$0xff] %vm131_vm3, %v2283_v57  ;;  %v2330_v50 = vld [vmem:[#allocation3 + $0xb1] sm:$0xff]  ;;  %13491 = vmatprep.subr.bf16.mxu1 %v15280_v49  ;;  %v15375_v3 = vpack.c.bf16 %v10846_v60, %v10845_v59  ;;  %v15438_v20 = vld [vmem:[#allocation3 + $0xc0] sm:$0xff] }
 0x256   :  { %2299 = vst.msk [vmem:[#allocation3 + $0xf1] sm:$0xff] %vm131_vm3, %v2282_v46  ;;  %v12421_v51 = vpop.f32.mrb[14].mxu0  ;;  %12439 = vmatmul.mubr.msk.f32.gmra.mrb[24].mxu0 %vm131_vm3, %v2330_v50  ;;  %12550 = vmatprep.mubr.msk.f32.mxu1 %vm131_vm3, %v2330_v50  ;;  %v3418_v18 = vld [vmem:[#allocation3 + $0xb2] sm:$0xff]  ;;  %v15440_v22 = vld [vmem:[#allocation3 + $0xc2] sm:$0xff] }
 0x257   :  { %v2285_v54 = vadd.f32 %v12421_v51, %v15212_v61  ;;  %v2238_v55 = vpop.f32.mrb[15].mxu0  ;;  %12441 = vmatprep.mubr.msk.f32.mxu0 %vm131_vm3, %v15301_v53  ;;  %12551 = vmatmul.mubr.msk.f32.gmra.mrb[2].mxu1 %vm131_vm3, %v15301_v53  ;;  %v15434_v19 = vld [vmem:[#allocation3 + $0xb0] sm:$0xff]  ;;  %v10863_v1 = vld [vmem:[%s17074_s3 + $0x80] sm:$0xff]  ;;  %v10864_v46 = vld [vmem:[%s17074_s3 + $0x88] sm:$0xff] }
 0x258   :  { %v2284_v27 = vadd.f32 %v15212_v61, %v2238_v55  ;;  %v15317_v29 = vld [vmem:[#allocation3 + $0xe1] sm:$0xff]  ;;  %v15365_v61 = vld [vmem:[#allocation3 + $0x10] sm:$0xff]  ;;  %v13498_v50 = vpack.c.bf16 %v10864_v46, %v10863_v1 }
 0x259   :  { %2302 = vst.msk [vmem:[#allocation3 + $0x121] sm:$0xff] %vm131_vm3, %v2285_v54  ;;  %v15310_v28 = vld [vmem:[#allocation3 + $0xd1] sm:$0xff]  ;;  %v15454_v30 = vld [vmem:[#allocation3 + $0xe0] sm:$0xff] }
 0x25a   :  { %2301 = vst.msk [vmem:[#allocation3 + $0x111] sm:$0xff] %vm131_vm3, %v2284_v27  ;;  %12442 = vmatmul.mubr.msk.f32.gmra.mrb[26].mxu0 %vm131_vm3, %v15310_v28  ;;  %12553 = vmatprep.mubr.msk.f32.mxu1 %vm131_vm3, %v15310_v28  ;;  %v15446_v25 = vld [vmem:[#allocation3 + $0xd2] sm:$0xff]  ;;  %v15456_v37 = vld [vmem:[#allocation3 + $0xe2] sm:$0xff] }
 0x25b   :  { %12444 = vmatprep.mubr.msk.f32.mxu0 %vm131_vm3, %v15317_v29  ;;  %12554 = vmatmul.mubr.msk.f32.gmra.mrb[4].mxu1 %vm131_vm3, %v15317_v29  ;;  %v15450_v26 = vld [vmem:[#allocation3 + $0xd0] sm:$0xff]  ;;  %v3645_v51 = vld [vmem:[#allocation3 + $0x80] sm:$0xff] }
 0x25c   :  { %v15329_v32 = vld [vmem:[#allocation3 + $0x101] sm:$0xff]  ;;  %v15528_v54 = vld [vmem:[#allocation3 + $0x90] sm:$0xff] }
 0x25d   :  { %v15323_v31 = vld [vmem:[#allocation3 + $0xf1] sm:$0xff]  ;;  %v15470_v45 = vld [vmem:[#allocation3 + $0x100] sm:$0xff] }
 0x25e   :  { %12445 = vmatmul.mubr.msk.f32.gmra.mrb[28].mxu0 %vm131_vm3, %v15323_v31  ;;  %12556 = vmatprep.mubr.msk.f32.mxu1 %vm131_vm3, %v15323_v31  ;;  %v15462_v24 = vld [vmem:[#allocation3 + $0xf2] sm:$0xff]  ;;  %v15472_v35 = vld [vmem:[#allocation3 + $0x102] sm:$0xff] }
 0x25f   :  { %12447 = vmatprep.mubr.msk.f32.mxu0 %vm131_vm3, %v15329_v32  ;;  %12557 = vmatmul.mubr.msk.f32.gmra.mrb[6].mxu1 %vm131_vm3, %v15329_v32  ;;  %v15466_v44 = vld [vmem:[#allocation3 + $0xf0] sm:$0xff]  ;;  %v15530_v55 = vld [vmem:[#allocation3 + $0xa2] sm:$0xff] }
 0x260   :  { %v15343_v40 = vld [vmem:[#allocation3 + $0x121] sm:$0xff] }
 0x261   :  { %v15337_v39 = vld [vmem:[#allocation3 + $0x111] sm:$0xff]  ;;  %v15488_v57 = vld [vmem:[#allocation3 + $0x122] sm:$0xff] }
 0x262   :  { %12448 = vmatmul.mubr.msk.f32.gmra.mrb[30].mxu0 %vm131_vm3, %v15337_v39  ;;  %12559 = vmatprep.mubr.msk.f32.mxu1 %vm131_vm3, %v15337_v39  ;;  %v15478_v47 = vld [vmem:[#allocation3 + $0x112] sm:$0xff]  ;;  %v3653_v27 = vld [vmem:[#allocation3 + $0x120] sm:$0xff] }
 0x263   :  { %12560 = vmatmul.mubr.msk.f32.gmra.mrb[8].mxu1 %vm131_vm3, %v15343_v40  ;;  %12454 = vmatprep.mubr.msk.f32.mxu0 %vm131_vm3, %v15335_v36  ;;  %v15484_v52 = vld [vmem:[#allocation3 + $0x110] sm:$0xff] }
 0x264   :  { %12566 = vmatprep.mubr.msk.f32.mxu1 %vm131_vm3, %v15353_v58 }
 0x266   :  { %12455 = vmatmul.mubr.msk.f32.vlgmr.msra.gmra.mrb[16].mxu0 %vm131_vm3, %v15365_v61 }
 0x267   :  { %12457 = vmatprep.mubr.msk.f32.mxu0 %vm131_vm3, %v15371_v63  ;;  %12567 = vmatmul.mubr.msk.f32.vlgmr.msra.gmra.mrb[10].mxu1 %vm131_vm3, %v15373_v2 }
 0x268   :  { %13477 = vmatpush3.bf16.msra.mxu0 %v15230_v14  ;;  %12569 = vmatprep.mubr.msk.f32.mxu1 %vm131_vm3, %v15381_v4  ;;  %v15423_v14 = vld [vmem:[#allocation3 + $0x70] sm:$0xff] }
 0x269   :  { %13493 = vmatpush3.bf16.msra.mxu1 %v15280_v49  ;;  %13479 = vmatprep.subr.bf16.mxu0 %v15367_v62  ;;  %v15482_v49 = vld [vmem:[#allocation3 + $0x2] sm:$0xff] }
 0x26a   :  { %12458 = vmatmul.mubr.msk.f32.gmra.mrb[18].mxu0 %vm131_vm3, %v15387_v5  ;;  %13495 = vmatprep.subr.bf16.mxu1 %v15375_v3 }
 0x26b   :  { %12460 = vmatprep.mubr.msk.f32.mxu0 %vm131_vm3, %v15392_v6  ;;  %12570 = vmatmul.mubr.msk.f32.gmra.mrb[12].mxu1 %vm131_vm3, %v15394_v7 }
 0x26c   :  { %12572 = vmatprep.mubr.msk.f32.mxu1 %vm131_vm3, %v15401_v8 }
 0x26e   :  { %12461 = vmatmul.mubr.msk.f32.gmra.mrb[20].mxu0 %vm131_vm3, %v15405_v9 }
 0x26f   :  { %12463 = vmatprep.mubr.msk.f32.mxu0 %vm131_vm3, %v15409_v10  ;;  %12573 = vmatmul.mubr.msk.f32.gmra.mrb[14].mxu1 %vm131_vm3, %v15411_v11 }
 0x270   :  { %12575 = vmatprep.mubr.msk.f32.mxu1 %vm131_vm3, %v15417_v12 }
 0x272   :  { %12464 = vmatmul.mubr.msk.f32.gmra.mrb[22].mxu0 %vm131_vm3, %v15423_v14 }
 0x273   :  { %12576 = vmatmul.mubr.msk.f32.gmra.mrb[0].mxu1 %vm131_vm3, %v15427_v16  ;;  %12466 = vmatprep.mubr.msk.f32.mxu0 %vm131_vm3, %v15421_v13 }
 0x274   :  { %12578 = vmatprep.mubr.msk.f32.mxu1 %vm131_vm3, %v3418_v18 }
 0x276   :  { %12467 = vmatmul.mubr.msk.f32.gmra.mrb[24].mxu0 %vm131_vm3, %v15434_v19 }
 0x277   :  { %12469 = vmatprep.mubr.msk.f32.mxu0 %vm131_vm3, %v15438_v20  ;;  %12579 = vmatmul.mubr.msk.f32.gmra.mrb[2].mxu1 %vm131_vm3, %v15440_v22 }
 0x278   :  { %12581 = vmatprep.mubr.msk.f32.mxu1 %vm131_vm3, %v15446_v25 }
 0x27a   :  { %12470 = vmatmul.mubr.msk.f32.gmra.mrb[26].mxu0 %vm131_vm3, %v15450_v26 }
 0x27b   :  { %12472 = vmatprep.mubr.msk.f32.mxu0 %vm131_vm3, %v15454_v30  ;;  %12582 = vmatmul.mubr.msk.f32.gmra.mrb[4].mxu1 %vm131_vm3, %v15456_v37 }
 0x27c   :  { %12584 = vmatprep.mubr.msk.f32.mxu1 %vm131_vm3, %v15462_v24 }
 0x27e   :  { %12473 = vmatmul.mubr.msk.f32.gmra.mrb[28].mxu0 %vm131_vm3, %v15466_v44 }
 0x27f   :  { %12475 = vmatprep.mubr.msk.f32.mxu0 %vm131_vm3, %v15470_v45  ;;  %12585 = vmatmul.mubr.msk.f32.gmra.mrb[6].mxu1 %vm131_vm3, %v15472_v35 }
 0x280   :  { %12587 = vmatprep.mubr.msk.f32.mxu1 %vm131_vm3, %v15478_v47 }
 0x282   :  { %12476 = vmatmul.mubr.msk.f32.gmra.mrb[30].mxu0 %vm131_vm3, %v15484_v52 }
 0x283   :  { %12588 = vmatmul.mubr.msk.f32.gmra.mrb[8].mxu1 %vm131_vm3, %v15488_v57  ;;  %12482 = vmatprep.mubr.msk.f32.mxu0 %vm131_vm3, %v15482_v49 }
 0x284   :  { %12594 = vmatprep.mubr.msk.f32.mxu1 %vm131_vm3, %v15371_v63 }
 0x286   :  { %12483 = vmatmul.mubr.msk.f32.vlgmr.msra.gmra.mrb[16].mxu0 %vm131_vm3, %v15353_v58 }
 0x287   :  { %12485 = vmatprep.mubr.msk.f32.mxu0 %vm131_vm3, %v15373_v2  ;;  %12595 = vmatmul.mubr.msk.f32.vlgmr.msra.gmra.mrb[10].mxu1 %vm131_vm3, %v15387_v5 }
 0x288   :  { %13481 = vmatpush3.bf16.msra.mxu0 %v15367_v62  ;;  %12597 = vmatprep.mubr.msk.f32.mxu1 %vm131_vm3, %v15392_v6 }
 0x289   :  { %13497 = vmatpush3.bf16.msra.mxu1 %v15375_v3  ;;  %13483 = vmatprep.subr.bf16.mxu0 %v15196_v43 }
 0x28a   :  { %12486 = vmatmul.mubr.msk.f32.gmra.mrb[18].mxu0 %vm131_vm3, %v15381_v4  ;;  %13499 = vmatprep.subr.bf16.mxu1 %v13498_v50 }
 0x28b   :  { %12488 = vmatprep.mubr.msk.f32.mxu0 %vm131_vm3, %v15394_v7  ;;  %12598 = vmatmul.mubr.msk.f32.gmra.mrb[12].mxu1 %vm131_vm3, %v15405_v9 }
 0x28c   :  { %12600 = vmatprep.mubr.msk.f32.mxu1 %vm131_vm3, %v15409_v10 }
 0x28e   :  { %12489 = vmatmul.mubr.msk.f32.gmra.mrb[20].mxu0 %vm131_vm3, %v15401_v8 }
 0x28f   :  { %12491 = vmatprep.mubr.msk.f32.mxu0 %vm131_vm3, %v15411_v11  ;;  %12601 = vmatmul.mubr.msk.f32.gmra.mrb[14].mxu1 %vm131_vm3, %v15423_v14 }
 0x290   :  { %12603 = vmatprep.mubr.msk.f32.mxu1 %vm131_vm3, %v3645_v51 }
 0x292   :  { %12492 = vmatmul.mubr.msk.f32.gmra.mrb[22].mxu0 %vm131_vm3, %v15417_v12 }
 0x293   :  { %12604 = vmatmul.mubr.msk.f32.gmra.mrb[0].mxu1 %vm131_vm3, %v15528_v54  ;;  %12494 = vmatprep.mubr.msk.f32.mxu0 %vm131_vm3, %v15530_v55 }
 0x294   :  { %12606 = vmatprep.mubr.msk.f32.mxu1 %vm131_vm3, %v15438_v20 }
 0x296   :  { %12495 = vmatmul.mubr.msk.f32.gmra.mrb[24].mxu0 %vm131_vm3, %v3418_v18 }
 0x297   :  { %12497 = vmatprep.mubr.msk.f32.mxu0 %vm131_vm3, %v15440_v22  ;;  %12607 = vmatmul.mubr.msk.f32.gmra.mrb[2].mxu1 %vm131_vm3, %v15450_v26 }
 0x298   :  { %12609 = vmatprep.mubr.msk.f32.mxu1 %vm131_vm3, %v15454_v30 }
 0x29a   :  { %12498 = vmatmul.mubr.msk.f32.gmra.mrb[26].mxu0 %vm131_vm3, %v15446_v25 }
 0x29b   :  { %12500 = vmatprep.mubr.msk.f32.mxu0 %vm131_vm3, %v15456_v37  ;;  %12610 = vmatmul.mubr.msk.f32.gmra.mrb[4].mxu1 %vm131_vm3, %v15466_v44 }
 0x29c   :  { %12612 = vmatprep.mubr.msk.f32.mxu1 %vm131_vm3, %v15470_v45 }
 0x29e   :  { %12501 = vmatmul.mubr.msk.f32.gmra.mrb[28].mxu0 %vm131_vm3, %v15462_v24 }
 0x29f   :  { %12503 = vmatprep.mubr.msk.f32.mxu0 %vm131_vm3, %v15472_v35  ;;  %12613 = vmatmul.mubr.msk.f32.gmra.mrb[6].mxu1 %vm131_vm3, %v15484_v52 }
 0x2a0   :  { %12615 = vmatprep.mubr.msk.f32.mxu1 %vm131_vm3, %v3653_v27 }
 0x2a2   :  { %12504 = vmatmul.mubr.msk.f32.gmra.mrb[30].mxu0 %vm131_vm3, %v15478_v47 }
 0x2a3   :  { %12510 = vmatprep.mubr.msk.f32.mxu0 %vm131_vm3, %v15365_v61  ;;  %12616 = vmatmul.mubr.msk.f32.gmra.mrb[8].mxu1 %vm131_vm3, %v15562_v41 }
 0x2a4   :  { %12622 = vmatprep.mubr.msk.f32.mxu1 %vm131_vm3, %v15238_v17 }
 0x2a6   :  { %12511 = vmatmul.mubr.msk.f32.vlgmr.msra.gmra.mrb[16].mxu0 %vm131_vm3, %v15371_v63  ;;  %v15712_v63 = vld [vmem:[%s17075_s4] ss:$0 sm:$0xff] }
 0x2a7   :  { %12513 = vmatprep.mubr.msk.f32.mxu0 %vm131_vm3, %v15387_v5  ;;  %12623 = vmatmul.mubr.msk.f32.vlgmr.msra.gmra.mrb[10].mxu1 %vm131_vm3, %v15246_v21 }
 0x2a8   :  { %13485 = vmatpush3.bf16.msra.mxu0 %v15196_v43  ;;  %12625 = vmatprep.mubr.msk.f32.mxu1 %vm131_vm3, %v15251_v23  ;;  %v15597_v43 = vld [vmem:[#allocation3 + $0x91] sm:$0xff] }
 0x2a9   :  { %13501 = vmatpush3.bf16.msra.mxu1 %v13498_v50 }
 0x2aa   :  { %12514 = vmatmul.mubr.msk.f32.gmra.mrb[18].mxu0 %vm131_vm3, %v15392_v6 }
 0x2ab   :  { %12516 = vmatprep.mubr.msk.f32.mxu0 %vm131_vm3, %v15405_v9  ;;  %12626 = vmatmul.mubr.msk.f32.gmra.mrb[12].mxu1 %vm131_vm3, %v15258_v34 }
 0x2ac   :  { %12628 = vmatprep.mubr.msk.f32.mxu1 %vm131_vm3, %v15263_v38 }
 0x2ae   :  { %12517 = vmatmul.mubr.msk.f32.gmra.mrb[20].mxu0 %vm131_vm3, %v15409_v10 }
 0x2af   :  { %12519 = vmatprep.mubr.msk.f32.mxu0 %vm131_vm3, %v15423_v14  ;;  %12629 = vmatmul.mubr.msk.f32.gmra.mrb[14].mxu1 %vm131_vm3, %v15278_v0  ;;  %v15630_v0 = vld [vmem:[#allocation3 + $0x131] sm:$0xff] }
 0x2b0   :  { %12631 = vmatprep.mubr.msk.f32.mxu1 %vm131_vm3, %v15287_v56  ;;  %v4379_v56 = vld [vmem:[%s17076_s5 + $0x8] sm:$0xff] }
 0x2b2   :  { %12520 = vmatmul.mubr.msk.f32.gmra.mrb[22].mxu0 %vm131_vm3, %v3645_v51 }
 0x2b3   :  { %12522 = vmatprep.mubr.msk.f32.mxu0 %vm131_vm3, %v15434_v19  ;;  %12632 = vmatmul.mubr.msk.f32.gmra.mrb[0].mxu1 %vm131_vm3, %v15597_v43 }
 0x2b4   :  { %12634 = vmatprep.mubr.msk.f32.mxu1 %vm131_vm3, %v15301_v53 }
 0x2b6   :  { %12523 = vmatmul.mubr.msk.f32.gmra.mrb[24].mxu0 %vm131_vm3, %v15438_v20 }
 0x2b7   :  { %12525 = vmatprep.mubr.msk.f32.mxu0 %vm131_vm3, %v15450_v26  ;;  %12635 = vmatmul.mubr.msk.f32.gmra.mrb[2].mxu1 %vm131_vm3, %v15310_v28  ;;  %v10916_v26 = vld [vmem:[%s17076_s5 + $0x20] sm:$0xff] }
 0x2b8   :  { %12637 = vmatprep.mubr.msk.f32.mxu1 %vm131_vm3, %v15317_v29 }
 0x2ba   :  { %12526 = vmatmul.mubr.msk.f32.gmra.mrb[26].mxu0 %vm131_vm3, %v15454_v30  ;;  %v10917_v30 = vld [vmem:[%s17076_s5 + $0x28] sm:$0xff] }
 0x2bb   :  { %12528 = vmatprep.mubr.msk.f32.mxu0 %vm131_vm3, %v15466_v44  ;;  %12638 = vmatmul.mubr.msk.f32.gmra.mrb[4].mxu1 %vm131_vm3, %v15323_v31 }
 0x2bc   :  { %12640 = vmatprep.mubr.msk.f32.mxu1 %vm131_vm3, %v15329_v32 }
 0x2be   :  { %12529 = vmatmul.mubr.msk.f32.gmra.mrb[28].mxu0 %vm131_vm3, %v15470_v45 }
 0x2bf   :  { %12531 = vmatprep.mubr.msk.f32.mxu0 %vm131_vm3, %v15484_v52  ;;  %12641 = vmatmul.mubr.msk.f32.gmra.mrb[6].mxu1 %vm131_vm3, %v15337_v39 }
 0x2c0   :  { %12643 = vmatprep.mubr.msk.f32.mxu1 %vm131_vm3, %v15343_v40 }
 0x2c2   :  { %12532 = vmatmul.mubr.msk.f32.gmra.mrb[30].mxu0 %vm131_vm3, %v3653_v27 }
 0x2c3   :  { %12538 = vmatprep.mubr.msk.f32.mxu0 %vm131_vm3, %v15233_v15  ;;  %12644 = vmatmul.mubr.msk.f32.gmra.mrb[8].mxu1 %vm131_vm3, %v15630_v0  ;;  %v15661_v15 = vld [vmem:[#allocation3 + $0x92] sm:$0xff] }
 0x2c4   :  { %12650 = vmatprep.mubr.msk.f32.mxu1 %vm131_vm3, %v15373_v2 }
 0x2c6   :  { %12539 = vmatmul.mubr.msk.f32.vlgmr.msra.gmra.mrb[16].mxu0 %vm131_vm3, %v15238_v17  ;;  %v15679_v17 = vld [vmem:[#allocation3 + $0x132] sm:$0xff] }
 0x2c7   :  { %12541 = vmatprep.mubr.msk.f32.mxu0 %vm131_vm3, %v15246_v21  ;;  %12651 = vmatmul.mubr.msk.f32.vlgmr.msra.gmra.mrb[10].mxu1 %vm131_vm3, %v15381_v4  ;;  %v10882_v21 = vld [vmem:[%s17076_s5 + $0x10] sm:$0xff] }
 0x2c8   :  { %12653 = vmatprep.mubr.msk.f32.mxu1 %vm131_vm3, %v15394_v7 }
 0x2ca   :  { %12542 = vmatmul.mubr.msk.f32.gmra.mrb[18].mxu0 %vm131_vm3, %v15251_v23  ;;  %v10883_v23 = vld [vmem:[%s17076_s5 + $0x18] sm:$0xff] }
 0x2cb   :  { %12544 = vmatprep.mubr.msk.f32.mxu0 %vm131_vm3, %v15258_v34  ;;  %12654 = vmatmul.mubr.msk.f32.gmra.mrb[12].mxu1 %vm131_vm3, %v15401_v8  ;;  %v13502_v34 = vpack.c.bf16 %v10883_v23, %v10882_v21 }
 0x2cc   :  { %12656 = vmatprep.mubr.msk.f32.mxu1 %vm131_vm3, %v15411_v11 }
 0x2cd   :  { %13503 = vmatprep.subr.bf16.mxu1 %v13502_v34 }
 0x2ce   :  { %12545 = vmatmul.mubr.msk.f32.gmra.mrb[20].mxu0 %vm131_vm3, %v15263_v38  ;;  %13505 = vmatpush3.bf16.msra.mxu1 %v13502_v34  ;;  %v4378_v38 = vld [vmem:[%s17076_s5] sm:$0xff] }
 0x2cf   :  { %12657 = vmatmul.mubr.msk.f32.gmra.mrb[14].mxu1 %vm131_vm3, %v15417_v12 }
 0x2d0   :  { %12659 = vmatprep.mubr.msk.f32.mxu1 %vm131_vm3, %v15427_v16 }
 0x2d3   :  { %12660 = vmatmul.mubr.msk.f32.gmra.mrb[0].mxu1 %vm131_vm3, %v15661_v15 }
 0x2d4   :  { %12662 = vmatprep.mubr.msk.f32.mxu1 %vm131_vm3, %v15440_v22 }
 0x2d7   :  { %12663 = vmatmul.mubr.msk.f32.gmra.mrb[2].mxu1 %vm131_vm3, %v15446_v25 }
 0x2d8   :  { %12665 = vmatprep.mubr.msk.f32.mxu1 %vm131_vm3, %v15456_v37 }
 0x2db   :  { %12666 = vmatmul.mubr.msk.f32.gmra.mrb[4].mxu1 %vm131_vm3, %v15462_v24 }
 0x2dc   :  { %12668 = vmatprep.mubr.msk.f32.mxu1 %vm131_vm3, %v15472_v35  ;;  %v15730_v35 = vpack.c.bf16 %v10917_v30, %v10916_v26 }
 0x2df   :  { %12669 = vmatmul.mubr.msk.f32.gmra.mrb[6].mxu1 %vm131_vm3, %v15478_v47 }
 0x2e0   :  { %12671 = vmatprep.mubr.msk.f32.mxu1 %vm131_vm3, %v15488_v57 }
 0x2e3   :  { %12672 = vmatmul.mubr.msk.f32.gmra.mrb[8].mxu1 %vm131_vm3, %v15679_v17 }
 0x2e4   :  { %12678 = vmatprep.mubr.msk.f32.mxu1 %vm131_vm3, %v15180_v33  ;;  %v13506_v33 = vpack.c.bf16 %v4379_v56, %v4378_v38 }
 0x2e6   :  { %13507 = vmatprep.subr.bf16.mxu1 %v13506_v33 }
 0x385   :  { %v12521_v53 = vpop.f32.mrb[22].mxu0 }
 0x386   :  { %v3117_v28 = vpop.f32.mrb[23].mxu0 }
 0x389   :  { %v12524_v29 = vpop.f32.mrb[24].mxu0 }
 0x38a   :  { %v3127_v31 = vpop.f32.mrb[25].mxu0 }
 0x38d   :  { %v15697_v32 = vpop.f32.mrb[26].mxu0 }
 0x38e   :  { %v15699_v39 = vpop.f32.mrb[27].mxu0 }
 0x391   :  { %v15701_v40 = vpop.f32.mrb[28].mxu0 }
 0x392   :  { %v15703_v42 = vpop.f32.mrb[29].mxu0 }
 0x395   :  { %v15705_v58 = vpop.f32.mrb[30].mxu0 }
 0x396   :  { %v15707_v59 = vpop.f32.mrb[31].mxu0 }
 0x399   :  { %v12540_v60 = vpop.f32.mrb[16].mxu0 }
 0x39a   :  { %v3315_v61 = vpop.f32.mrb[17].mxu0  ;;  %v12652_v62 = vpop.f32.mrb[10].mxu1 }
 0x39b   :  { %v13612_v2 = vadd.f32 %v12652_v62, %v12540_v60  ;;  %v4228_v3 = vpop.f32.mrb[11].mxu1 }
 0x39c   :  { %v13613_v4 = vadd.f32 %v4228_v3, %v3315_v61 }
 0x39d   :  { %v4331_v5 = vadd.f32 %v13612_v2, %v15712_v63  ;;  %v12543_v6 = vpop.f32.mrb[18].mxu0 }
 0x39e   :  { %v4330_v7 = vadd.f32 %v13613_v4, %v15712_v63  ;;  %v3325_v8 = vpop.f32.mrb[19].mxu0  ;;  %v12655_v9 = vpop.f32.mrb[12].mxu1 }
 0x39f   :  { %4347 = vst.msk [vmem:[#allocation3 + $0x21] sm:$0xff] %vm131_vm3, %v4331_v5  ;;  %v13614_v10 = vadd.f32 %v12655_v9, %v12543_v6  ;;  %v4238_v11 = vpop.f32.mrb[13].mxu1 }
 0x3a0   :  { %4346 = vst.msk [vmem:[#allocation3 + $0x11] sm:$0xff] %vm131_vm3, %v4330_v7  ;;  %v13615_v12 = vadd.f32 %v4238_v11, %v3325_v8 }
 0x3a1   :  { %v4333_v14 = vadd.f32 %v13614_v10, %v15712_v63  ;;  %v12546_v16 = vpop.f32.mrb[20].mxu0 }
 0x3a2   :  { %v4332_v18 = vadd.f32 %v13615_v12, %v15712_v63  ;;  %v3335_v19 = vpop.f32.mrb[21].mxu0  ;;  %v12658_v20 = vpop.f32.mrb[14].mxu1 }
 0x3a3   :  { %4349 = vst.msk [vmem:[#allocation3 + $0x41] sm:$0xff] %vm131_vm3, %v4333_v14  ;;  %v13616_v22 = vadd.f32 %v12658_v20, %v12546_v16  ;;  %v4248_v25 = vpop.f32.mrb[15].mxu1  ;;  %v10935_v20 = vld [vmem:[%s17076_s5 + $0x38] sm:$0xff] }
 0x3a4   :  { %4348 = vst.msk [vmem:[#allocation3 + $0x31] sm:$0xff] %vm131_vm3, %v4332_v18  ;;  %v13617_v37 = vadd.f32 %v4248_v25, %v3335_v19  ;;  %v10934_v19 = vld [vmem:[%s17076_s5 + $0x30] sm:$0xff] }
 0x3a5   :  { %v4335_v24 = vadd.f32 %v13616_v22, %v15712_v63  ;;  %v13514_v22 = vpack.c.bf16 %v10935_v20, %v10934_v19 }
 0x3a6   :  { %v4334_v44 = vadd.f32 %v13617_v37, %v15712_v63  ;;  %v12661_v45 = vpop.f32.mrb[0].mxu1  ;;  %v15738_v46 = vld [vmem:[#allocation3 + $0x21] sm:$0xff] }
 0x3a7   :  { %4351 = vst.msk [vmem:[#allocation3 + $0x61] sm:$0xff] %vm131_vm3, %v4335_v24  ;;  %v13618_v47 = vadd.f32 %v12661_v45, %v12521_v53  ;;  %v4258_v52 = vpop.f32.mrb[1].mxu1  ;;  %v15733_v57 = vld [vmem:[#allocation3 + $0x11] sm:$0xff]  ;;  %v15831_v26 = vld [vmem:[#allocation3 + $0x20] sm:$0xff] }
 0x3a8   :  { %4350 = vst.msk [vmem:[#allocation3 + $0x51] sm:$0xff] %vm131_vm3, %v4334_v44  ;;  %v13619_v1 = vadd.f32 %v4258_v52, %v3117_v28  ;;  %12679 = vmatmul.mubr.msk.f32.vlgmr.msra.gmra.mrb[16].mxu1 %vm131_vm3, %v15733_v57  ;;  %v15827_v25 = vld [vmem:[#allocation3 + $0x10] sm:$0xff] }
 0x3a9   :  { %v4337_v50 = vadd.f32 %v13618_v47, %v15712_v63  ;;  %12681 = vmatprep.mubr.msk.f32.mxu1 %vm131_vm3, %v15738_v46  ;;  %13509 = vmatpush3.bf16.msra.mxu1 %v13506_v33 }
 0x3aa   :  { %v4336_v51 = vadd.f32 %v13619_v1, %v15712_v63  ;;  %v12664_v27 = vpop.f32.mrb[2].mxu1  ;;  %13511 = vmatprep.subr.bf16.mxu1 %v15730_v35  ;;  %v15751_v56 = vld [vmem:[#allocation3 + $0x41] sm:$0xff] }
 0x3ab   :  { %4353 = vst.msk [vmem:[#allocation3 + $0x81] sm:$0xff] %vm131_vm3, %v4337_v50  ;;  %v13620_v21 = vadd.f32 %v12664_v27, %v12524_v29  ;;  %v4268_v23 = vpop.f32.mrb[3].mxu1  ;;  %v15746_v34 = vld [vmem:[#allocation3 + $0x31] sm:$0xff]  ;;  %v10953_v27 = vld [vmem:[%s17076_s5 + $0x48] sm:$0xff] }
 0x3ac   :  { %4352 = vst.msk [vmem:[#allocation3 + $0x71] sm:$0xff] %vm131_vm3, %v4336_v51  ;;  %v13621_v38 = vadd.f32 %v4268_v23, %v3127_v31  ;;  %12682 = vmatmul.mubr.msk.f32.gmra.mrb[18].mxu1 %vm131_vm3, %v15746_v34  ;;  %v15836_v30 = vld [vmem:[#allocation3 + $0x30] sm:$0xff]  ;;  %v10952_v51 = vld [vmem:[%s17076_s5 + $0x40] sm:$0xff] }
 0x3ad   :  { %v4339_v33 = vadd.f32 %v13620_v21, %v15712_v63  ;;  %12684 = vmatprep.mubr.msk.f32.mxu1 %vm131_vm3, %v15751_v56  ;;  %v13518_v21 = vpack.c.bf16 %v10953_v27, %v10952_v51  ;;  %v15894_v23 = vld [vmem:[#allocation3 + $0x12] sm:$0xff] }
 0x3ae   :  { %v4338_v53 = vadd.f32 %v13621_v38, %v15712_v63  ;;  %v12667_v28 = vpop.f32.mrb[4].mxu1  ;;  %v15765_v62 = vld [vmem:[#allocation3 + $0x61] sm:$0xff] }
 0x3af   :  { %4355 = vst.msk [vmem:[#allocation3 + $0xc1] sm:$0xff] %vm131_vm3, %v4339_v33  ;;  %v13622_v29 = vadd.f32 %v12667_v28, %v15697_v32  ;;  %v4278_v60 = vpop.f32.mrb[5].mxu1  ;;  %v15759_v61 = vld [vmem:[#allocation3 + $0x51] sm:$0xff]  ;;  %v15848_v24 = vld [vmem:[#allocation3 + $0x60] sm:$0xff] }
 0x3b0   :  { %4354 = vst.msk [vmem:[#allocation3 + $0xb1] sm:$0xff] %vm131_vm3, %v4338_v53  ;;  %v13623_v31 = vadd.f32 %v4278_v60, %v15699_v39  ;;  %12685 = vmatmul.mubr.msk.f32.gmra.mrb[20].mxu1 %vm131_vm3, %v15759_v61  ;;  %v15844_v37 = vld [vmem:[#allocation3 + $0x50] sm:$0xff]  ;;  %v15898_v38 = vld [vmem:[#allocation3 + $0x22] sm:$0xff] }
 0x3b1   :  { %v4341_v2 = vadd.f32 %v13622_v29, %v15712_v63  ;;  %12687 = vmatprep.mubr.msk.f32.mxu1 %vm131_vm3, %v15765_v62  ;;  %v15902_v33 = vld [vmem:[#allocation3 + $0x32] sm:$0xff]  ;;  %v15906_v53 = vld [vmem:[#allocation3 + $0x42] sm:$0xff] }
 0x3b2   :  { %v4340_v3 = vadd.f32 %v13623_v31, %v15712_v63  ;;  %v12670_v32 = vpop.f32.mrb[6].mxu1  ;;  %v15914_v28 = vld [vmem:[#allocation3 + $0x62] sm:$0xff] }
 0x3b3   :  { %4357 = vst.msk [vmem:[#allocation3 + $0xe1] sm:$0xff] %vm131_vm3, %v4341_v2  ;;  %v13624_v4 = vadd.f32 %v12670_v32, %v15701_v40  ;;  %v4288_v5 = vpop.f32.mrb[7].mxu1  ;;  %v15773_v6 = vld [vmem:[#allocation3 + $0x71] sm:$0xff]  ;;  %v5476_v20 = vld [vmem:[#allocation3 + $0x82] sm:$0xff] }
 0x3b4   :  { %4356 = vst.msk [vmem:[#allocation3 + $0xd1] sm:$0xff] %vm131_vm3, %v4340_v3  ;;  %v13625_v39 = vadd.f32 %v4288_v5, %v15703_v42  ;;  %12688 = vmatmul.mubr.msk.f32.gmra.mrb[22].mxu1 %vm131_vm3, %v15773_v6  ;;  %v15852_v44 = vld [vmem:[#allocation3 + $0x70] sm:$0xff] }
 0x3b5   :  { %v4343_v7 = vadd.f32 %v13624_v4, %v15712_v63  ;;  %12690 = vmatprep.mubr.msk.f32.mxu1 %vm131_vm3, %v15275_v48  ;;  %v15918_v29 = vld [vmem:[#allocation3 + $0x72] sm:$0xff] }
 0x3b6   :  { %v4342_v8 = vadd.f32 %v13625_v39, %v15712_v63  ;;  %v12673_v9 = vpop.f32.mrb[8].mxu1  ;;  %v15791_v12 = vld [vmem:[#allocation3 + $0xc1] sm:$0xff]  ;;  %v10970_v5 = vld [vmem:[%s17076_s5 + $0x50] sm:$0xff]  ;;  %v10971_v39 = vld [vmem:[%s17076_s5 + $0x58] sm:$0xff] }
 0x3b7   :  { %4359 = vst.msk [vmem:[#allocation3 + $0x101] sm:$0xff] %vm131_vm3, %v4343_v7  ;;  %v13626_v40 = vadd.f32 %v12673_v9, %v15705_v58  ;;  %v4298_v10 = vpop.f32.mrb[9].mxu1  ;;  %v15785_v11 = vld [vmem:[#allocation3 + $0xb1] sm:$0xff]  ;;  %v15928_v31 = vld [vmem:[#allocation3 + $0xc2] sm:$0xff]  ;;  %v13522_v7 = vpack.c.bf16 %v10971_v39, %v10970_v5 }
 0x3b8   :  { %4358 = vst.msk [vmem:[#allocation3 + $0xf1] sm:$0xff] %vm131_vm3, %v4342_v8  ;;  %v13627_v42 = vadd.f32 %v4298_v10, %v15707_v59  ;;  %12691 = vmatmul.mubr.msk.f32.gmra.mrb[24].mxu1 %vm131_vm3, %v15785_v11  ;;  %v15858_v45 = vld [vmem:[#allocation3 + $0xb0] sm:$0xff]  ;;  %v15972_v8 = vld [vmem:[#allocation3 + $0x80] sm:$0xff]  ;;  %v10989_v10 = vld [vmem:[%s17076_s5 + $0x68] sm:$0xff] }
 0x3b9   :  { %v4345_v48 = vadd.f32 %v13626_v40, %v15712_v63  ;;  %12693 = vmatprep.mubr.msk.f32.mxu1 %vm131_vm3, %v15791_v12  ;;  %v15924_v60 = vld [vmem:[#allocation3 + $0xb2] sm:$0xff]  ;;  %v10988_v40 = vld [vmem:[%s17076_s5 + $0x60] sm:$0xff] }
 0x3ba   :  { %v4344_v14 = vadd.f32 %v13627_v42, %v15712_v63  ;;  %v15803_v59 = vld [vmem:[#allocation3 + $0xe1] sm:$0xff]  ;;  %v13526_v42 = vpack.c.bf16 %v10989_v10, %v10988_v40 }
 0x3bb   :  { %4361 = vst.msk [vmem:[#allocation3 + $0x121] sm:$0xff] %vm131_vm3, %v4345_v48  ;;  %v15798_v58 = vld [vmem:[#allocation3 + $0xd1] sm:$0xff]  ;;  %v15870_v52 = vld [vmem:[#allocation3 + $0xe0] sm:$0xff] }
 0x3bc   :  { %4360 = vst.msk [vmem:[#allocation3 + $0x111] sm:$0xff] %vm131_vm3, %v4344_v14  ;;  %12694 = vmatmul.mubr.msk.f32.gmra.mrb[26].mxu1 %vm131_vm3, %v15798_v58  ;;  %v15866_v47 = vld [vmem:[#allocation3 + $0xd0] sm:$0xff]  ;;  %v15936_v3 = vld [vmem:[#allocation3 + $0xe2] sm:$0xff]  ;;  %v11007_v14 = vld [vmem:[%s17076_s5 + $0x78] sm:$0xff] }
 0x3bd   :  { %12696 = vmatprep.mubr.msk.f32.mxu1 %vm131_vm3, %v15803_v59  ;;  %v15932_v2 = vld [vmem:[#allocation3 + $0xd2] sm:$0xff] }
 0x3be   :  { %v15811_v63 = vld [vmem:[#allocation3 + $0x101] sm:$0xff] }
 0x3bf   :  { %v15807_v16 = vld [vmem:[#allocation3 + $0xf1] sm:$0xff]  ;;  %v15878_v1 = vld [vmem:[#allocation3 + $0x100] sm:$0xff] }
 0x3c0   :  { %12697 = vmatmul.mubr.msk.f32.gmra.mrb[28].mxu1 %vm131_vm3, %v15807_v16  ;;  %v15944_v32 = vld [vmem:[#allocation3 + $0x102] sm:$0xff] }
 0x3c1   :  { %12699 = vmatprep.mubr.msk.f32.mxu1 %vm131_vm3, %v15811_v63 }
 0x3c2   :  { %v15990_v9 = vld [vmem:[#allocation3 + $0x120] sm:$0xff] }
 0x3c3   :  { %v15815_v18 = vld [vmem:[#allocation3 + $0x111] sm:$0xff]  ;;  %v5256_v48 = vld [vmem:[#allocation3 + $0x121] sm:$0xff] }
 0x3c4   :  { %12700 = vmatmul.mubr.msk.f32.gmra.mrb[30].mxu1 %vm131_vm3, %v15815_v18  ;;  %v15882_v50 = vld [vmem:[#allocation3 + $0x110] sm:$0xff] }
 0x3c5   :  { %12706 = vmatprep.mubr.msk.f32.mxu1 %vm131_vm3, %v15335_v36  ;;  %v15840_v36 = vld [vmem:[#allocation3 + $0x40] sm:$0xff]  ;;  %v15948_v4 = vld [vmem:[#allocation3 + $0x112] sm:$0xff] }
 0x3c8   :  { %12707 = vmatmul.mubr.msk.f32.vlgmr.msra.gmra.mrb[16].mxu1 %vm131_vm3, %v15827_v25 }
 0x3c9   :  { %12709 = vmatprep.mubr.msk.f32.mxu1 %vm131_vm3, %v15831_v26  ;;  %13513 = vmatpush3.bf16.msra.mxu1 %v15730_v35  ;;  %v15862_v35 = vld [vmem:[#allocation3 + $0xc0] sm:$0xff] }
 0x3ca   :  { %13515 = vmatprep.subr.bf16.mxu1 %v13514_v22 }
 0x3cc   :  { %12710 = vmatmul.mubr.msk.f32.gmra.mrb[18].mxu1 %vm131_vm3, %v15836_v30 }
 0x3cd   :  { %12712 = vmatprep.mubr.msk.f32.mxu1 %vm131_vm3, %v15840_v36 }
 0x3d0   :  { %12713 = vmatmul.mubr.msk.f32.gmra.mrb[20].mxu1 %vm131_vm3, %v15844_v37 }
 0x3d1   :  { %12715 = vmatprep.mubr.msk.f32.mxu1 %vm131_vm3, %v15848_v24 }
 0x3d4   :  { %12716 = vmatmul.mubr.msk.f32.gmra.mrb[22].mxu1 %vm131_vm3, %v15852_v44 }
 0x3d5   :  { %12718 = vmatprep.mubr.msk.f32.mxu1 %vm131_vm3, %v15421_v13  ;;  %v15874_v13 = vld [vmem:[#allocation3 + $0xf0] sm:$0xff] }
 0x3d8   :  { %12719 = vmatmul.mubr.msk.f32.gmra.mrb[24].mxu1 %vm131_vm3, %v15858_v45 }
 0x3d9   :  { %12721 = vmatprep.mubr.msk.f32.mxu1 %vm131_vm3, %v15862_v35 }
 0x3dc   :  { %12722 = vmatmul.mubr.msk.f32.gmra.mrb[26].mxu1 %vm131_vm3, %v15866_v47 }
 0x3dd   :  { %12724 = vmatprep.mubr.msk.f32.mxu1 %vm131_vm3, %v15870_v52 }
 0x3e0   :  { %12725 = vmatmul.mubr.msk.f32.gmra.mrb[28].mxu1 %vm131_vm3, %v15874_v13 }
 0x3e1   :  { %12727 = vmatprep.mubr.msk.f32.mxu1 %vm131_vm3, %v15878_v1 }
 0x3e4   :  { %12728 = vmatmul.mubr.msk.f32.gmra.mrb[30].mxu1 %vm131_vm3, %v15882_v50 }
 0x3e5   :  { %12734 = vmatprep.mubr.msk.f32.mxu1 %vm131_vm3, %v15482_v49  ;;  %v15910_v49 = vld [vmem:[#allocation3 + $0x52] sm:$0xff] }
 0x3e8   :  { %12735 = vmatmul.mubr.msk.f32.vlgmr.msra.gmra.mrb[16].mxu1 %vm131_vm3, %v15894_v23 }
 0x3e9   :  { %12737 = vmatprep.mubr.msk.f32.mxu1 %vm131_vm3, %v15898_v38  ;;  %13517 = vmatpush3.bf16.msra.mxu1 %v13514_v22  ;;  %v5484_v22 = vld [vmem:[#allocation3 + $0x122] sm:$0xff] }
 0x3ea   :  { %13519 = vmatprep.subr.bf16.mxu1 %v13518_v21 }
 0x3ec   :  { %12738 = vmatmul.mubr.msk.f32.gmra.mrb[18].mxu1 %vm131_vm3, %v15902_v33 }
 0x3ed   :  { %12740 = vmatprep.mubr.msk.f32.mxu1 %vm131_vm3, %v15906_v53 }
 0x3f0   :  { %12741 = vmatmul.mubr.msk.f32.gmra.mrb[20].mxu1 %vm131_vm3, %v15910_v49 }
 0x3f1   :  { %12743 = vmatprep.mubr.msk.f32.mxu1 %vm131_vm3, %v15914_v28 }
 0x3f4   :  { %12744 = vmatmul.mubr.msk.f32.gmra.mrb[22].mxu1 %vm131_vm3, %v15918_v29 }
 0x3f5   :  { %12746 = vmatprep.mubr.msk.f32.mxu1 %vm131_vm3, %v15530_v55  ;;  %v15940_v55 = vld [vmem:[#allocation3 + $0xf2] sm:$0xff] }
 0x3f8   :  { %12747 = vmatmul.mubr.msk.f32.gmra.mrb[24].mxu1 %vm131_vm3, %v15924_v60 }
 0x3f9   :  { %12749 = vmatprep.mubr.msk.f32.mxu1 %vm131_vm3, %v15928_v31 }
 0x3fc   :  { %12750 = vmatmul.mubr.msk.f32.gmra.mrb[26].mxu1 %vm131_vm3, %v15932_v2 }
 0x3fd   :  { %12752 = vmatprep.mubr.msk.f32.mxu1 %vm131_vm3, %v15936_v3 }
 0x400   :  { %12753 = vmatmul.mubr.msk.f32.gmra.mrb[28].mxu1 %vm131_vm3, %v15940_v55 }
 0x401   :  { %12755 = vmatprep.mubr.msk.f32.mxu1 %vm131_vm3, %v15944_v32 }
 0x404   :  { %12756 = vmatmul.mubr.msk.f32.gmra.mrb[30].mxu1 %vm131_vm3, %v15948_v4 }
 0x405   :  { %12762 = vmatprep.mubr.msk.f32.mxu1 %vm131_vm3, %v15827_v25  ;;  %v11024_v25 = vld [vmem:[%s17076_s5 + $0x80] sm:$0xff] }
 0x408   :  { %12763 = vmatmul.mubr.msk.f32.vlgmr.msra.gmra.mrb[16].mxu1 %vm131_vm3, %v15831_v26 }
 0x409   :  { %12765 = vmatprep.mubr.msk.f32.mxu1 %vm131_vm3, %v15836_v30  ;;  %13521 = vmatpush3.bf16.msra.mxu1 %v13518_v21 }
 0x40a   :  { %13523 = vmatprep.subr.bf16.mxu1 %v13522_v7 }
 0x40c   :  { %12766 = vmatmul.mubr.msk.f32.gmra.mrb[18].mxu1 %vm131_vm3, %v15840_v36 }
 0x40d   :  { %12768 = vmatprep.mubr.msk.f32.mxu1 %vm131_vm3, %v15844_v37 }
 0x410   :  { %12769 = vmatmul.mubr.msk.f32.gmra.mrb[20].mxu1 %vm131_vm3, %v15848_v24 }
 0x411   :  { %12771 = vmatprep.mubr.msk.f32.mxu1 %vm131_vm3, %v15852_v44 }
 0x414   :  { %12772 = vmatmul.mubr.msk.f32.gmra.mrb[22].mxu1 %vm131_vm3, %v15972_v8 }
 0x415   :  { %12774 = vmatprep.mubr.msk.f32.mxu1 %vm131_vm3, %v15858_v45  ;;  %v11025_v45 = vld [vmem:[%s17076_s5 + $0x88] sm:$0xff] }
 0x416   :  { %v13534_v51 = vpack.c.bf16 %v11025_v45, %v11024_v25 }
 0x418   :  { %12775 = vmatmul.mubr.msk.f32.gmra.mrb[24].mxu1 %vm131_vm3, %v15862_v35 }
 0x419   :  { %12777 = vmatprep.mubr.msk.f32.mxu1 %vm131_vm3, %v15866_v47 }
 0x41c   :  { %12778 = vmatmul.mubr.msk.f32.gmra.mrb[26].mxu1 %vm131_vm3, %v15870_v52 }
 0x41d   :  { %12780 = vmatprep.mubr.msk.f32.mxu1 %vm131_vm3, %v15874_v13 }
 0x420   :  { %12781 = vmatmul.mubr.msk.f32.gmra.mrb[28].mxu1 %vm131_vm3, %v15878_v1 }
 0x421   :  { %12783 = vmatprep.mubr.msk.f32.mxu1 %vm131_vm3, %v15882_v50 }
 0x424   :  { %12784 = vmatmul.mubr.msk.f32.gmra.mrb[30].mxu1 %vm131_vm3, %v15990_v9 }
 0x425   :  { %12790 = vmatprep.mubr.msk.f32.mxu1 %vm131_vm3, %v15733_v57  ;;  %v5248_v57 = vld [vmem:[#allocation3 + $0x81] sm:$0xff] }
 0x428   :  { %12791 = vmatmul.mubr.msk.f32.vlgmr.msra.gmra.mrb[16].mxu1 %vm131_vm3, %v15738_v46 }
 0x429   :  { %12793 = vmatprep.mubr.msk.f32.mxu1 %vm131_vm3, %v15746_v34  ;;  %13525 = vmatpush3.bf16.msra.mxu1 %v13522_v7 }
 0x42a   :  { %13527 = vmatprep.subr.bf16.mxu1 %v13526_v42 }
 0x42c   :  { %12794 = vmatmul.mubr.msk.f32.gmra.mrb[18].mxu1 %vm131_vm3, %v15751_v56 }
 0x42d   :  { %12796 = vmatprep.mubr.msk.f32.mxu1 %vm131_vm3, %v15759_v61 }
 0x430   :  { %12797 = vmatmul.mubr.msk.f32.gmra.mrb[20].mxu1 %vm131_vm3, %v15765_v62 }
 0x431   :  { %12799 = vmatprep.mubr.msk.f32.mxu1 %vm131_vm3, %v15773_v6 }
 0x434   :  { %12800 = vmatmul.mubr.msk.f32.gmra.mrb[22].mxu1 %vm131_vm3, %v5248_v57 }
 0x435   :  { %12802 = vmatprep.mubr.msk.f32.mxu1 %vm131_vm3, %v15785_v11  ;;  %v11006_v11 = vld [vmem:[%s17076_s5 + $0x70] sm:$0xff] }
 0x436   :  { %v13530_v19 = vpack.c.bf16 %v11007_v14, %v11006_v11  ;;  %v16262_v14 = vld [vmem:[#allocation3] sm:$0xff] }
 0x438   :  { %12803 = vmatmul.mubr.msk.f32.gmra.mrb[24].mxu1 %vm131_vm3, %v15791_v12 }
 0x439   :  { %12805 = vmatprep.mubr.msk.f32.mxu1 %vm131_vm3, %v15798_v58 }
 0x43c   :  { %12806 = vmatmul.mubr.msk.f32.gmra.mrb[26].mxu1 %vm131_vm3, %v15803_v59 }
 0x43d   :  { %12808 = vmatprep.mubr.msk.f32.mxu1 %vm131_vm3, %v15807_v16 }
 0x440   :  { %12809 = vmatmul.mubr.msk.f32.gmra.mrb[28].mxu1 %vm131_vm3, %v15811_v63 }
 0x441   :  { %12811 = vmatprep.mubr.msk.f32.mxu1 %vm131_vm3, %v15815_v18 }
 0x444   :  { %12812 = vmatmul.mubr.msk.f32.gmra.mrb[30].mxu1 %vm131_vm3, %v5256_v48 }
 0x445   :  { %12818 = vmatprep.mubr.msk.f32.mxu1 %vm131_vm3, %v15894_v23 }
 0x448   :  { %12819 = vmatmul.mubr.msk.f32.vlgmr.msra.gmra.mrb[16].mxu1 %vm131_vm3, %v15898_v38 }
 0x449   :  { %12821 = vmatprep.mubr.msk.f32.mxu1 %vm131_vm3, %v15902_v33  ;;  %13529 = vmatpush3.bf16.msra.mxu1 %v13526_v42 }
 0x44a   :  { %13531 = vmatprep.subr.bf16.mxu1 %v13530_v19 }
 0x44c   :  { %12822 = vmatmul.mubr.msk.f32.gmra.mrb[18].mxu1 %vm131_vm3, %v15906_v53 }
 0x44d   :  { %12824 = vmatprep.mubr.msk.f32.mxu1 %vm131_vm3, %v15910_v49 }
 0x450   :  { %12825 = vmatmul.mubr.msk.f32.gmra.mrb[20].mxu1 %vm131_vm3, %v15914_v28 }
 0x451   :  { %12827 = vmatprep.mubr.msk.f32.mxu1 %vm131_vm3, %v15918_v29 }
 0x454   :  { %12828 = vmatmul.mubr.msk.f32.gmra.mrb[22].mxu1 %vm131_vm3, %v5476_v20 }
 0x455   :  { %12830 = vmatprep.mubr.msk.f32.mxu1 %vm131_vm3, %v15924_v60 }
 0x458   :  { %12831 = vmatmul.mubr.msk.f32.gmra.mrb[24].mxu1 %vm131_vm3, %v15928_v31 }
 0x459   :  { %12833 = vmatprep.mubr.msk.f32.mxu1 %vm131_vm3, %v15932_v2 }
 0x45c   :  { %12834 = vmatmul.mubr.msk.f32.gmra.mrb[26].mxu1 %vm131_vm3, %v15936_v3 }
 0x45d   :  { %12836 = vmatprep.mubr.msk.f32.mxu1 %vm131_vm3, %v15940_v55 }
 0x460   :  { %12837 = vmatmul.mubr.msk.f32.gmra.mrb[28].mxu1 %vm131_vm3, %v15944_v32 }
 0x461   :  { %12839 = vmatprep.mubr.msk.f32.mxu1 %vm131_vm3, %v15948_v4 }
 0x464   :  { %12840 = vmatmul.mubr.msk.f32.gmra.mrb[30].mxu1 %vm131_vm3, %v5484_v22 }
 0x465   :  { %12846 = vmatprep.mubr.msk.f32.mxu1 %vm131_vm3, %v15831_v26 }
 0x468   :  { %12847 = vmatmul.mubr.msk.f32.vlgmr.msra.gmra.mrb[16].mxu1 %vm131_vm3, %v15836_v30 }
 0x469   :  { %12849 = vmatprep.mubr.msk.f32.mxu1 %vm131_vm3, %v15840_v36  ;;  %13533 = vmatpush3.bf16.msra.mxu1 %v13530_v19 }
 0x46a   :  { %13535 = vmatprep.subr.bf16.mxu1 %v13534_v51 }
 0x46c   :  { %12850 = vmatmul.mubr.msk.f32.gmra.mrb[18].mxu1 %vm131_vm3, %v15844_v37 }
 0x46d   :  { %12852 = vmatprep.mubr.msk.f32.mxu1 %vm131_vm3, %v15848_v24 }
 0x470   :  { %12853 = vmatmul.mubr.msk.f32.gmra.mrb[20].mxu1 %vm131_vm3, %v15852_v44 }
 0x471   :  { %12855 = vmatprep.mubr.msk.f32.mxu1 %vm131_vm3, %v15972_v8 }
 0x474   :  { %12856 = vmatmul.mubr.msk.f32.gmra.mrb[22].mxu1 %vm131_vm3, %v15528_v54  ;;  %v6455_v54 = vld [vmem:[#allocation4 + $0x10] sm:$0xff] }
 0x475   :  { %12858 = vmatprep.mubr.msk.f32.mxu1 %vm131_vm3, %v15862_v35 }
 0x478   :  { %12859 = vmatmul.mubr.msk.f32.gmra.mrb[24].mxu1 %vm131_vm3, %v15866_v47 }
 0x479   :  { %12861 = vmatprep.mubr.msk.f32.mxu1 %vm131_vm3, %v15870_v52 }
 0x47c   :  { %12862 = vmatmul.mubr.msk.f32.gmra.mrb[26].mxu1 %vm131_vm3, %v15874_v13 }
 0x47d   :  { %12864 = vmatprep.mubr.msk.f32.mxu1 %vm131_vm3, %v15878_v1 }
 0x480   :  { %12865 = vmatmul.mubr.msk.f32.gmra.mrb[28].mxu1 %vm131_vm3, %v15882_v50 }
 0x481   :  { %12867 = vmatprep.mubr.msk.f32.mxu1 %vm131_vm3, %v15990_v9 }
 0x484   :  { %12868 = vmatmul.mubr.msk.f32.gmra.mrb[30].mxu1 %vm131_vm3, %v15562_v41  ;;  %v6456_v41 = vld [vmem:[#allocation4 + $0x18] sm:$0xff] }
 0x485   :  { %12874 = vmatprep.mubr.msk.f32.mxu1 %vm131_vm3, %v15738_v46  ;;  %v6437_v46 = vld [vmem:[#allocation4 + $0x8] sm:$0xff] }
 0x488   :  { %12875 = vmatmul.mubr.msk.f32.vlgmr.msra.gmra.mrb[16].mxu1 %vm131_vm3, %v15746_v34 }
 0x489   :  { %12877 = vmatprep.mubr.msk.f32.mxu1 %vm131_vm3, %v15751_v56  ;;  %13537 = vmatpush3.bf16.msra.mxu1 %v13534_v51  ;;  %v16169_v56 = vld [vmem:[%s17077_s6] ss:$0 sm:$0xff] }
 0x48c   :  { %12878 = vmatmul.mubr.msk.f32.gmra.mrb[18].mxu1 %vm131_vm3, %v15759_v61 }
 0x48d   :  { %12880 = vmatprep.mubr.msk.f32.mxu1 %vm131_vm3, %v15765_v62 }
 0x490   :  { %12881 = vmatmul.mubr.msk.f32.gmra.mrb[20].mxu1 %vm131_vm3, %v15773_v6 }
 0x491   :  { %12883 = vmatprep.mubr.msk.f32.mxu1 %vm131_vm3, %v5248_v57 }
 0x494   :  { %12884 = vmatmul.mubr.msk.f32.gmra.mrb[22].mxu1 %vm131_vm3, %v15597_v43  ;;  %v13538_v43 = vpack.c.bf16 %v6456_v41, %v6455_v54 }
 0x495   :  { %12886 = vmatprep.mubr.msk.f32.mxu1 %vm131_vm3, %v15791_v12 }
 0x496   :  { %13539 = vmatprep.subr.bf16.mxu0 %v13538_v43 }
 0x497   :  { %13541 = vmatpush3.bf16.msra.mxu0 %v13538_v43 }
 0x498   :  { %12887 = vmatmul.mubr.msk.f32.gmra.mrb[24].mxu1 %vm131_vm3, %v15798_v58 }
 0x499   :  { %12889 = vmatprep.mubr.msk.f32.mxu1 %vm131_vm3, %v15803_v59 }
 0x49c   :  { %12890 = vmatmul.mubr.msk.f32.gmra.mrb[26].mxu1 %vm131_vm3, %v15807_v16 }
 0x49d   :  { %12892 = vmatprep.mubr.msk.f32.mxu1 %vm131_vm3, %v15811_v63  ;;  %v6860_v63 = vld [vmem:[#allocation4 + $0x20] sm:$0xff] }
 0x4a0   :  { %12893 = vmatmul.mubr.msk.f32.gmra.mrb[28].mxu1 %vm131_vm3, %v15815_v18  ;;  %v6861_v18 = vld [vmem:[#allocation4 + $0x28] sm:$0xff] }
 0x4a1   :  { %12895 = vmatprep.mubr.msk.f32.mxu1 %vm131_vm3, %v5256_v48  ;;  %v16181_v24 = vpack.c.bf16 %v6861_v18, %v6860_v63 }
 0x4a4   :  { %12896 = vmatmul.mubr.msk.f32.gmra.mrb[30].mxu1 %vm131_vm3, %v15630_v0  ;;  %v6438_v0 = vld [vmem:[#allocation3 + $0x1] sm:$0xff] }
 0x4a5   :  { %12902 = vmatprep.mubr.msk.f32.mxu1 %vm131_vm3, %v15898_v38  ;;  %12930 = vmatprep.mubr.msk.f32.mxu0 %vm131_vm3, %v6438_v0 }
 0x4a8   :  { %12903 = vmatmul.mubr.msk.f32.vlgmr.msra.gmra.mrb[16].mxu1 %vm131_vm3, %v15902_v33 }
 0x4a9   :  { %12905 = vmatprep.mubr.msk.f32.mxu1 %vm131_vm3, %v15906_v53 }
 0x4ac   :  { %12906 = vmatmul.mubr.msk.f32.gmra.mrb[18].mxu1 %vm131_vm3, %v15910_v49 }
 0x4ad   :  { %12908 = vmatprep.mubr.msk.f32.mxu1 %vm131_vm3, %v15914_v28 }
 0x4b0   :  { %12909 = vmatmul.mubr.msk.f32.gmra.mrb[20].mxu1 %vm131_vm3, %v15918_v29 }
 0x4b1   :  { %12911 = vmatprep.mubr.msk.f32.mxu1 %vm131_vm3, %v5476_v20  ;;  %v7088_v20 = vld [vmem:[#allocation4 + $0x30] sm:$0xff] }
 0x4b4   :  { %12912 = vmatmul.mubr.msk.f32.gmra.mrb[22].mxu1 %vm131_vm3, %v15661_v15  ;;  %v6436_v15 = vld [vmem:[#allocation4] sm:$0xff] }
 0x4b5   :  { %12914 = vmatprep.mubr.msk.f32.mxu1 %vm131_vm3, %v15928_v31  ;;  %v13542_v34 = vpack.c.bf16 %v6437_v46, %v6436_v15  ;;  %v16295_v15 = vld [vmem:[#allocation3 + $0xa0] sm:$0xff] }
 0x4b7   :  { %13543 = vmatprep.subr.bf16.mxu0 %v13542_v34 }
 0x4b8   :  { %12915 = vmatmul.mubr.msk.f32.gmra.mrb[24].mxu1 %vm131_vm3, %v15932_v2  ;;  %v16220_v2 = vld [vmem:[#allocation3 + $0xa1] sm:$0xff] }
 0x4b9   :  { %12917 = vmatprep.mubr.msk.f32.mxu1 %vm131_vm3, %v15936_v3 }
 0x4bc   :  { %12918 = vmatmul.mubr.msk.f32.gmra.mrb[26].mxu1 %vm131_vm3, %v15940_v55 }
 0x4bd   :  { %12920 = vmatprep.mubr.msk.f32.mxu1 %vm131_vm3, %v15944_v32 }
 0x4c0   :  { %12921 = vmatmul.mubr.msk.f32.gmra.mrb[28].mxu1 %vm131_vm3, %v15948_v4 }
 0x4c1   :  { %12923 = vmatprep.mubr.msk.f32.mxu1 %vm131_vm3, %v5484_v22  ;;  %v7089_v22 = vld [vmem:[#allocation4 + $0x38] sm:$0xff] }
 0x4c2   :  { %v13550_v25 = vpack.c.bf16 %v7089_v22, %v7088_v20  ;;  %v8514_v20 = vld [vmem:[#allocation8 + $0x18] sm:$0xff] }
 0x4c4   :  { %12924 = vmatmul.mubr.msk.f32.gmra.mrb[30].mxu1 %vm131_vm3, %v15679_v17 }
 0x4c5   :  { %13182 = vmatprep.mubr.msk.f32.mxu1 %vm131_vm3, %v6438_v0 }
 0x57b   :  { %v12904_v17 = vpop.f32.mrb[16].mxu1 }
 0x57c   :  { %v6389_v61 = vadd.f32 %v12904_v17, %v16169_v56  ;;  %v6286_v62 = vpop.f32.mrb[17].mxu1 }
 0x57d   :  { %v6388_v6 = vadd.f32 %v16169_v56, %v6286_v62 }
 0x57e   :  { %6405 = vst.msk [vmem:[#allocation3 + $0x21] sm:$0xff] %vm131_vm3, %v6389_v61 }
 0x57f   :  { %6404 = vst.msk [vmem:[#allocation3 + $0x11] sm:$0xff] %vm131_vm3, %v6388_v6  ;;  %v12907_v12 = vpop.f32.mrb[18].mxu1 }
 0x580   :  { %v6391_v58 = vadd.f32 %v12907_v12, %v16169_v56  ;;  %v6296_v59 = vpop.f32.mrb[19].mxu1  ;;  %v16327_v12 = vld [vmem:[#allocation3 + $0x2] sm:$0xff] }
 0x581   :  { %v6390_v16 = vadd.f32 %v16169_v56, %v6296_v59  ;;  %v7316_v59 = vld [vmem:[#allocation4 + $0x40] sm:$0xff] }
 0x582   :  { %6407 = vst.msk [vmem:[#allocation3 + $0x41] sm:$0xff] %vm131_vm3, %v6391_v58 }
 0x583   :  { %6406 = vst.msk [vmem:[#allocation3 + $0x31] sm:$0xff] %vm131_vm3, %v6390_v16  ;;  %v12910_v26 = vpop.f32.mrb[20].mxu1  ;;  %v7317_v16 = vld [vmem:[#allocation4 + $0x48] sm:$0xff] }
 0x584   :  { %v6393_v30 = vadd.f32 %v12910_v26, %v16169_v56  ;;  %v6306_v36 = vpop.f32.mrb[21].mxu1  ;;  %v13554_v63 = vpack.c.bf16 %v7317_v16, %v7316_v59  ;;  %v8228_v59 = vld [vmem:[#allocation4 + $0x80] sm:$0xff]  ;;  %v8229_v16 = vld [vmem:[#allocation4 + $0x88] sm:$0xff] }
 0x585   :  { %v6392_v37 = vadd.f32 %v16169_v56, %v6306_v36  ;;  %v16189_v47 = vld [vmem:[#allocation3 + $0x21] sm:$0xff] }
 0x586   :  { %6409 = vst.msk [vmem:[#allocation3 + $0x61] sm:$0xff] %vm131_vm3, %v6393_v30  ;;  %v16184_v44 = vld [vmem:[#allocation3 + $0x11] sm:$0xff]  ;;  %v16274_v51 = vld [vmem:[#allocation3 + $0x20] sm:$0xff] }
 0x587   :  { %6408 = vst.msk [vmem:[#allocation3 + $0x51] sm:$0xff] %vm131_vm3, %v6392_v37  ;;  %v12913_v35 = vpop.f32.mrb[22].mxu1  ;;  %12931 = vmatmul.mubr.msk.f32.vlgmr.msra.gmra.mrb[32].mxu0 %vm131_vm3, %v16184_v44  ;;  %v16270_v45 = vld [vmem:[#allocation3 + $0x10] sm:$0xff]  ;;  %v16339_v26 = vld [vmem:[#allocation3 + $0x22] sm:$0xff] }
 0x588   :  { %v6395_v52 = vadd.f32 %v12913_v35, %v16169_v56  ;;  %v6316_v13 = vpop.f32.mrb[23].mxu1  ;;  %12933 = vmatprep.mubr.msk.f32.mxu0 %vm131_vm3, %v16189_v47  ;;  %13545 = vmatpush3.bf16.msra.mxu0 %v13542_v34  ;;  %v16335_v18 = vld [vmem:[#allocation3 + $0x12] sm:$0xff]  ;;  %v16359_v35 = vld [vmem:[#allocation3 + $0xa2] sm:$0xff] }
 0x589   :  { %v6394_v1 = vadd.f32 %v16169_v56, %v6316_v13  ;;  %13547 = vmatprep.subr.bf16.mxu0 %v16181_v24  ;;  %v16202_v21 = vld [vmem:[#allocation3 + $0x41] sm:$0xff] }
 0x58a   :  { %6411 = vst.msk [vmem:[#allocation3 + $0x81] sm:$0xff] %vm131_vm3, %v6395_v52  ;;  %v16197_v50 = vld [vmem:[#allocation3 + $0x31] sm:$0xff]  ;;  %v16283_v41 = vld [vmem:[#allocation3 + $0x40] sm:$0xff] }
 0x58b   :  { %6410 = vst.msk [vmem:[#allocation3 + $0x71] sm:$0xff] %vm131_vm3, %v6394_v1  ;;  %v12916_v27 = vpop.f32.mrb[24].mxu1  ;;  %12934 = vmatmul.mubr.msk.f32.gmra.mrb[34].mxu0 %vm131_vm3, %v16197_v50  ;;  %v16279_v54 = vld [vmem:[#allocation3 + $0x30] sm:$0xff]  ;;  %v16347_v36 = vld [vmem:[#allocation3 + $0x42] sm:$0xff] }
 0x58c   :  { %v6397_v23 = vadd.f32 %v12916_v27, %v16169_v56  ;;  %v6326_v38 = vpop.f32.mrb[25].mxu1  ;;  %12936 = vmatprep.mubr.msk.f32.mxu0 %vm131_vm3, %v16202_v21  ;;  %v16343_v30 = vld [vmem:[#allocation3 + $0x32] sm:$0xff] }
 0x58d   :  { %v6396_v33 = vadd.f32 %v16169_v56, %v6326_v38  ;;  %v16214_v28 = vld [vmem:[#allocation3 + $0x61] sm:$0xff] }
 0x58e   :  { %6413 = vst.msk [vmem:[#allocation3 + $0xc1] sm:$0xff] %vm131_vm3, %v6397_v23  ;;  %v16209_v53 = vld [vmem:[#allocation3 + $0x51] sm:$0xff]  ;;  %v16291_v0 = vld [vmem:[#allocation3 + $0x60] sm:$0xff] }
 0x58f   :  { %6412 = vst.msk [vmem:[#allocation3 + $0xb1] sm:$0xff] %vm131_vm3, %v6396_v33  ;;  %v12919_v49 = vpop.f32.mrb[26].mxu1  ;;  %12937 = vmatmul.mubr.msk.f32.gmra.mrb[36].mxu0 %vm131_vm3, %v16209_v53  ;;  %v16287_v43 = vld [vmem:[#allocation3 + $0x50] sm:$0xff] }
 0x590   :  { %v6399_v29 = vadd.f32 %v12919_v49, %v16169_v56  ;;  %v6336_v60 = vpop.f32.mrb[27].mxu1  ;;  %12939 = vmatprep.mubr.msk.f32.mxu0 %vm131_vm3, %v16214_v28  ;;  %v16351_v37 = vld [vmem:[#allocation3 + $0x52] sm:$0xff] }
 0x591   :  { %v6398_v31 = vadd.f32 %v16169_v56, %v6336_v60  ;;  %v7545_v60 = vld [vmem:[#allocation4 + $0x58] sm:$0xff] }
 0x592   :  { %6415 = vst.msk [vmem:[#allocation3 + $0xe1] sm:$0xff] %vm131_vm3, %v6399_v29  ;;  %v16223_v3 = vld [vmem:[#allocation3 + $0x71] sm:$0xff] }
 0x593   :  { %6414 = vst.msk [vmem:[#allocation3 + $0xd1] sm:$0xff] %vm131_vm3, %v6398_v31  ;;  %v12922_v55 = vpop.f32.mrb[28].mxu1  ;;  %12940 = vmatmul.mubr.msk.f32.gmra.mrb[38].mxu0 %vm131_vm3, %v16223_v3  ;;  %v16297_v46 = vld [vmem:[#allocation3 + $0x70] sm:$0xff] }
 0x594   :  { %v6401_v32 = vadd.f32 %v12922_v55, %v16169_v56  ;;  %v6346_v4 = vpop.f32.mrb[29].mxu1  ;;  %12942 = vmatprep.mubr.msk.f32.mxu0 %vm131_vm3, %v16220_v2  ;;  %v16361_v52 = vld [vmem:[#allocation3 + $0x72] sm:$0xff]  ;;  %v16409_v55 = vld [vmem:[#allocation3 + $0x80] sm:$0xff] }
 0x595   :  { %v6400_v5 = vadd.f32 %v16169_v56, %v6346_v4  ;;  %v16238_v8 = vld [vmem:[#allocation3 + $0xc1] sm:$0xff]  ;;  %v7544_v29 = vld [vmem:[#allocation4 + $0x50] sm:$0xff] }
 0x596   :  { %6417 = vst.msk [vmem:[#allocation3 + $0x101] sm:$0xff] %vm131_vm3, %v6401_v32  ;;  %v16233_v39 = vld [vmem:[#allocation3 + $0xb1] sm:$0xff]  ;;  %v16371_v1 = vld [vmem:[#allocation3 + $0xc2] sm:$0xff]  ;;  %v13558_v31 = vpack.c.bf16 %v7545_v60, %v7544_v29 }
 0x597   :  { %6416 = vst.msk [vmem:[#allocation3 + $0xf1] sm:$0xff] %vm131_vm3, %v6400_v5  ;;  %v12925_v7 = vpop.f32.mrb[30].mxu1  ;;  %12943 = vmatmul.mubr.msk.f32.gmra.mrb[40].mxu0 %vm131_vm3, %v16233_v39  ;;  %v16303_v34 = vld [vmem:[#allocation3 + $0xb0] sm:$0xff]  ;;  %v7772_v4 = vld [vmem:[#allocation4 + $0x60] sm:$0xff]  ;;  %v7773_v5 = vld [vmem:[#allocation4 + $0x68] sm:$0xff] }
 0x598   :  { %v6403_v9 = vadd.f32 %v12925_v7, %v16169_v56  ;;  %v6356_v40 = vpop.f32.mrb[31].mxu1  ;;  %12945 = vmatprep.mubr.msk.f32.mxu0 %vm131_vm3, %v16238_v8  ;;  %v16367_v13 = vld [vmem:[#allocation3 + $0xb2] sm:$0xff]  ;;  %v13562_v7 = vpack.c.bf16 %v7773_v5, %v7772_v4 }
 0x599   :  { %v6402_v10 = vadd.f32 %v16169_v56, %v6356_v40  ;;  %v16250_v57 = vld [vmem:[#allocation3 + $0xe1] sm:$0xff]  ;;  %v8001_v40 = vld [vmem:[#allocation4 + $0x78] sm:$0xff] }
 0x59a   :  { %6419 = vst.msk [vmem:[#allocation3 + $0x121] sm:$0xff] %vm131_vm3, %v6403_v9  ;;  %v16245_v42 = vld [vmem:[#allocation3 + $0xd1] sm:$0xff]  ;;  %v16307_v56 = vld [vmem:[#allocation3 + $0xc0] sm:$0xff] }
 0x59b   :  { %6418 = vst.msk [vmem:[#allocation3 + $0x111] sm:$0xff] %vm131_vm3, %v6402_v10  ;;  %12946 = vmatmul.mubr.msk.f32.gmra.mrb[42].mxu0 %vm131_vm3, %v16245_v42  ;;  %v16311_v17 = vld [vmem:[#allocation3 + $0xd0] sm:$0xff]  ;;  %v16315_v61 = vld [vmem:[#allocation3 + $0xe0] sm:$0xff] }
 0x59c   :  { %12948 = vmatprep.mubr.msk.f32.mxu0 %vm131_vm3, %v16250_v57  ;;  %v16375_v27 = vld [vmem:[#allocation3 + $0xd2] sm:$0xff]  ;;  %v16379_v23 = vld [vmem:[#allocation3 + $0xe2] sm:$0xff] }
 0x59d   :  { %v16258_v11 = vld [vmem:[#allocation3 + $0x101] sm:$0xff] }
 0x59e   :  { %v16254_v48 = vld [vmem:[#allocation3 + $0xf1] sm:$0xff]  ;;  %v16323_v6 = vld [vmem:[#allocation3 + $0x100] sm:$0xff] }
 0x59f   :  { %12949 = vmatmul.mubr.msk.f32.gmra.mrb[44].mxu0 %vm131_vm3, %v16254_v48  ;;  %v16319_v62 = vld [vmem:[#allocation3 + $0xf0] sm:$0xff]  ;;  %v16387_v33 = vld [vmem:[#allocation3 + $0x102] sm:$0xff] }
 0x5a0   :  { %12951 = vmatprep.mubr.msk.f32.mxu0 %vm131_vm3, %v16258_v11  ;;  %v16383_v38 = vld [vmem:[#allocation3 + $0xf2] sm:$0xff]  ;;  %v8513_v10 = vld [vmem:[#allocation8 + $0x10] sm:$0xff] }
 0x5a1   :  { %v16427_v32 = vld [vmem:[#allocation3 + $0x120] sm:$0xff]  ;;  %v13574_v22 = vpack.c.bf16 %v8514_v20, %v8513_v10 }
 0x5a2   :  { %v16264_v19 = vld [vmem:[#allocation3 + $0x111] sm:$0xff]  ;;  %v16463_v9 = vld [vmem:[#allocation3 + $0x121] sm:$0xff] }
 0x5a3   :  { %12952 = vmatmul.mubr.msk.f32.gmra.mrb[46].mxu0 %vm131_vm3, %v16264_v19  ;;  %v16329_v58 = vld [vmem:[#allocation3 + $0x110] sm:$0xff]  ;;  %13575 = vmatprep.subr.bf16.mxu1 %v13574_v22 }
 0x5a4   :  { %12958 = vmatprep.mubr.msk.f32.mxu0 %vm131_vm3, %v16262_v14  ;;  %v16391_v49 = vld [vmem:[#allocation3 + $0x112] sm:$0xff]  ;;  %13577 = vmatpush3.bf16.msra.mxu1 %v13574_v22 }
 0x5a7   :  { %12959 = vmatmul.mubr.msk.f32.vlgmr.msra.gmra.mrb[32].mxu0 %vm131_vm3, %v16270_v45 }
 0x5a8   :  { %12961 = vmatprep.mubr.msk.f32.mxu0 %vm131_vm3, %v16274_v51  ;;  %13549 = vmatpush3.bf16.msra.mxu0 %v16181_v24  ;;  %v16355_v24 = vld [vmem:[#allocation3 + $0x62] sm:$0xff] }
 0x5a9   :  { %13551 = vmatprep.subr.bf16.mxu0 %v13550_v25 }
 0x5ab   :  { %12962 = vmatmul.mubr.msk.f32.gmra.mrb[34].mxu0 %vm131_vm3, %v16279_v54 }
 0x5ac   :  { %12964 = vmatprep.mubr.msk.f32.mxu0 %vm131_vm3, %v16283_v41 }
 0x5af   :  { %12965 = vmatmul.mubr.msk.f32.gmra.mrb[36].mxu0 %vm131_vm3, %v16287_v43 }
 0x5b0   :  { %12967 = vmatprep.mubr.msk.f32.mxu0 %vm131_vm3, %v16291_v0 }
 0x5b3   :  { %12968 = vmatmul.mubr.msk.f32.gmra.mrb[38].mxu0 %vm131_vm3, %v16297_v46 }
 0x5b4   :  { %12970 = vmatprep.mubr.msk.f32.mxu0 %vm131_vm3, %v16295_v15 }
 0x5b7   :  { %12971 = vmatmul.mubr.msk.f32.gmra.mrb[40].mxu0 %vm131_vm3, %v16303_v34 }
 0x5b8   :  { %12973 = vmatprep.mubr.msk.f32.mxu0 %vm131_vm3, %v16307_v56 }
 0x5bb   :  { %12974 = vmatmul.mubr.msk.f32.gmra.mrb[42].mxu0 %vm131_vm3, %v16311_v17 }
 0x5bc   :  { %12976 = vmatprep.mubr.msk.f32.mxu0 %vm131_vm3, %v16315_v61 }
 0x5bf   :  { %12977 = vmatmul.mubr.msk.f32.gmra.mrb[44].mxu0 %vm131_vm3, %v16319_v62 }
 0x5c0   :  { %12979 = vmatprep.mubr.msk.f32.mxu0 %vm131_vm3, %v16323_v6 }
 0x5c3   :  { %12980 = vmatmul.mubr.msk.f32.gmra.mrb[46].mxu0 %vm131_vm3, %v16329_v58 }
 0x5c4   :  { %12986 = vmatprep.mubr.msk.f32.mxu0 %vm131_vm3, %v16327_v12 }
 0x5c7   :  { %12987 = vmatmul.mubr.msk.f32.vlgmr.msra.gmra.mrb[32].mxu0 %vm131_vm3, %v16335_v18 }
 0x5c8   :  { %12989 = vmatprep.mubr.msk.f32.mxu0 %vm131_vm3, %v16339_v26  ;;  %13553 = vmatpush3.bf16.msra.mxu0 %v13550_v25 }
 0x5c9   :  { %13555 = vmatprep.subr.bf16.mxu0 %v13554_v63 }
 0x5cb   :  { %12990 = vmatmul.mubr.msk.f32.gmra.mrb[34].mxu0 %vm131_vm3, %v16343_v30 }
 0x5cc   :  { %12992 = vmatprep.mubr.msk.f32.mxu0 %vm131_vm3, %v16347_v36 }
 0x5cf   :  { %12993 = vmatmul.mubr.msk.f32.gmra.mrb[36].mxu0 %vm131_vm3, %v16351_v37 }
 0x5d0   :  { %12995 = vmatprep.mubr.msk.f32.mxu0 %vm131_vm3, %v16355_v24 }
 0x5d3   :  { %12996 = vmatmul.mubr.msk.f32.gmra.mrb[38].mxu0 %vm131_vm3, %v16361_v52 }
 0x5d4   :  { %12998 = vmatprep.mubr.msk.f32.mxu0 %vm131_vm3, %v16359_v35 }
 0x5d7   :  { %12999 = vmatmul.mubr.msk.f32.gmra.mrb[40].mxu0 %vm131_vm3, %v16367_v13 }
 0x5d8   :  { %13001 = vmatprep.mubr.msk.f32.mxu0 %vm131_vm3, %v16371_v1 }
 0x5db   :  { %13002 = vmatmul.mubr.msk.f32.gmra.mrb[42].mxu0 %vm131_vm3, %v16375_v27 }
 0x5dc   :  { %13004 = vmatprep.mubr.msk.f32.mxu0 %vm131_vm3, %v16379_v23 }
 0x5df   :  { %13005 = vmatmul.mubr.msk.f32.gmra.mrb[44].mxu0 %vm131_vm3, %v16383_v38 }
 0x5e0   :  { %13007 = vmatprep.mubr.msk.f32.mxu0 %vm131_vm3, %v16387_v33 }
 0x5e3   :  { %13008 = vmatmul.mubr.msk.f32.gmra.mrb[46].mxu0 %vm131_vm3, %v16391_v49 }
 0x5e4   :  { %13014 = vmatprep.mubr.msk.f32.mxu0 %vm131_vm3, %v16270_v45  ;;  %v7534_v45 = vld [vmem:[#allocation3 + $0x82] sm:$0xff] }
 0x5e7   :  { %13015 = vmatmul.mubr.msk.f32.vlgmr.msra.gmra.mrb[32].mxu0 %vm131_vm3, %v16274_v51 }
 0x5e8   :  { %13017 = vmatprep.mubr.msk.f32.mxu0 %vm131_vm3, %v16279_v54  ;;  %13557 = vmatpush3.bf16.msra.mxu0 %v13554_v63  ;;  %v13570_v63 = vpack.c.bf16 %v8229_v16, %v8228_v59 }
 0x5e9   :  { %13559 = vmatprep.subr.bf16.mxu0 %v13558_v31 }
 0x5eb   :  { %13018 = vmatmul.mubr.msk.f32.gmra.mrb[34].mxu0 %vm131_vm3, %v16283_v41 }
 0x5ec   :  { %13020 = vmatprep.mubr.msk.f32.mxu0 %vm131_vm3, %v16287_v43 }
 0x5ef   :  { %13021 = vmatmul.mubr.msk.f32.gmra.mrb[36].mxu0 %vm131_vm3, %v16291_v0 }
 0x5f0   :  { %13023 = vmatprep.mubr.msk.f32.mxu0 %vm131_vm3, %v16297_v46 }
 0x5f3   :  { %13024 = vmatmul.mubr.msk.f32.gmra.mrb[38].mxu0 %vm131_vm3, %v16409_v55 }
 0x5f4   :  { %13026 = vmatprep.mubr.msk.f32.mxu0 %vm131_vm3, %v16303_v34  ;;  %v7542_v34 = vld [vmem:[#allocation3 + $0x122] sm:$0xff] }
 0x5f7   :  { %13027 = vmatmul.mubr.msk.f32.gmra.mrb[40].mxu0 %vm131_vm3, %v16307_v56 }
 0x5f8   :  { %13029 = vmatprep.mubr.msk.f32.mxu0 %vm131_vm3, %v16311_v17 }
 0x5fb   :  { %13030 = vmatmul.mubr.msk.f32.gmra.mrb[42].mxu0 %vm131_vm3, %v16315_v61 }
 0x5fc   :  { %13032 = vmatprep.mubr.msk.f32.mxu0 %vm131_vm3, %v16319_v62 }
 0x5ff   :  { %13033 = vmatmul.mubr.msk.f32.gmra.mrb[44].mxu0 %vm131_vm3, %v16323_v6 }
 0x600   :  { %13035 = vmatprep.mubr.msk.f32.mxu0 %vm131_vm3, %v16329_v58 }
 0x603   :  { %13036 = vmatmul.mubr.msk.f32.gmra.mrb[46].mxu0 %vm131_vm3, %v16427_v32 }
 0x604   :  { %13042 = vmatprep.mubr.msk.f32.mxu0 %vm131_vm3, %v16184_v44  ;;  %v16445_v44 = vld [vmem:[#allocation3 + $0x81] sm:$0xff] }
 0x607   :  { %13043 = vmatmul.mubr.msk.f32.vlgmr.msra.gmra.mrb[32].mxu0 %vm131_vm3, %v16189_v47 }
 0x608   :  { %13045 = vmatprep.mubr.msk.f32.mxu0 %vm131_vm3, %v16197_v50  ;;  %13561 = vmatpush3.bf16.msra.mxu0 %v13558_v31 }
 0x609   :  { %13563 = vmatprep.subr.bf16.mxu0 %v13562_v7 }
 0x60b   :  { %13046 = vmatmul.mubr.msk.f32.gmra.mrb[34].mxu0 %vm131_vm3, %v16202_v21 }
 0x60c   :  { %13048 = vmatprep.mubr.msk.f32.mxu0 %vm131_vm3, %v16209_v53 }
 0x60f   :  { %13049 = vmatmul.mubr.msk.f32.gmra.mrb[36].mxu0 %vm131_vm3, %v16214_v28 }
 0x610   :  { %13051 = vmatprep.mubr.msk.f32.mxu0 %vm131_vm3, %v16223_v3 }
 0x613   :  { %13052 = vmatmul.mubr.msk.f32.gmra.mrb[38].mxu0 %vm131_vm3, %v16445_v44 }
 0x614   :  { %13054 = vmatprep.mubr.msk.f32.mxu0 %vm131_vm3, %v16233_v39  ;;  %v8000_v39 = vld [vmem:[#allocation4 + $0x70] sm:$0xff] }
 0x615   :  { %v13566_v25 = vpack.c.bf16 %v8001_v40, %v8000_v39 }
 0x617   :  { %13055 = vmatmul.mubr.msk.f32.gmra.mrb[40].mxu0 %vm131_vm3, %v16238_v8 }
 0x618   :  { %13057 = vmatprep.mubr.msk.f32.mxu0 %vm131_vm3, %v16245_v42 }
 0x61b   :  { %13058 = vmatmul.mubr.msk.f32.gmra.mrb[42].mxu0 %vm131_vm3, %v16250_v57 }
 0x61c   :  { %13060 = vmatprep.mubr.msk.f32.mxu0 %vm131_vm3, %v16254_v48 }
 0x61f   :  { %13061 = vmatmul.mubr.msk.f32.gmra.mrb[44].mxu0 %vm131_vm3, %v16258_v11 }
 0x620   :  { %13063 = vmatprep.mubr.msk.f32.mxu0 %vm131_vm3, %v16264_v19 }
 0x623   :  { %13064 = vmatmul.mubr.msk.f32.gmra.mrb[46].mxu0 %vm131_vm3, %v16463_v9 }
 0x624   :  { %13070 = vmatprep.mubr.msk.f32.mxu0 %vm131_vm3, %v16335_v18 }
 0x627   :  { %13071 = vmatmul.mubr.msk.f32.vlgmr.msra.gmra.mrb[32].mxu0 %vm131_vm3, %v16339_v26 }
 0x628   :  { %13073 = vmatprep.mubr.msk.f32.mxu0 %vm131_vm3, %v16343_v30  ;;  %13565 = vmatpush3.bf16.msra.mxu0 %v13562_v7 }
 0x629   :  { %13567 = vmatprep.subr.bf16.mxu0 %v13566_v25 }
 0x62b   :  { %13074 = vmatmul.mubr.msk.f32.gmra.mrb[34].mxu0 %vm131_vm3, %v16347_v36 }
 0x62c   :  { %13076 = vmatprep.mubr.msk.f32.mxu0 %vm131_vm3, %v16351_v37 }
 0x62f   :  { %13077 = vmatmul.mubr.msk.f32.gmra.mrb[36].mxu0 %vm131_vm3, %v16355_v24 }
 0x630   :  { %13079 = vmatprep.mubr.msk.f32.mxu0 %vm131_vm3, %v16361_v52 }
 0x633   :  { %13080 = vmatmul.mubr.msk.f32.gmra.mrb[38].mxu0 %vm131_vm3, %v7534_v45 }
 0x634   :  { %13082 = vmatprep.mubr.msk.f32.mxu0 %vm131_vm3, %v16367_v13 }
 0x637   :  { %13083 = vmatmul.mubr.msk.f32.gmra.mrb[40].mxu0 %vm131_vm3, %v16371_v1 }
 0x638   :  { %13085 = vmatprep.mubr.msk.f32.mxu0 %vm131_vm3, %v16375_v27 }
 0x63b   :  { %13086 = vmatmul.mubr.msk.f32.gmra.mrb[42].mxu0 %vm131_vm3, %v16379_v23 }
 0x63c   :  { %13088 = vmatprep.mubr.msk.f32.mxu0 %vm131_vm3, %v16383_v38 }
 0x63f   :  { %13089 = vmatmul.mubr.msk.f32.gmra.mrb[44].mxu0 %vm131_vm3, %v16387_v33 }
 0x640   :  { %13091 = vmatprep.mubr.msk.f32.mxu0 %vm131_vm3, %v16391_v49 }
 0x643   :  { %13092 = vmatmul.mubr.msk.f32.gmra.mrb[46].mxu0 %vm131_vm3, %v7542_v34 }
 0x644   :  { %13098 = vmatprep.mubr.msk.f32.mxu0 %vm131_vm3, %v16274_v51  ;;  %v16511_v51 = vld [vmem:[#allocation3 + $0x90] sm:$0xff] }
 0x647   :  { %13099 = vmatmul.mubr.msk.f32.vlgmr.msra.gmra.mrb[32].mxu0 %vm131_vm3, %v16279_v54  ;;  %v16529_v54 = vld [vmem:[#allocation3 + $0x130] sm:$0xff] }
 0x648   :  { %13101 = vmatprep.mubr.msk.f32.mxu0 %vm131_vm3, %v16283_v41  ;;  %13569 = vmatpush3.bf16.msra.mxu0 %v13566_v25 }
 0x649   :  { %13571 = vmatprep.subr.bf16.mxu0 %v13570_v63 }
 0x64b   :  { %13102 = vmatmul.mubr.msk.f32.gmra.mrb[34].mxu0 %vm131_vm3, %v16287_v43 }
 0x64c   :  { %13104 = vmatprep.mubr.msk.f32.mxu0 %vm131_vm3, %v16291_v0 }
 0x64f   :  { %13105 = vmatmul.mubr.msk.f32.gmra.mrb[36].mxu0 %vm131_vm3, %v16297_v46 }
 0x650   :  { %13107 = vmatprep.mubr.msk.f32.mxu0 %vm131_vm3, %v16409_v55 }
 0x653   :  { %13108 = vmatmul.mubr.msk.f32.gmra.mrb[38].mxu0 %vm131_vm3, %v16511_v51 }
 0x654   :  { %13110 = vmatprep.mubr.msk.f32.mxu0 %vm131_vm3, %v16307_v56  ;;  %v8918_v56 = vld [vmem:[#allocation8 + $0x20] sm:$0xff] }
 0x657   :  { %13111 = vmatmul.mubr.msk.f32.gmra.mrb[40].mxu0 %vm131_vm3, %v16311_v17  ;;  %v8919_v17 = vld [vmem:[#allocation8 + $0x28] sm:$0xff] }
 0x658   :  { %13113 = vmatprep.mubr.msk.f32.mxu0 %vm131_vm3, %v16315_v61  ;;  %v16615_v18 = vpack.c.bf16 %v8919_v17, %v8918_v56 }
 0x65b   :  { %13114 = vmatmul.mubr.msk.f32.gmra.mrb[42].mxu0 %vm131_vm3, %v16319_v62 }
 0x65c   :  { %13116 = vmatprep.mubr.msk.f32.mxu0 %vm131_vm3, %v16323_v6 }
 0x65f   :  { %13117 = vmatmul.mubr.msk.f32.gmra.mrb[44].mxu0 %vm131_vm3, %v16329_v58 }
 0x660   :  { %13119 = vmatprep.mubr.msk.f32.mxu0 %vm131_vm3, %v16427_v32 }
 0x663   :  { %13120 = vmatmul.mubr.msk.f32.gmra.mrb[46].mxu0 %vm131_vm3, %v16529_v54 }
 0x664   :  { %13126 = vmatprep.mubr.msk.f32.mxu0 %vm131_vm3, %v16189_v47  ;;  %v16547_v47 = vld [vmem:[#allocation3 + $0x91] sm:$0xff] }
 0x667   :  { %13127 = vmatmul.mubr.msk.f32.vlgmr.msra.gmra.mrb[32].mxu0 %vm131_vm3, %v16197_v50  ;;  %v16565_v50 = vld [vmem:[#allocation3 + $0x131] sm:$0xff] }
 0x668   :  { %13129 = vmatprep.mubr.msk.f32.mxu0 %vm131_vm3, %v16202_v21  ;;  %13573 = vmatpush3.bf16.msra.mxu0 %v13570_v63  ;;  %v16582_v21 = vld [vmem:[#allocation3 + $0x92] sm:$0xff]  ;;  %v9146_v63 = vld [vmem:[#allocation8 + $0x30] sm:$0xff] }
 0x66b   :  { %13130 = vmatmul.mubr.msk.f32.gmra.mrb[34].mxu0 %vm131_vm3, %v16209_v53  ;;  %v16599_v53 = vld [vmem:[#allocation3 + $0x132] sm:$0xff] }
 0x66c   :  { %13132 = vmatprep.mubr.msk.f32.mxu0 %vm131_vm3, %v16214_v28  ;;  %v8494_v28 = vld [vmem:[#allocation8] sm:$0xff] }
 0x66f   :  { %13133 = vmatmul.mubr.msk.f32.gmra.mrb[36].mxu0 %vm131_vm3, %v16223_v3  ;;  %v8495_v3 = vld [vmem:[#allocation8 + $0x8] sm:$0xff] }
 0x670   :  { %13135 = vmatprep.mubr.msk.f32.mxu0 %vm131_vm3, %v16445_v44 }
 0x673   :  { %13136 = vmatmul.mubr.msk.f32.gmra.mrb[38].mxu0 %vm131_vm3, %v16547_v47 }
 0x674   :  { %13138 = vmatprep.mubr.msk.f32.mxu0 %vm131_vm3, %v16238_v8  ;;  %v13578_v8 = vpack.c.bf16 %v8495_v3, %v8494_v28  ;;  %v9147_v28 = vld [vmem:[#allocation8 + $0x38] sm:$0xff] }
 0x675   :  { %v13586_v3 = vpack.c.bf16 %v9147_v28, %v9146_v63 }
 0x676   :  { %13579 = vmatprep.subr.bf16.mxu1 %v13578_v8 }
 0x677   :  { %13139 = vmatmul.mubr.msk.f32.gmra.mrb[40].mxu0 %vm131_vm3, %v16245_v42  ;;  %v16603_v42 = vld [vmem:[#allocation6] ss:$0 sm:$0xff] }
 0x678   :  { %13141 = vmatprep.mubr.msk.f32.mxu0 %vm131_vm3, %v16250_v57 }
 0x67b   :  { %13142 = vmatmul.mubr.msk.f32.gmra.mrb[42].mxu0 %vm131_vm3, %v16254_v48 }
 0x67c   :  { %13144 = vmatprep.mubr.msk.f32.mxu0 %vm131_vm3, %v16258_v11 }
 0x67f   :  { %13145 = vmatmul.mubr.msk.f32.gmra.mrb[44].mxu0 %vm131_vm3, %v16264_v19 }
 0x680   :  { %13147 = vmatprep.mubr.msk.f32.mxu0 %vm131_vm3, %v16463_v9 }
 0x683   :  { %13148 = vmatmul.mubr.msk.f32.gmra.mrb[46].mxu0 %vm131_vm3, %v16565_v50 }
 0x684   :  { %13154 = vmatprep.mubr.msk.f32.mxu0 %vm131_vm3, %v16339_v26 }
 0x687   :  { %13155 = vmatmul.mubr.msk.f32.vlgmr.msra.gmra.mrb[32].mxu0 %vm131_vm3, %v16343_v30 }
 0x688   :  { %13157 = vmatprep.mubr.msk.f32.mxu0 %vm131_vm3, %v16347_v36 }
 0x68b   :  { %13158 = vmatmul.mubr.msk.f32.gmra.mrb[34].mxu0 %vm131_vm3, %v16351_v37 }
 0x68c   :  { %13160 = vmatprep.mubr.msk.f32.mxu0 %vm131_vm3, %v16355_v24 }
 0x68f   :  { %13161 = vmatmul.mubr.msk.f32.gmra.mrb[36].mxu0 %vm131_vm3, %v16361_v52 }
 0x690   :  { %13163 = vmatprep.mubr.msk.f32.mxu0 %vm131_vm3, %v7534_v45 }
 0x693   :  { %13164 = vmatmul.mubr.msk.f32.gmra.mrb[38].mxu0 %vm131_vm3, %v16582_v21 }
 0x694   :  { %13166 = vmatprep.mubr.msk.f32.mxu0 %vm131_vm3, %v16371_v1 }
 0x697   :  { %13167 = vmatmul.mubr.msk.f32.gmra.mrb[40].mxu0 %vm131_vm3, %v16375_v27 }
 0x698   :  { %13169 = vmatprep.mubr.msk.f32.mxu0 %vm131_vm3, %v16379_v23 }
 0x69b   :  { %13170 = vmatmul.mubr.msk.f32.gmra.mrb[42].mxu0 %vm131_vm3, %v16383_v38 }
 0x69c   :  { %13172 = vmatprep.mubr.msk.f32.mxu0 %vm131_vm3, %v16387_v33 }
 0x69f   :  { %13173 = vmatmul.mubr.msk.f32.gmra.mrb[44].mxu0 %vm131_vm3, %v16391_v49 }
 0x6a0   :  { %13175 = vmatprep.mubr.msk.f32.mxu0 %vm131_vm3, %v7542_v34 }
 0x6a3   :  { %13176 = vmatmul.mubr.msk.f32.gmra.mrb[46].mxu0 %vm131_vm3, %v16599_v53 }
 0x75a   :  { %v13156_v57 = vpop.f32.mrb[32].mxu0 }
 0x75b   :  { %v8447_v48 = vadd.f32 %v13156_v57, %v16603_v42  ;;  %v8344_v11 = vpop.f32.mrb[33].mxu0 }
 0x75c   :  { %v8446_v19 = vadd.f32 %v16603_v42, %v8344_v11 }
 0x75d   :  { %8463 = vst.msk [vmem:[#allocation3 + $0x21] sm:$0xff] %vm131_vm3, %v8447_v48 }
 0x75e   :  { %8462 = vst.msk [vmem:[#allocation3 + $0x11] sm:$0xff] %vm131_vm3, %v8446_v19  ;;  %v13159_v41 = vpop.f32.mrb[34].mxu0 }
 0x75f   :  { %v8449_v43 = vadd.f32 %v13159_v41, %v16603_v42  ;;  %v8354_v0 = vpop.f32.mrb[35].mxu0 }
 0x760   :  { %v8448_v46 = vadd.f32 %v16603_v42, %v8354_v0 }
 0x761   :  { %8465 = vst.msk [vmem:[#allocation3 + $0x41] sm:$0xff] %vm131_vm3, %v8449_v43 }
 0x762   :  { %8464 = vst.msk [vmem:[#allocation3 + $0x31] sm:$0xff] %vm131_vm3, %v8448_v46  ;;  %v13162_v61 = vpop.f32.mrb[36].mxu0 }
 0x763   :  { %v8451_v62 = vadd.f32 %v13162_v61, %v16603_v42  ;;  %v8364_v6 = vpop.f32.mrb[37].mxu0  ;;  %v9374_v61 = vld [vmem:[#allocation8 + $0x40] sm:$0xff] }
 0x764   :  { %v8450_v58 = vadd.f32 %v16603_v42, %v8364_v6  ;;  %v16623_v36 = vld [vmem:[#allocation3 + $0x21] sm:$0xff] }
 0x765   :  { %8467 = vst.msk [vmem:[#allocation3 + $0x61] sm:$0xff] %vm131_vm3, %v8451_v62  ;;  %v16618_v26 = vld [vmem:[#allocation3 + $0x11] sm:$0xff]  ;;  %v9375_v62 = vld [vmem:[#allocation8 + $0x48] sm:$0xff] }
 0x766   :  { %8466 = vst.msk [vmem:[#allocation3 + $0x51] sm:$0xff] %vm131_vm3, %v8450_v58  ;;  %v13165_v30 = vpop.f32.mrb[38].mxu0  ;;  %13183 = vmatmul.mubr.msk.f32.vlgmr.msra.gmra.mrb[32].mxu1 %vm131_vm3, %v16618_v26  ;;  %v13590_v6 = vpack.c.bf16 %v9375_v62, %v9374_v61  ;;  %v16761_v58 = vld [vmem:[#allocation3 + $0x12] sm:$0xff] }
 0x767   :  { %v8453_v37 = vadd.f32 %v13165_v30, %v16603_v42  ;;  %v8374_v24 = vpop.f32.mrb[39].mxu0  ;;  %13185 = vmatprep.mubr.msk.f32.mxu1 %vm131_vm3, %v16623_v36  ;;  %13581 = vmatpush3.bf16.msra.mxu1 %v13578_v8  ;;  %v16700_v8 = vld [vmem:[#allocation3 + $0x10] sm:$0xff] }
 0x768   :  { %v8452_v52 = vadd.f32 %v16603_v42, %v8374_v24  ;;  %13583 = vmatprep.subr.bf16.mxu1 %v16615_v18  ;;  %v16636_v27 = vld [vmem:[#allocation3 + $0x41] sm:$0xff] }
 0x769   :  { %8469 = vst.msk [vmem:[#allocation3 + $0x81] sm:$0xff] %vm131_vm3, %v8453_v37  ;;  %v16631_v13 = vld [vmem:[#allocation3 + $0x31] sm:$0xff]  ;;  %v16773_v37 = vld [vmem:[#allocation3 + $0x42] sm:$0xff] }
 0x76a   :  { %8468 = vst.msk [vmem:[#allocation3 + $0x71] sm:$0xff] %vm131_vm3, %v8452_v52  ;;  %v13168_v1 = vpop.f32.mrb[40].mxu0  ;;  %13186 = vmatmul.mubr.msk.f32.gmra.mrb[34].mxu1 %vm131_vm3, %v16631_v13  ;;  %v16709_v57 = vld [vmem:[#allocation3 + $0x30] sm:$0xff] }
 0x76b   :  { %v8455_v23 = vadd.f32 %v13168_v1, %v16603_v42  ;;  %v8384_v38 = vpop.f32.mrb[41].mxu0  ;;  %13188 = vmatprep.mubr.msk.f32.mxu1 %vm131_vm3, %v16636_v27  ;;  %v16769_v30 = vld [vmem:[#allocation3 + $0x32] sm:$0xff] }
 0x76c   :  { %v8454_v33 = vadd.f32 %v16603_v42, %v8384_v38  ;;  %v16648_v60 = vld [vmem:[#allocation3 + $0x61] sm:$0xff] }
 0x76d   :  { %8471 = vst.msk [vmem:[#allocation3 + $0xc1] sm:$0xff] %vm131_vm3, %v8455_v23  ;;  %v16643_v49 = vld [vmem:[#allocation3 + $0x51] sm:$0xff]  ;;  %v16721_v11 = vld [vmem:[#allocation3 + $0x60] sm:$0xff] }
 0x76e   :  { %8470 = vst.msk [vmem:[#allocation3 + $0xb1] sm:$0xff] %vm131_vm3, %v8454_v33  ;;  %v13171_v29 = vpop.f32.mrb[42].mxu0  ;;  %13189 = vmatmul.mubr.msk.f32.gmra.mrb[36].mxu1 %vm131_vm3, %v16643_v49  ;;  %v16717_v48 = vld [vmem:[#allocation3 + $0x50] sm:$0xff]  ;;  %v16781_v24 = vld [vmem:[#allocation3 + $0x62] sm:$0xff] }
 0x76f   :  { %v8457_v31 = vadd.f32 %v13171_v29, %v16603_v42  ;;  %v8394_v55 = vpop.f32.mrb[43].mxu0  ;;  %13191 = vmatprep.mubr.msk.f32.mxu1 %vm131_vm3, %v16648_v60 }
 0x770   :  { %v8456_v32 = vadd.f32 %v16603_v42, %v8394_v55  ;;  %v9602_v55 = vld [vmem:[#allocation8 + $0x50] sm:$0xff] }
 0x771   :  { %8473 = vst.msk [vmem:[#allocation3 + $0xe1] sm:$0xff] %vm131_vm3, %v8457_v31  ;;  %v16655_v4 = vld [vmem:[#allocation3 + $0x71] sm:$0xff]  ;;  %v9592_v28 = vld [vmem:[#allocation3 + $0x82] sm:$0xff] }
 0x772   :  { %8472 = vst.msk [vmem:[#allocation3 + $0xd1] sm:$0xff] %vm131_vm3, %v8456_v32  ;;  %v13174_v5 = vpop.f32.mrb[44].mxu0  ;;  %13192 = vmatmul.mubr.msk.f32.gmra.mrb[38].mxu1 %vm131_vm3, %v16655_v4  ;;  %v16725_v19 = vld [vmem:[#allocation3 + $0x70] sm:$0xff] }
 0x773   :  { %v8459_v7 = vadd.f32 %v13174_v5, %v16603_v42  ;;  %v8404_v44 = vpop.f32.mrb[45].mxu0  ;;  %13194 = vmatprep.mubr.msk.f32.mxu1 %vm131_vm3, %v16220_v2  ;;  %v16785_v52 = vld [vmem:[#allocation3 + $0x72] sm:$0xff]  ;;  %v9603_v32 = vld [vmem:[#allocation8 + $0x58] sm:$0xff] }
 0x774   :  { %v8458_v9 = vadd.f32 %v16603_v42, %v8404_v44  ;;  %v16670_v10 = vld [vmem:[#allocation3 + $0xc1] sm:$0xff]  ;;  %v13594_v5 = vpack.c.bf16 %v9603_v32, %v9602_v55 }
 0x775   :  { %8475 = vst.msk [vmem:[#allocation3 + $0x101] sm:$0xff] %vm131_vm3, %v8459_v7  ;;  %v16665_v39 = vld [vmem:[#allocation3 + $0xb1] sm:$0xff]  ;;  %v16735_v43 = vld [vmem:[#allocation3 + $0xc0] sm:$0xff] }
 0x776   :  { %8474 = vst.msk [vmem:[#allocation3 + $0xf1] sm:$0xff] %vm131_vm3, %v8458_v9  ;;  %v13177_v40 = vpop.f32.mrb[46].mxu0  ;;  %13195 = vmatmul.mubr.msk.f32.gmra.mrb[40].mxu1 %vm131_vm3, %v16665_v39  ;;  %v16731_v41 = vld [vmem:[#allocation3 + $0xb0] sm:$0xff]  ;;  %v16795_v23 = vld [vmem:[#allocation3 + $0xc2] sm:$0xff] }
 0x777   :  { %v8461_v20 = vadd.f32 %v13177_v40, %v16603_v42  ;;  %v8414_v22 = vpop.f32.mrb[47].mxu0  ;;  %13197 = vmatprep.mubr.msk.f32.mxu1 %vm131_vm3, %v16670_v10  ;;  %v16791_v1 = vld [vmem:[#allocation3 + $0xb2] sm:$0xff]  ;;  %v16833_v7 = vld [vmem:[#allocation3 + $0x80] sm:$0xff] }
 0x778   :  { %v8460_v2 = vadd.f32 %v16603_v42, %v8414_v22  ;;  %v16682_v45 = vld [vmem:[#allocation3 + $0xe1] sm:$0xff]  ;;  %v9830_v9 = vld [vmem:[#allocation8 + $0x60] sm:$0xff] }
 0x779   :  { %8477 = vst.msk [vmem:[#allocation3 + $0x121] sm:$0xff] %vm131_vm3, %v8461_v20  ;;  %v16677_v25 = vld [vmem:[#allocation3 + $0xd1] sm:$0xff]  ;;  %v16704_v42 = vld [vmem:[#allocation3 + $0x20] sm:$0xff] }
 0x77a   :  { %8476 = vst.msk [vmem:[#allocation3 + $0x111] sm:$0xff] %vm131_vm3, %v8460_v2  ;;  %13198 = vmatmul.mubr.msk.f32.gmra.mrb[42].mxu1 %vm131_vm3, %v16677_v25  ;;  %v16739_v0 = vld [vmem:[#allocation3 + $0xd0] sm:$0xff]  ;;  %v16743_v46 = vld [vmem:[#allocation3 + $0xe0] sm:$0xff] }
 0x77b   :  { %13200 = vmatprep.mubr.msk.f32.mxu1 %vm131_vm3, %v16682_v45  ;;  %v16799_v38 = vld [vmem:[#allocation3 + $0xd2] sm:$0xff]  ;;  %v16803_v33 = vld [vmem:[#allocation3 + $0xe2] sm:$0xff]  ;;  %v9831_v40 = vld [vmem:[#allocation8 + $0x68] sm:$0xff] }
 0x77c   :  { %v16690_v59 = vld [vmem:[#allocation3 + $0x101] sm:$0xff]  ;;  %v13598_v20 = vpack.c.bf16 %v9831_v40, %v9830_v9  ;;  %v10059_v2 = vld [vmem:[#allocation8 + $0x78] sm:$0xff] }
 0x77d   :  { %v16686_v34 = vld [vmem:[#allocation3 + $0xf1] sm:$0xff]  ;;  %v16751_v56 = vld [vmem:[#allocation3 + $0x100] sm:$0xff] }
 0x77e   :  { %13201 = vmatmul.mubr.msk.f32.gmra.mrb[44].mxu1 %vm131_vm3, %v16686_v34  ;;  %v16811_v29 = vld [vmem:[#allocation3 + $0x102] sm:$0xff] }
 0x77f   :  { %13203 = vmatprep.mubr.msk.f32.mxu1 %vm131_vm3, %v16690_v59 }
 0x780   :  { %v16851_v44 = vld [vmem:[#allocation3 + $0x120] sm:$0xff] }
 0x781   :  { %v16694_v16 = vld [vmem:[#allocation3 + $0x111] sm:$0xff]  ;;  %v9372_v22 = vld [vmem:[#allocation3 + $0x121] sm:$0xff] }
 0x782   :  { %13204 = vmatmul.mubr.msk.f32.gmra.mrb[46].mxu1 %vm131_vm3, %v16694_v16  ;;  %v16755_v17 = vld [vmem:[#allocation3 + $0x110] sm:$0xff] }
 0x783   :  { %13210 = vmatprep.mubr.msk.f32.mxu1 %vm131_vm3, %v16262_v14  ;;  %v16713_v14 = vld [vmem:[#allocation3 + $0x40] sm:$0xff]  ;;  %v16815_v31 = vld [vmem:[#allocation3 + $0x112] sm:$0xff] }
 0x786   :  { %13211 = vmatmul.mubr.msk.f32.vlgmr.msra.gmra.mrb[32].mxu1 %vm131_vm3, %v16700_v8 }
 0x787   :  { %13213 = vmatprep.mubr.msk.f32.mxu1 %vm131_vm3, %v16704_v42  ;;  %13585 = vmatpush3.bf16.msra.mxu1 %v16615_v18  ;;  %v16765_v18 = vld [vmem:[#allocation3 + $0x22] sm:$0xff] }
 0x788   :  { %13587 = vmatprep.subr.bf16.mxu1 %v13586_v3 }
 0x78a   :  { %13214 = vmatmul.mubr.msk.f32.gmra.mrb[34].mxu1 %vm131_vm3, %v16709_v57 }
 0x78b   :  { %13216 = vmatprep.mubr.msk.f32.mxu1 %vm131_vm3, %v16713_v14 }
 0x78e   :  { %13217 = vmatmul.mubr.msk.f32.gmra.mrb[36].mxu1 %vm131_vm3, %v16717_v48 }
 0x78f   :  { %13219 = vmatprep.mubr.msk.f32.mxu1 %vm131_vm3, %v16721_v11 }
 0x792   :  { %13220 = vmatmul.mubr.msk.f32.gmra.mrb[38].mxu1 %vm131_vm3, %v16725_v19 }
 0x793   :  { %13222 = vmatprep.mubr.msk.f32.mxu1 %vm131_vm3, %v16295_v15  ;;  %v16747_v15 = vld [vmem:[#allocation3 + $0xf0] sm:$0xff] }
 0x796   :  { %13223 = vmatmul.mubr.msk.f32.gmra.mrb[40].mxu1 %vm131_vm3, %v16731_v41 }
 0x797   :  { %13225 = vmatprep.mubr.msk.f32.mxu1 %vm131_vm3, %v16735_v43 }
 0x79a   :  { %13226 = vmatmul.mubr.msk.f32.gmra.mrb[42].mxu1 %vm131_vm3, %v16739_v0 }
 0x79b   :  { %13228 = vmatprep.mubr.msk.f32.mxu1 %vm131_vm3, %v16743_v46 }
 0x79e   :  { %13229 = vmatmul.mubr.msk.f32.gmra.mrb[44].mxu1 %vm131_vm3, %v16747_v15 }
 0x79f   :  { %13231 = vmatprep.mubr.msk.f32.mxu1 %vm131_vm3, %v16751_v56 }
 0x7a2   :  { %13232 = vmatmul.mubr.msk.f32.gmra.mrb[46].mxu1 %vm131_vm3, %v16755_v17 }
 0x7a3   :  { %13238 = vmatprep.mubr.msk.f32.mxu1 %vm131_vm3, %v16327_v12  ;;  %v16777_v12 = vld [vmem:[#allocation3 + $0x52] sm:$0xff] }
 0x7a6   :  { %13239 = vmatmul.mubr.msk.f32.vlgmr.msra.gmra.mrb[32].mxu1 %vm131_vm3, %v16761_v58 }
 0x7a7   :  { %13241 = vmatprep.mubr.msk.f32.mxu1 %vm131_vm3, %v16765_v18  ;;  %13589 = vmatpush3.bf16.msra.mxu1 %v13586_v3  ;;  %v9600_v3 = vld [vmem:[#allocation3 + $0x122] sm:$0xff] }
 0x7a8   :  { %13591 = vmatprep.subr.bf16.mxu1 %v13590_v6 }
 0x7aa   :  { %13242 = vmatmul.mubr.msk.f32.gmra.mrb[34].mxu1 %vm131_vm3, %v16769_v30 }
 0x7ab   :  { %13244 = vmatprep.mubr.msk.f32.mxu1 %vm131_vm3, %v16773_v37 }
 0x7ae   :  { %13245 = vmatmul.mubr.msk.f32.gmra.mrb[36].mxu1 %vm131_vm3, %v16777_v12 }
 0x7af   :  { %13247 = vmatprep.mubr.msk.f32.mxu1 %vm131_vm3, %v16781_v24 }
 0x7b2   :  { %13248 = vmatmul.mubr.msk.f32.gmra.mrb[38].mxu1 %vm131_vm3, %v16785_v52 }
 0x7b3   :  { %13250 = vmatprep.mubr.msk.f32.mxu1 %vm131_vm3, %v16359_v35  ;;  %v16807_v35 = vld [vmem:[#allocation3 + $0xf2] sm:$0xff] }
 0x7b6   :  { %13251 = vmatmul.mubr.msk.f32.gmra.mrb[40].mxu1 %vm131_vm3, %v16791_v1 }
 0x7b7   :  { %13253 = vmatprep.mubr.msk.f32.mxu1 %vm131_vm3, %v16795_v23 }
 0x7ba   :  { %13254 = vmatmul.mubr.msk.f32.gmra.mrb[42].mxu1 %vm131_vm3, %v16799_v38 }
 0x7bb   :  { %13256 = vmatprep.mubr.msk.f32.mxu1 %vm131_vm3, %v16803_v33 }
 0x7be   :  { %13257 = vmatmul.mubr.msk.f32.gmra.mrb[44].mxu1 %vm131_vm3, %v16807_v35 }
 0x7bf   :  { %13259 = vmatprep.mubr.msk.f32.mxu1 %vm131_vm3, %v16811_v29 }
 0x7c2   :  { %13260 = vmatmul.mubr.msk.f32.gmra.mrb[46].mxu1 %vm131_vm3, %v16815_v31 }
 0x7c3   :  { %13266 = vmatprep.mubr.msk.f32.mxu1 %vm131_vm3, %v16700_v8  ;;  %v10286_v8 = vld [vmem:[#allocation8 + $0x80] sm:$0xff] }
 0x7c6   :  { %13267 = vmatmul.mubr.msk.f32.vlgmr.msra.gmra.mrb[32].mxu1 %vm131_vm3, %v16704_v42 }
 0x7c7   :  { %13269 = vmatprep.mubr.msk.f32.mxu1 %vm131_vm3, %v16709_v57  ;;  %13593 = vmatpush3.bf16.msra.mxu1 %v13590_v6 }
 0x7c8   :  { %13595 = vmatprep.subr.bf16.mxu1 %v13594_v5 }
 0x7ca   :  { %13270 = vmatmul.mubr.msk.f32.gmra.mrb[34].mxu1 %vm131_vm3, %v16713_v14 }
 0x7cb   :  { %13272 = vmatprep.mubr.msk.f32.mxu1 %vm131_vm3, %v16717_v48 }
 0x7ce   :  { %13273 = vmatmul.mubr.msk.f32.gmra.mrb[36].mxu1 %vm131_vm3, %v16721_v11 }
 0x7cf   :  { %13275 = vmatprep.mubr.msk.f32.mxu1 %vm131_vm3, %v16725_v19 }
 0x7d2   :  { %13276 = vmatmul.mubr.msk.f32.gmra.mrb[38].mxu1 %vm131_vm3, %v16833_v7 }
 0x7d3   :  { %13278 = vmatprep.mubr.msk.f32.mxu1 %vm131_vm3, %v16731_v41  ;;  %v10287_v41 = vld [vmem:[#allocation8 + $0x88] sm:$0xff] }
 0x7d4   :  { %v13606_v61 = vpack.c.bf16 %v10287_v41, %v10286_v8 }
 0x7d6   :  { %13279 = vmatmul.mubr.msk.f32.gmra.mrb[40].mxu1 %vm131_vm3, %v16735_v43 }
 0x7d7   :  { %13281 = vmatprep.mubr.msk.f32.mxu1 %vm131_vm3, %v16739_v0 }
 0x7da   :  { %13282 = vmatmul.mubr.msk.f32.gmra.mrb[42].mxu1 %vm131_vm3, %v16743_v46 }
 0x7db   :  { %13284 = vmatprep.mubr.msk.f32.mxu1 %vm131_vm3, %v16747_v15 }
 0x7de   :  { %13285 = vmatmul.mubr.msk.f32.gmra.mrb[44].mxu1 %vm131_vm3, %v16751_v56 }
 0x7df   :  { %13287 = vmatprep.mubr.msk.f32.mxu1 %vm131_vm3, %v16755_v17 }
 0x7e2   :  { %13288 = vmatmul.mubr.msk.f32.gmra.mrb[46].mxu1 %vm131_vm3, %v16851_v44 }
 0x7e3   :  { %13294 = vmatprep.mubr.msk.f32.mxu1 %vm131_vm3, %v16618_v26  ;;  %v9364_v26 = vld [vmem:[#allocation3 + $0x81] sm:$0xff] }
 0x7e6   :  { %13295 = vmatmul.mubr.msk.f32.vlgmr.msra.gmra.mrb[32].mxu1 %vm131_vm3, %v16623_v36 }
 0x7e7   :  { %13297 = vmatprep.mubr.msk.f32.mxu1 %vm131_vm3, %v16631_v13  ;;  %13597 = vmatpush3.bf16.msra.mxu1 %v13594_v5 }
 0x7e8   :  { %13599 = vmatprep.subr.bf16.mxu1 %v13598_v20 }
 0x7ea   :  { %13298 = vmatmul.mubr.msk.f32.gmra.mrb[34].mxu1 %vm131_vm3, %v16636_v27 }
 0x7eb   :  { %13300 = vmatprep.mubr.msk.f32.mxu1 %vm131_vm3, %v16643_v49 }
 0x7ee   :  { %13301 = vmatmul.mubr.msk.f32.gmra.mrb[36].mxu1 %vm131_vm3, %v16648_v60 }
 0x7ef   :  { %13303 = vmatprep.mubr.msk.f32.mxu1 %vm131_vm3, %v16655_v4 }
 0x7f2   :  { %13304 = vmatmul.mubr.msk.f32.gmra.mrb[38].mxu1 %vm131_vm3, %v9364_v26 }
 0x7f3   :  { %13306 = vmatprep.mubr.msk.f32.mxu1 %vm131_vm3, %v16665_v39  ;;  %v10058_v39 = vld [vmem:[#allocation8 + $0x70] sm:$0xff] }
 0x7f4   :  { %v13602_v63 = vpack.c.bf16 %v10059_v2, %v10058_v39 }
 0x7f6   :  { %13307 = vmatmul.mubr.msk.f32.gmra.mrb[40].mxu1 %vm131_vm3, %v16670_v10 }
 0x7f7   :  { %13309 = vmatprep.mubr.msk.f32.mxu1 %vm131_vm3, %v16677_v25 }
 0x7fa   :  { %13310 = vmatmul.mubr.msk.f32.gmra.mrb[42].mxu1 %vm131_vm3, %v16682_v45 }
 0x7fb   :  { %13312 = vmatprep.mubr.msk.f32.mxu1 %vm131_vm3, %v16686_v34 }
 0x7fe   :  { %13313 = vmatmul.mubr.msk.f32.gmra.mrb[44].mxu1 %vm131_vm3, %v16690_v59 }
 0x7ff   :  { %13315 = vmatprep.mubr.msk.f32.mxu1 %vm131_vm3, %v16694_v16 }
 0x802   :  { %13316 = vmatmul.mubr.msk.f32.gmra.mrb[46].mxu1 %vm131_vm3, %v9372_v22 }
 0x803   :  { %13322 = vmatprep.mubr.msk.f32.mxu1 %vm131_vm3, %v16761_v58 }
 0x806   :  { %13323 = vmatmul.mubr.msk.f32.vlgmr.msra.gmra.mrb[32].mxu1 %vm131_vm3, %v16765_v18 }
 0x807   :  { %13325 = vmatprep.mubr.msk.f32.mxu1 %vm131_vm3, %v16769_v30  ;;  %13601 = vmatpush3.bf16.msra.mxu1 %v13598_v20 }
 0x808   :  { %13603 = vmatprep.subr.bf16.mxu1 %v13602_v63 }
 0x80a   :  { %13326 = vmatmul.mubr.msk.f32.gmra.mrb[34].mxu1 %vm131_vm3, %v16773_v37 }
 0x80b   :  { %13328 = vmatprep.mubr.msk.f32.mxu1 %vm131_vm3, %v16777_v12 }
 0x80e   :  { %13329 = vmatmul.mubr.msk.f32.gmra.mrb[36].mxu1 %vm131_vm3, %v16781_v24 }
 0x80f   :  { %13331 = vmatprep.mubr.msk.f32.mxu1 %vm131_vm3, %v16785_v52 }
 0x812   :  { %13332 = vmatmul.mubr.msk.f32.gmra.mrb[38].mxu1 %vm131_vm3, %v9592_v28 }
 0x813   :  { %13334 = vmatprep.mubr.msk.f32.mxu1 %vm131_vm3, %v16791_v1 }
 0x816   :  { %13335 = vmatmul.mubr.msk.f32.gmra.mrb[40].mxu1 %vm131_vm3, %v16795_v23 }
 0x817   :  { %13337 = vmatprep.mubr.msk.f32.mxu1 %vm131_vm3, %v16799_v38 }
 0x81a   :  { %13338 = vmatmul.mubr.msk.f32.gmra.mrb[42].mxu1 %vm131_vm3, %v16803_v33 }
 0x81b   :  { %13340 = vmatprep.mubr.msk.f32.mxu1 %vm131_vm3, %v16807_v35 }
 0x81e   :  { %13341 = vmatmul.mubr.msk.f32.gmra.mrb[44].mxu1 %vm131_vm3, %v16811_v29 }
 0x81f   :  { %13343 = vmatprep.mubr.msk.f32.mxu1 %vm131_vm3, %v16815_v31 }
 0x822   :  { %13344 = vmatmul.mubr.msk.f32.gmra.mrb[46].mxu1 %vm131_vm3, %v9600_v3 }
 0x823   :  { %13350 = vmatprep.mubr.msk.f32.mxu1 %vm131_vm3, %v16704_v42 }
 0x826   :  { %13351 = vmatmul.mubr.msk.f32.vlgmr.msra.gmra.mrb[32].mxu1 %vm131_vm3, %v16709_v57 }
 0x827   :  { %13353 = vmatprep.mubr.msk.f32.mxu1 %vm131_vm3, %v16713_v14  ;;  %13605 = vmatpush3.bf16.msra.mxu1 %v13602_v63 }
 0x828   :  { %13607 = vmatprep.subr.bf16.mxu1 %v13606_v61 }
 0x82a   :  { %13354 = vmatmul.mubr.msk.f32.gmra.mrb[34].mxu1 %vm131_vm3, %v16717_v48 }
 0x82b   :  { %13356 = vmatprep.mubr.msk.f32.mxu1 %vm131_vm3, %v16721_v11 }
 0x82e   :  { %13357 = vmatmul.mubr.msk.f32.gmra.mrb[36].mxu1 %vm131_vm3, %v16725_v19 }
 0x82f   :  { %13359 = vmatprep.mubr.msk.f32.mxu1 %vm131_vm3, %v16833_v7 }
 0x832   :  { %13360 = vmatmul.mubr.msk.f32.gmra.mrb[38].mxu1 %vm131_vm3, %v16511_v51  ;;  %v11332_v51 = vld [vmem:[#allocation9] ss:$0 sm:$0xff] }
 0x833   :  { %13362 = vmatprep.mubr.msk.f32.mxu1 %vm131_vm3, %v16735_v43 }
 0x836   :  { %13363 = vmatmul.mubr.msk.f32.gmra.mrb[40].mxu1 %vm131_vm3, %v16739_v0 }
 0x837   :  { %13365 = vmatprep.mubr.msk.f32.mxu1 %vm131_vm3, %v16743_v46 }
 0x83a   :  { %13366 = vmatmul.mubr.msk.f32.gmra.mrb[42].mxu1 %vm131_vm3, %v16747_v15 }
 0x83b   :  { %13368 = vmatprep.mubr.msk.f32.mxu1 %vm131_vm3, %v16751_v56 }
 0x83e   :  { %13369 = vmatmul.mubr.msk.f32.gmra.mrb[44].mxu1 %vm131_vm3, %v16755_v17 }
 0x83f   :  { %13371 = vmatprep.mubr.msk.f32.mxu1 %vm131_vm3, %v16851_v44 }
 0x842   :  { %13372 = vmatmul.mubr.msk.f32.gmra.mrb[46].mxu1 %vm131_vm3, %v16529_v54 }
 0x843   :  { %13378 = vmatprep.mubr.msk.f32.mxu1 %vm131_vm3, %v16623_v36 }
 0x846   :  { %13379 = vmatmul.mubr.msk.f32.vlgmr.msra.gmra.mrb[32].mxu1 %vm131_vm3, %v16631_v13 }
 0x847   :  { %13381 = vmatprep.mubr.msk.f32.mxu1 %vm131_vm3, %v16636_v27  ;;  %13609 = vmatpush3.bf16.msra.mxu1 %v13606_v61 }
 0x84a   :  { %13382 = vmatmul.mubr.msk.f32.gmra.mrb[34].mxu1 %vm131_vm3, %v16643_v49 }
 0x84b   :  { %13384 = vmatprep.mubr.msk.f32.mxu1 %vm131_vm3, %v16648_v60 }
 0x84e   :  { %13385 = vmatmul.mubr.msk.f32.gmra.mrb[36].mxu1 %vm131_vm3, %v16655_v4 }
 0x84f   :  { %13387 = vmatprep.mubr.msk.f32.mxu1 %vm131_vm3, %v9364_v26 }
 0x852   :  { %13388 = vmatmul.mubr.msk.f32.gmra.mrb[38].mxu1 %vm131_vm3, %v16547_v47 }
 0x853   :  { %13390 = vmatprep.mubr.msk.f32.mxu1 %vm131_vm3, %v16670_v10 }
 0x856   :  { %13391 = vmatmul.mubr.msk.f32.gmra.mrb[40].mxu1 %vm131_vm3, %v16677_v25 }
 0x857   :  { %13393 = vmatprep.mubr.msk.f32.mxu1 %vm131_vm3, %v16682_v45 }
 0x85a   :  { %13394 = vmatmul.mubr.msk.f32.gmra.mrb[42].mxu1 %vm131_vm3, %v16686_v34 }
 0x85b   :  { %13396 = vmatprep.mubr.msk.f32.mxu1 %vm131_vm3, %v16690_v59 }
 0x85e   :  { %13397 = vmatmul.mubr.msk.f32.gmra.mrb[44].mxu1 %vm131_vm3, %v16694_v16 }
 0x85f   :  { %13399 = vmatprep.mubr.msk.f32.mxu1 %vm131_vm3, %v9372_v22 }
 0x862   :  { %13400 = vmatmul.mubr.msk.f32.gmra.mrb[46].mxu1 %vm131_vm3, %v16565_v50 }
 0x863   :  { %13406 = vmatprep.mubr.msk.f32.mxu1 %vm131_vm3, %v16765_v18 }
 0x866   :  { %13407 = vmatmul.mubr.msk.f32.vlgmr.msra.gmra.mrb[32].mxu1 %vm131_vm3, %v16769_v30 }
 0x867   :  { %13409 = vmatprep.mubr.msk.f32.mxu1 %vm131_vm3, %v16773_v37 }
 0x86a   :  { %13410 = vmatmul.mubr.msk.f32.gmra.mrb[34].mxu1 %vm131_vm3, %v16777_v12 }
 0x86b   :  { %13412 = vmatprep.mubr.msk.f32.mxu1 %vm131_vm3, %v16781_v24 }
 0x86e   :  { %13413 = vmatmul.mubr.msk.f32.gmra.mrb[36].mxu1 %vm131_vm3, %v16785_v52 }
 0x86f   :  { %13415 = vmatprep.mubr.msk.f32.mxu1 %vm131_vm3, %v9592_v28 }
 0x872   :  { %13416 = vmatmul.mubr.msk.f32.gmra.mrb[38].mxu1 %vm131_vm3, %v16582_v21 }
 0x873   :  { %13418 = vmatprep.mubr.msk.f32.mxu1 %vm131_vm3, %v16795_v23 }
 0x876   :  { %13419 = vmatmul.mubr.msk.f32.gmra.mrb[40].mxu1 %vm131_vm3, %v16799_v38 }
 0x877   :  { %13421 = vmatprep.mubr.msk.f32.mxu1 %vm131_vm3, %v16803_v33 }
 0x87a   :  { %13422 = vmatmul.mubr.msk.f32.gmra.mrb[42].mxu1 %vm131_vm3, %v16807_v35 }
 0x87b   :  { %13424 = vmatprep.mubr.msk.f32.mxu1 %vm131_vm3, %v16811_v29 }
 0x87e   :  { %13425 = vmatmul.mubr.msk.f32.gmra.mrb[44].mxu1 %vm131_vm3, %v16815_v31 }
 0x87f   :  { %13427 = vmatprep.mubr.msk.f32.mxu1 %vm131_vm3, %v9600_v3 }
 0x882   :  { %13428 = vmatmul.mubr.msk.f32.gmra.mrb[46].mxu1 %vm131_vm3, %v16599_v53 }
 0x939   :  { %v13408_v54 = vpop.f32.mrb[32].mxu1 }
 0x93a   :  { %v10505_v47 = vadd.f32 %v13408_v54, %v11332_v51  ;;  %v10402_v50 = vpop.f32.mrb[33].mxu1 }
 0x93b   :  { %v10504_v21 = vadd.f32 %v11332_v51, %v10402_v50 }
 0x93c   :  { %10521 = vst.msk [vmem:[%s17082_s11 + $0x8] sm:$0xff] %vm131_vm3, %v10505_v47 }
 0x93d   :  { %10520 = vst.msk [vmem:[%s17082_s11] sm:$0xff] %vm131_vm3, %v10504_v21  ;;  %v13411_v36 = vpop.f32.mrb[34].mxu1 }
 0x93e   :  { %v10507_v13 = vadd.f32 %v13411_v36, %v11332_v51  ;;  %v10412_v27 = vpop.f32.mrb[35].mxu1 }
 0x93f   :  { %v10506_v49 = vadd.f32 %v11332_v51, %v10412_v27 }
 0x940   :  { %10523 = vst.msk [vmem:[%s17082_s11 + $0x18] sm:$0xff] %vm131_vm3, %v10507_v13 }
 0x941   :  { %10522 = vst.msk [vmem:[%s17082_s11 + $0x10] sm:$0xff] %vm131_vm3, %v10506_v49  ;;  %v13414_v53 = vpop.f32.mrb[36].mxu1 }
 0x942   :  { %v10509_v60 = vadd.f32 %v13414_v53, %v11332_v51  ;;  %v10422_v4 = vpop.f32.mrb[37].mxu1 }
 0x943   :  { %v10508_v10 = vadd.f32 %v11332_v51, %v10422_v4 }
 0x944   :  { %10525 = vst.msk [vmem:[%s17082_s11 + $0x28] sm:$0xff] %vm131_vm3, %v10509_v60 }
 0x945   :  { %10524 = vst.msk [vmem:[%s17082_s11 + $0x20] sm:$0xff] %vm131_vm3, %v10508_v10  ;;  %v13417_v25 = vpop.f32.mrb[38].mxu1 }
 0x946   :  { %v10511_v45 = vadd.f32 %v13417_v25, %v11332_v51  ;;  %v10432_v34 = vpop.f32.mrb[39].mxu1 }
 0x947   :  { %v10510_v59 = vadd.f32 %v11332_v51, %v10432_v34 }
 0x948   :  { %10527 = vst.msk [vmem:[%s17082_s11 + $0x38] sm:$0xff] %vm131_vm3, %v10511_v45 }
 0x949   :  { %10526 = vst.msk [vmem:[%s17082_s11 + $0x30] sm:$0xff] %vm131_vm3, %v10510_v59  ;;  %v13420_v16 = vpop.f32.mrb[40].mxu1 }
 0x94a   :  { %v10513_v42 = vadd.f32 %v13420_v16, %v11332_v51  ;;  %v10442_v57 = vpop.f32.mrb[41].mxu1 }
 0x94b   :  { %v10512_v14 = vadd.f32 %v11332_v51, %v10442_v57 }
 0x94c   :  { %10529 = vst.msk [vmem:[%s17082_s11 + $0x48] sm:$0xff] %vm131_vm3, %v10513_v42 }
 0x94d   :  { %10528 = vst.msk [vmem:[%s17082_s11 + $0x40] sm:$0xff] %vm131_vm3, %v10512_v14  ;;  %v13423_v48 = vpop.f32.mrb[42].mxu1 }
 0x94e   :  { %v10515_v11 = vadd.f32 %v13423_v48, %v11332_v51  ;;  %v10452_v19 = vpop.f32.mrb[43].mxu1 }
 0x94f   :  { %v10514_v43 = vadd.f32 %v11332_v51, %v10452_v19 }
 0x950   :  { %10531 = vst.msk [vmem:[%s17082_s11 + $0x58] sm:$0xff] %vm131_vm3, %v10515_v11 }
 0x951   :  { %10530 = vst.msk [vmem:[%s17082_s11 + $0x50] sm:$0xff] %vm131_vm3, %v10514_v43  ;;  %v13426_v0 = vpop.f32.mrb[44].mxu1 }
 0x952   :  { %v10517_v46 = vadd.f32 %v13426_v0, %v11332_v51  ;;  %v10462_v15 = vpop.f32.mrb[45].mxu1 }
 0x953   :  { %v10516_v56 = vadd.f32 %v11332_v51, %v10462_v15 }
 0x954   :  { %10533 = vst.msk [vmem:[%s17082_s11 + $0x68] sm:$0xff] %vm131_vm3, %v10517_v46 }
 0x955   :  { %10532 = vst.msk [vmem:[%s17082_s11 + $0x60] sm:$0xff] %vm131_vm3, %v10516_v56  ;;  %v13429_v17 = vpop.f32.mrb[46].mxu1 }
 0x956   :  { %v10519_v62 = vadd.f32 %v13429_v17, %v11332_v51  ;;  %v10472_v6 = vpop.f32.mrb[47].mxu1 }
 0x957   :  { %v10518_v58 = vadd.f32 %v11332_v51, %v10472_v6 }
 0x958   :  { %10535 = vst.msk [vmem:[%s17082_s11 + $0x78] sm:$0xff] %vm131_vm3, %v10519_v62 }
 0x959   :  { %10534 = vst.msk [vmem:[%s17082_s11 + $0x70] sm:$0xff] %vm131_vm3, %v10518_v58 }
 0x95a   :  { %10540 = vsyncpa [#allocation5], 1 }
 0x95b   :  { %10541 = vsyncpa [#allocation7], 1 }
 0x95c   :  { %10542 = vsyncpa [#allocation10], 1 }

</bundles_post_ra>
